<compile_context>
chip_gen: v7x
topology: tpu7x:2x2x1
jax: 0.10.0
libtpu: 0.0.40
codegen_flags: <defaults>
</compile_context>

<pallas_src>
import jax
import jax.numpy as jnp
from jax import lax
from jax.experimental import pallas as pl
from jax.experimental.pallas import tpu as pltpu

# ---------------- small synthetic config ----------------
B = 2                      # batch
S = 12                     # text sequence length
D = 32                     # gpt2_cfg['last_hidden_dim']
H = 2                      # attention heads
DH = D // H
NLAYER = 2                 # gpt2 blocks
VOCAB = 64
MLP = 4 * D
IMG = 16                   # image height == width
PATCH = 8
NPATCH = (IMG // PATCH) ** 2   # swin_cfg['num_patches'] = 4
VDIM = 16                  # swin_cfg['last_hidden_dim']
IMG_TOKEN_ID = 60
BOX_TOKEN_ID = 61

SLAB_W = 128               # lane width of packed parameter slabs
assert MLP <= SLAB_W and 3 * D <= SLAB_W

# rows of the global (non-layer) parameter slab  (16, 128) f32
GV_LNF_G, GV_LNF_B = 0, 1
GV_VIS_PB, GV_VIS_LG, GV_VIS_LB = 2, 3, 4
GV_PROJ_B1, GV_PROJ_B2 = 5, 6
GV_ENC_B1, GV_ENC_B2 = 7, 8
GV_DEC_B1, GV_DEC_B2 = 9, 10
GV_ROWS = 16

# rows of the per-layer parameter slab  (NLAYER, 8, 128) f32
SL_LN1_G, SL_LN1_B, SL_LN2_G, SL_LN2_B = 0, 1, 2, 3
SL_ATTN_B, SL_PROJ_B, SL_FC_B, SL_FC2_B = 4, 5, 6, 7
SL_ROWS = 8


# ---------------- BlockSpec helpers ----------------
def _rep(shape):
    """Whole array resident in VMEM; same block every grid step (DMA'd once)."""
    zeros = (0,) * len(shape)
    return pl.BlockSpec(tuple(shape), lambda *_, z=zeros: z)


def _per_layer(block_shape):
    """Stacked-per-layer weight: leading axis indexed by the layer grid step."""
    tail = (0,) * (len(block_shape) - 1)
    return pl.BlockSpec(tuple(block_shape), lambda l, t=tail: (l,) + t)


# ---------------- in-kernel math helpers ----------------
def _mm(x, w, b=None):
    """bf16 x bf16 MXU matmul with f32 accumulation (+ optional f32 bias)."""
    y = jnp.dot(x.astype(jnp.bfloat16), w.astype(jnp.bfloat16),
                preferred_element_type=jnp.float32)
    if b is not None:
        y = y + b.astype(jnp.float32)
    return y


def _ln(x, g, b, eps=1e-5):
    mu = jnp.mean(x, axis=-1, keepdims=True)
    var = jnp.mean(jnp.square(x - mu), axis=-1, keepdims=True)
    return (x - mu) * lax.rsqrt(var + eps) * g.astype(jnp.float32) + b.astype(jnp.float32)


def _row(mat, r, n):
    """(1, n) slice of a packed parameter slab (kept 2-D for clean broadcasting)."""
    return mat[r:r + 1, :n]


# ---------------- the single fused kernel ----------------
def _nextchat_kernel(
        # resident inputs
        patch_ref, box_ref, ids_col_ref, ids_row_ref, bidx_col_ref, bidx_row_ref,
        loc_row_ref, out_col_ref, wte_ref, wpe_ref, gv_ref,
        vpw_ref, pw1_ref, pw2_ref, ew1_ref, ew2_ref, dw1_ref, dw2_ref,
        # per-layer streamed inputs
        aw_ref, ow_ref, fcw_ref, fc2w_ref, slab_ref,
        # outputs
        logits_ref, pred_ref, outhid_ref, encpred_ref, decle_ref,
        # scratch
        h_scr, loc_scr):
    l = pl.program_id(0)
    n = B * S
    gv = gv_ref[...]

    # Block-diagonal causal mask, rebuilt each step from iota (cheap VPU filler; avoids a
    # resident (B*S)^2 f32 HBM input).  Within a batch, global order == position order.
    ri = lax.broadcasted_iota(jnp.int32, (n, n), 0)
    ci = lax.broadcasted_iota(jnp.int32, (n, n), 1)
    allowed = (bidx_col_ref[...] == bidx_row_ref[...]) & (ri >= ci)

    # box encoder / decoder MLPs (used at first and last grid steps)
    # TODO(synk): reference LocEncoder/LocDecoder/MMProjector may use exact erf GELU;
    # tanh approximation is used here (matches GPT-2 gelu_new, small systematic diff).
    def enc(x):
        t = jax.nn.gelu(_mm(x, ew1_ref[...], _row(gv, GV_ENC_B1, D)), approximate=True)
        return _mm(t, ew2_ref[...], _row(gv, GV_ENC_B2, D))

    def dec(x):
        t = jax.nn.gelu(_mm(x, dw1_ref[...], _row(gv, GV_DEC_B1, D)), approximate=True)
        return jax.nn.sigmoid(_mm(t, dw2_ref[...], _row(gv, GV_DEC_B2, 4)))

    # ---------------- step 0: prelude + embedding construction ----------------
    @pl.when(l == 0)
    def _():
        # LocEncoder of the input bboxes; f32 copy kept for box_dec at the last step.
        loc_emb = enc(box_ref[...])                                  # (B, D) f32
        loc_scr[...] = loc_emb

        # Swin patch embedding (stride==kernel conv lowered to a matmul) + LN + projector.
        # TODO(synk): pretrained Swin windowed-attention stages are not reproduced.
        f = _mm(patch_ref[...], vpw_ref[...], _row(gv, GV_VIS_PB, VDIM))
        f = _ln(f, _row(gv, GV_VIS_LG, VDIM), _row(gv, GV_VIS_LB, VDIM))
        g = jax.nn.gelu(_mm(f, pw1_ref[...], _row(gv, GV_PROJ_B1, D)), approximate=True)
        proj_vis = _mm(g, pw2_ref[...], _row(gv, GV_PROJ_B2, D))     # (B*NPATCH, D) f32

        # Token-embedding gather: one-hot(ids) @ wte (exact: one-hot selects bf16 rows).
        ids_c = ids_col_ref[...]                                     # (B*S, 1) int32
        tok_oh = jnp.where(
            lax.broadcasted_iota(jnp.int32, (n, VOCAB), 1) == ids_c, 1.0, 0.0)
        emb = jnp.dot(tok_oh.astype(jnp.bfloat16), wte_ref[...],
                      preferred_element_type=jnp.float32)            # (B*S, D)

        # <box> positions <- loc_embeds (the <img> replacement below wins on overlap,
        # matching the reference where the no_grad visual write runs second).
        row_c = lax.broadcasted_iota(jnp.int32, (n, 1), 0)
        box_tgt = lax.broadcasted_iota(jnp.int32, (1, B), 1) * S + loc_row_ref[...]
        box_oh = jnp.where(row_c == box_tgt, 1.0, 0.0)               # (B*S, B)
        is_box = jnp.sum(box_oh, axis=-1, keepdims=True) > 0.5
        box_rep = jnp.dot(box_oh.astype(jnp.bfloat16), loc_emb.astype(jnp.bfloat16),
                          preferred_element_type=jnp.float32)
        emb = jnp.where(is_box, box_rep, emb)

        # <img> positions <- projected visual tokens, assigned in order per batch:
        # running count of img tokens up to each row (inclusive) gives the patch index.
        is_img_c = ids_c == IMG_TOKEN_ID                             # (B*S, 1)
        is_img_r = ids_row_ref[...] == IMG_TOKEN_ID                  # (1, B*S)
        cnt = jnp.sum(jnp.where(allowed & is_img_r, 1.0, 0.0), axis=-1, keepdims=True)
        p_idx = jnp.clip(cnt.astype(jnp.int32) - 1, 0, NPATCH - 1)
        g_row = bidx_col_ref[...] * NPATCH + p_idx                   # (B*S, 1)
        img_oh = jnp.where(
            lax.broadcasted_iota(jnp.int32, (n, B * NPATCH), 1) == g_row, 1.0, 0.0)
        img_rep = jnp.dot(img_oh.astype(jnp.bfloat16), proj_vis.astype(jnp.bfloat16),
                          preferred_element_type=jnp.float32)
        emb = jnp.where(is_img_c, img_rep, emb)

        # reference casts inputs_embeds with .half(); bf16 is the TPU-native half format.
        emb = emb.astype(jnp.bfloat16).astype(jnp.float32)

        h_scr[...] = emb + wpe_ref[...]          # + positions; residual enters VMEM once

    # ---------------- one GPT-2 block per grid step ----------------
    slab = slab_ref[0]                           # (8, 128) packed per-layer vectors
    h = h_scr[...]

    # attention: ln1 -> fused QKV matmul -> per-head softmax -> concat -> one out-proj
    x1 = _ln(h, _row(slab, SL_LN1_G, D), _row(slab, SL_LN1_B, D))
    qkv = _mm(x1, aw_ref[0], _row(slab, SL_ATTN_B, 3 * D))   # (B*S, 3D); Q pre-scaled
    heads = []
    for hh in range(H):                                      # static unroll (tiny H)
        q = qkv[:, hh * DH:(hh + 1) * DH]
        k = qkv[:, D + hh * DH:D + (hh + 1) * DH]
        v = qkv[:, 2 * D + hh * DH:2 * D + (hh + 1) * DH]
        s = lax.dot_general(q.astype(jnp.bfloat16), k.astype(jnp.bfloat16),
                            (((1,), (1,)), ((), ())),
                            preferred_element_type=jnp.float32)
        s = jnp.where(allowed, s, -1e30)
        m = jnp.max(s, axis=-1, keepdims=True)
        p = jnp.exp(s - m)
        p = p * pl.reciprocal(jnp.sum(p, axis=-1, keepdims=True), approx=True)
        heads.append(_mm(p, v))                              # (B*S, DH)
    o = jnp.concatenate(heads, axis=-1)                      # (B*S, D)
    h = h + _mm(o, ow_ref[0], _row(slab, SL_PROJ_B, D))

    # MLP
    x2 = _ln(h, _row(slab, SL_LN2_G, D), _row(slab, SL_LN2_B, D))
    m1 = jax.nn.gelu(_mm(x2, fcw_ref[0], _row(slab, SL_FC_B, MLP)), approximate=True)
    h = h + _mm(m1, fc2w_ref[0], _row(slab, SL_FC2_B, D))

    h_scr[...] = h                               # carry residual to the next layer

    # ---------------- last step: ln_f + LM head + box heads ----------------
    @pl.when(l == pl.num_programs(0) - 1)
    def _():
        hf = _ln(h, _row(gv, GV_LNF_G, D), _row(gv, GV_LNF_B, D))            # ln_f
        logits_ref[...] = lax.dot_general(                                   # tied head
            hf.astype(jnp.bfloat16), wte_ref[...], (((1,), (1,)), ((), ())),
            preferred_element_type=jnp.float32)

        # gather hidden states at output_loc_ids via one-hot matmul
        out_tgt = lax.broadcasted_iota(jnp.int32, (B, 1), 0) * S + out_col_ref[...]
        out_oh = jnp.where(
            lax.broadcasted_iota(jnp.int32, (B, n), 1) == out_tgt, 1.0, 0.0)
        out_hid = jnp.dot(out_oh.astype(jnp.bfloat16), hf.astype(jnp.bfloat16),
                          preferred_element_type=jnp.float32)                # (B, D)
        outhid_ref[...] = out_hid

        preds = dec(out_hid)                     # normalized xyxy
        pred_ref[...] = preds
        encpred_ref[...] = enc(preds)
        decle_ref[...] = dec(loc_scr[...])       # box_dec of the f32 input loc_embeds


# ---------------- pallas_call wrapper ----------------
def _nextchat_call(patches, bboxes, ids_col, ids_row, bidx_col, bidx_row, loc_row,
                   out_col, params):
    blk = params["blocks"]
    resident = (patches, bboxes, ids_col, ids_row, bidx_col, bidx_row, loc_row, out_col,
                params["wte"], params["wpe_rep"], params["gvec"],
                params["vision"]["patch_w"],
                params["proj"]["w1"], params["proj"]["w2"],
                params["box_enc"]["w1"], params["box_enc"]["w2"],
                params["box_dec"]["w1"], params["box_dec"]["w2"])
    streamed = (blk["attn_w"], blk["proj_w"], blk["fc_w"], blk["fc2_w"], blk["slab"])

    in_specs = ([_rep(a.shape) for a in resident] +
                [_per_layer((1,) + a.shape[1:]) for a in streamed])
    out_shape = (jax.ShapeDtypeStruct((B * S, VOCAB), jnp.float32),   # logits
                 jax.ShapeDtypeStruct((B, 4), jnp.float32),           # loc_preds
                 jax.ShapeDtypeStruct((B, D), jnp.float32),           # output_loc_hiddens
                 jax.ShapeDtypeStruct((B, D), jnp.float32),           # encoded_loc_preds
                 jax.ShapeDtypeStruct((B, 4), jnp.float32))           # dec_loc_embeds

    grid_spec = pltpu.PrefetchScalarGridSpec(
        num_scalar_prefetch=0,
        grid=(NLAYER,),
        in_specs=in_specs,
        out_specs=tuple(_rep(s.shape) for s in out_shape),
        scratch_shapes=[pltpu.VMEM((B * S, D), jnp.float32),   # residual stream
                        pltpu.VMEM((B, D), jnp.float32)])      # loc_embeds carry

    return pl.pallas_call(
        _nextchat_kernel,
        out_shape=out_shape,
        grid_spec=grid_spec,
        compiler_params=pltpu.CompilerParams(dimension_semantics=("arbitrary",)),
    )(*resident, *streamed)


# ---------------- NextChat.forward ----------------
def nextchat_forward(params, input_ids, input_image, bboxes, all_loc_ids,
                     output_loc_ids, attention_masks=None):
    # TODO(synk): padding attention_masks not applied (example passes None); causal only.
    # NCHW image -> non-overlapping flattened patches (B*NPATCH, 3*PATCH*PATCH)
    x = input_image.reshape(B, 3, IMG // PATCH, PATCH, IMG // PATCH, PATCH)
    patches = x.transpose(0, 2, 4, 1, 3, 5).reshape(B * NPATCH, 3 * PATCH * PATCH)

    # Tiny int32 layout helpers (gather/scatter themselves happen inside the kernel).
    ids_col = input_ids.reshape(B * S, 1).astype(jnp.int32)
    ids_row = input_ids.reshape(1, B * S).astype(jnp.int32)
    bidx = jnp.arange(B * S, dtype=jnp.int32) // S        # constant-folded under jit
    bidx_col = bidx.reshape(B * S, 1)
    bidx_row = bidx.reshape(1, B * S)
    loc_row = all_loc_ids.reshape(1, B).astype(jnp.int32)
    out_col = output_loc_ids.reshape(B, 1).astype(jnp.int32)

    logits_flat, loc_preds, out_hid, enc_preds, dec_loc = _nextchat_call(
        patches, bboxes, ids_col, ids_row, bidx_col, bidx_row, loc_row, out_col, params)
    logits = logits_flat.reshape(B, S, VOCAB)
    return logits, loc_preds, out_hid, enc_preds, dec_loc


# ---------------- deterministic parameter init ----------------
def init_params(key):
    ks = iter(jax.random.split(key, 64))

    def nrm(shape, scale=0.02):
        return jax.random.normal(next(ks), shape, jnp.float32) * scale

    def pad_row(v, width=SLAB_W):
        v = jnp.asarray(v, jnp.float32).reshape(-1)
        return jnp.zeros((width,), jnp.float32).at[:v.shape[0]].set(v)

    bf16 = jnp.bfloat16
    params = {
        "vision": dict(patch_w=nrm((3 * PATCH * PATCH, VDIM)).astype(bf16)),
        "proj": dict(w1=nrm((VDIM, D)).astype(bf16), w2=nrm((D, D)).astype(bf16)),
        "box_enc": dict(w1=nrm((4, D)).astype(bf16), w2=nrm((D, D)).astype(bf16)),
        "box_dec": dict(w1=nrm((D, D)).astype(bf16), w2=nrm((D, 4)).astype(bf16)),
    }

    # global (non-layer) small vectors packed into one lane-dense slab (16, 128)
    zD, oD = jnp.zeros((D,)), jnp.ones((D,))
    zV, oV = jnp.zeros((VDIM,)), jnp.ones((VDIM,))
    grows = [jnp.zeros((SLAB_W,), jnp.float32) for _ in range(GV_ROWS)]
    grows[GV_LNF_G], grows[GV_LNF_B] = pad_row(oD), pad_row(zD)
    grows[GV_VIS_PB], grows[GV_VIS_LG], grows[GV_VIS_LB] = pad_row(zV), pad_row(oV), pad_row(zV)
    grows[GV_PROJ_B1], grows[GV_PROJ_B2] = pad_row(zD), pad_row(zD)
    grows[GV_ENC_B1], grows[GV_ENC_B2] = pad_row(zD), pad_row(zD)
    grows[GV_DEC_B1], grows[GV_DEC_B2] = pad_row(zD), pad_row(jnp.zeros((4,)))
    params["gvec"] = jnp.stack(grows)                               # (16, 128) f32

    # embeddings: one bf16 wte used for both the gather and the tied LM head;
    # positional table pre-tiled to (B*S, D) so it is added once inside the kernel.
    wte = nrm((VOCAB, D))
    params["wte"] = wte.astype(bf16)
    params["wpe_rep"] = jnp.tile(nrm((S, D)), (B, 1))

    # per-layer weights: fused QKV (D, 3D) with the 1/sqrt(DH) scale folded into the
    # Q columns; small vectors packed into an (NLAYER, 8, 128) slab.
    scale = 1.0 / (DH ** 0.5)
    qscale = jnp.concatenate([jnp.full((D,), scale, jnp.float32),
                              jnp.ones((2 * D,), jnp.float32)])
    attn_w = nrm((NLAYER, D, 3 * D)) * qscale[None, None, :]
    attn_b = jnp.zeros((NLAYER, 3 * D), jnp.float32) * qscale[None, :]
    proj_w = nrm((NLAYER, D, D))
    fc_w = nrm((NLAYER, D, MLP))
    fc2_w = nrm((NLAYER, MLP, D))

    slab = []
    for L in range(NLAYER):
        rows = [pad_row(oD), pad_row(zD),                 # ln1_g, ln1_b
                pad_row(oD), pad_row(zD),                 # ln2_g, ln2_b
                pad_row(attn_b[L]), pad_row(zD),          # attn_b (Q pre-scaled), proj_b
                pad_row(jnp.zeros((MLP,))), pad_row(zD)]  # fc_b, fc2_b
        slab.append(jnp.stack(rows))
    params["blocks"] = dict(attn_w=attn_w.astype(bf16), proj_w=proj_w.astype(bf16),
                            fc_w=fc_w.astype(bf16), fc2_w=fc2_w.astype(bf16),
                            slab=jnp.stack(slab))                   # (NLAYER, 8, 128) f32
    return params


if __name__ == "__main__":
    key = jax.random.PRNGKey(0)
    kp, ki, kimg = jax.random.split(key, 3)
    params = init_params(kp)

    # positions 1..4 hold <img> tokens (num_patches of them), one input <box> token per
    # batch, one "output box" position per batch.
    input_ids = jax.random.randint(ki, (B, S), 0, 50)
    input_ids = input_ids.at[:, 1:1 + NPATCH].set(IMG_TOKEN_ID)
    all_loc_ids = jnp.array([6, 6], dtype=jnp.int32)         # input-box positions
    input_ids = input_ids.at[jnp.arange(B), all_loc_ids].set(BOX_TOKEN_ID)
    output_loc_ids = jnp.array([9, 10], dtype=jnp.int32)     # output-box positions

    input_image = jax.random.normal(kimg, (B, 3, IMG, IMG), jnp.float32)   # NCHW
    bboxes = jnp.array([[0.10, 0.20, 0.50, 0.60],
                        [0.30, 0.30, 0.80, 0.90]], jnp.float32)            # xyxy normalized

    fwd = jax.jit(nextchat_forward)
    outs = fwd(params, input_ids, input_image, bboxes, all_loc_ids, output_loc_ids)
    outs = jax.block_until_ready(outs)

    logits, loc_preds, out_hid, enc_loc_preds, dec_loc_embeds = outs
    assert logits.shape == (B, S, VOCAB)
    assert loc_preds.shape == (B, 4)
    assert out_hid.shape == (B, D)
    assert enc_loc_preds.shape == (B, D)
    assert dec_loc_embeds.shape == (B, 4)
    print("KERNEL_OK")
</pallas_src>

<mosaic_0001>
module attributes {stable_mosaic.version = 11 : i64} {
  func.func @_nextchat_kernel(%arg0: i32, %arg1: memref<8x192xf32, #tpu.memory_space<vmem>>, %arg2: memref<2x4xf32, #tpu.memory_space<vmem>>, %arg3: memref<24x1xi32, #tpu.memory_space<vmem>>, %arg4: memref<1x24xi32, #tpu.memory_space<vmem>>, %arg5: memref<24x1xi32, #tpu.memory_space<vmem>>, %arg6: memref<1x24xi32, #tpu.memory_space<vmem>>, %arg7: memref<1x2xi32, #tpu.memory_space<vmem>>, %arg8: memref<2x1xi32, #tpu.memory_space<vmem>>, %arg9: memref<64x32xbf16, #tpu.memory_space<vmem>>, %arg10: memref<24x32xf32, #tpu.memory_space<vmem>>, %arg11: memref<16x128xf32, #tpu.memory_space<vmem>>, %arg12: memref<192x16xbf16, #tpu.memory_space<vmem>>, %arg13: memref<16x32xbf16, #tpu.memory_space<vmem>>, %arg14: memref<32x32xbf16, #tpu.memory_space<vmem>>, %arg15: memref<4x32xbf16, #tpu.memory_space<vmem>>, %arg16: memref<32x32xbf16, #tpu.memory_space<vmem>>, %arg17: memref<32x32xbf16, #tpu.memory_space<vmem>>, %arg18: memref<32x4xbf16, #tpu.memory_space<vmem>>, %arg19: memref<1x32x96xbf16, #tpu.memory_space<vmem>>, %arg20: memref<1x32x32xbf16, #tpu.memory_space<vmem>>, %arg21: memref<1x32x128xbf16, #tpu.memory_space<vmem>>, %arg22: memref<1x128x32xbf16, #tpu.memory_space<vmem>>, %arg23: memref<1x8x128xf32, #tpu.memory_space<vmem>>, %arg24: memref<24x64xf32, #tpu.memory_space<vmem>>, %arg25: memref<2x4xf32, #tpu.memory_space<vmem>>, %arg26: memref<2x32xf32, #tpu.memory_space<vmem>>, %arg27: memref<2x32xf32, #tpu.memory_space<vmem>>, %arg28: memref<2x4xf32, #tpu.memory_space<vmem>>, %arg29: memref<24x32xf32, #tpu.memory_space<vmem>>, %arg30: memref<2x32xf32, #tpu.memory_space<vmem>>) attributes {dimension_semantics = [#tpu.dimension_semantics<arbitrary>], iteration_bounds = array<i64: 2>, scalar_prefetch = 0 : i64, scratch_operands = 2 : i64, tpu.core_type = #tpu.core_type<tc>, window_params = [{pipeline_mode = #tpu.pipeline_mode<synchronous>, transform_indices = @transform_0, window_bounds = array<i64: 8, 192>}, {pipeline_mode = #tpu.pipeline_mode<synchronous>, transform_indices = @transform_1, window_bounds = array<i64: 2, 4>}, {pipeline_mode = #tpu.pipeline_mode<synchronous>, transform_indices = @transform_2, window_bounds = array<i64: 24, 1>}, {pipeline_mode = #tpu.pipeline_mode<synchronous>, transform_indices = @transform_3, window_bounds = array<i64: 1, 24>}, {pipeline_mode = #tpu.pipeline_mode<synchronous>, transform_indices = @transform_4, window_bounds = array<i64: 24, 1>}, {pipeline_mode = #tpu.pipeline_mode<synchronous>, transform_indices = @transform_5, window_bounds = array<i64: 1, 24>}, {pipeline_mode = #tpu.pipeline_mode<synchronous>, transform_indices = @transform_6, window_bounds = array<i64: 1, 2>}, {pipeline_mode = #tpu.pipeline_mode<synchronous>, transform_indices = @transform_7, window_bounds = array<i64: 2, 1>}, {pipeline_mode = #tpu.pipeline_mode<synchronous>, transform_indices = @transform_8, window_bounds = array<i64: 64, 32>}, {pipeline_mode = #tpu.pipeline_mode<synchronous>, transform_indices = @transform_9, window_bounds = array<i64: 24, 32>}, {pipeline_mode = #tpu.pipeline_mode<synchronous>, transform_indices = @transform_10, window_bounds = array<i64: 16, 128>}, {pipeline_mode = #tpu.pipeline_mode<synchronous>, transform_indices = @transform_11, window_bounds = array<i64: 192, 16>}, {pipeline_mode = #tpu.pipeline_mode<synchronous>, transform_indices = @transform_12, window_bounds = array<i64: 16, 32>}, {pipeline_mode = #tpu.pipeline_mode<synchronous>, transform_indices = @transform_13, window_bounds = array<i64: 32, 32>}, {pipeline_mode = #tpu.pipeline_mode<synchronous>, transform_indices = @transform_14, window_bounds = array<i64: 4, 32>}, {pipeline_mode = #tpu.pipeline_mode<synchronous>, transform_indices = @transform_15, window_bounds = array<i64: 32, 32>}, {pipeline_mode = #tpu.pipeline_mode<synchronous>, transform_indices = @transform_16, window_bounds = array<i64: 32, 32>}, {pipeline_mode = #tpu.pipeline_mode<synchronous>, transform_indices = @transform_17, window_bounds = array<i64: 32, 4>}, {transform_indices = @transform_18, window_bounds = array<i64: 1, 32, 96>}, {transform_indices = @transform_19, window_bounds = array<i64: 1, 32, 32>}, {transform_indices = @transform_20, window_bounds = array<i64: 1, 32, 128>}, {transform_indices = @transform_21, window_bounds = array<i64: 1, 128, 32>}, {transform_indices = @transform_22, window_bounds = array<i64: 1, 8, 128>}, {pipeline_mode = #tpu.pipeline_mode<synchronous>, transform_indices = @transform_23, window_bounds = array<i64: 24, 64>}, {pipeline_mode = #tpu.pipeline_mode<synchronous>, transform_indices = @transform_24, window_bounds = array<i64: 2, 4>}, {pipeline_mode = #tpu.pipeline_mode<synchronous>, transform_indices = @transform_25, window_bounds = array<i64: 2, 32>}, {pipeline_mode = #tpu.pipeline_mode<synchronous>, transform_indices = @transform_26, window_bounds = array<i64: 2, 32>}, {pipeline_mode = #tpu.pipeline_mode<synchronous>, transform_indices = @transform_27, window_bounds = array<i64: 2, 4>}]} {
    %c0 = arith.constant 0 : index
    %c0_0 = arith.constant 0 : index
    %0 = vector.load %arg11[%c0, %c0_0] : memref<16x128xf32, #tpu.memory_space<vmem>>, vector<16x128xf32>
    %1 = tpu.iota {dimensions = array<i32: 0>} : vector<24x24xi32>
    %2 = tpu.iota {dimensions = array<i32: 1>} : vector<24x24xi32>
    %c0_1 = arith.constant 0 : index
    %c0_2 = arith.constant 0 : index
    %3 = vector.load %arg5[%c0_1, %c0_2] : memref<24x1xi32, #tpu.memory_space<vmem>>, vector<24x1xi32>
    %c0_3 = arith.constant 0 : index
    %c0_4 = arith.constant 0 : index
    %4 = vector.load %arg6[%c0_3, %c0_4] : memref<1x24xi32, #tpu.memory_space<vmem>>, vector<1x24xi32>
    %5 = vector.broadcast %3 : vector<24x1xi32> to vector<24x24xi32>
    %6 = vector.broadcast %4 : vector<1x24xi32> to vector<24x24xi32>
    %7 = arith.cmpi eq, %5, %6 : vector<24x24xi32>
    %8 = arith.cmpi sge, %1, %2 : vector<24x24xi32>
    %9 = arith.andi %7, %8 : vector<24x24xi1>
    %c0_i32 = arith.constant 0 : i32
    %10 = arith.cmpi eq, %arg0, %c0_i32 : i32
    %11 = arith.extui %10 : i1 to i32
    %c0_i32_5 = arith.constant 0 : i32
    %12 = arith.cmpi ne, %11, %c0_i32_5 : i32
    scf.if %12 {
      %c0_53 = arith.constant 0 : index
      %c0_54 = arith.constant 0 : index
      %154 = vector.load %arg2[%c0_53, %c0_54] : memref<2x4xf32, #tpu.memory_space<vmem>>, vector<2x4xf32>
      %c0_55 = arith.constant 0 : index
      %c0_56 = arith.constant 0 : index
      %155 = vector.load %arg15[%c0_55, %c0_56] : memref<4x32xbf16, #tpu.memory_space<vmem>>, vector<4x32xbf16>
      %156 = vector.extract_strided_slice %0 {offsets = [7, 0], sizes = [1, 32], strides = [1, 1]} : vector<16x128xf32> to vector<1x32xf32>
      %157 = arith.truncf %154 : vector<2x4xf32> to vector<2x4xbf16>
      %cst_57 = arith.constant dense<0.000000e+00> : vector<2x32xf32>
      %158 = tpu.matmul %157, %155, %cst_57 {dimension_numbers = #tpu.dot_dimension_numbers<[1], [0], [0], [1], [0, 0, 1, 1], [], []>} : vector<2x4xbf16>, vector<4x32xbf16>, vector<2x32xf32> -> vector<2x32xf32>
      %159 = vector.broadcast %156 : vector<1x32xf32> to vector<2x32xf32>
      %160 = arith.addf %158, %159 : vector<2x32xf32>
      %161 = arith.mulf %160, %160 : vector<2x32xf32>
      %162 = arith.mulf %160, %161 : vector<2x32xf32>
      %cst_58 = arith.constant 4.471500e-02 : f32
      %163 = vector.broadcast %cst_58 : f32 to vector<2x32xf32>
      %164 = arith.mulf %163, %162 : vector<2x32xf32>
      %165 = arith.addf %160, %164 : vector<2x32xf32>
      %cst_59 = arith.constant 0.797884583 : f32
      %166 = vector.broadcast %cst_59 : f32 to vector<2x32xf32>
      %167 = arith.mulf %166, %165 : vector<2x32xf32>
      %168 = math.tanh %167 : vector<2x32xf32>
      %cst_60 = arith.constant 1.000000e+00 : f32
      %169 = vector.broadcast %cst_60 : f32 to vector<2x32xf32>
      %170 = arith.addf %169, %168 : vector<2x32xf32>
      %cst_61 = arith.constant 5.000000e-01 : f32
      %171 = vector.broadcast %cst_61 : f32 to vector<2x32xf32>
      %172 = arith.mulf %171, %170 : vector<2x32xf32>
      %173 = arith.mulf %160, %172 : vector<2x32xf32>
      %c0_62 = arith.constant 0 : index
      %c0_63 = arith.constant 0 : index
      %174 = vector.load %arg16[%c0_62, %c0_63] : memref<32x32xbf16, #tpu.memory_space<vmem>>, vector<32x32xbf16>
      %175 = vector.extract_strided_slice %0 {offsets = [8, 0], sizes = [1, 32], strides = [1, 1]} : vector<16x128xf32> to vector<1x32xf32>
      %176 = arith.truncf %173 : vector<2x32xf32> to vector<2x32xbf16>
      %cst_64 = arith.constant dense<0.000000e+00> : vector<2x32xf32>
      %177 = tpu.matmul %176, %174, %cst_64 {dimension_numbers = #tpu.dot_dimension_numbers<[1], [0], [0], [1], [0, 0, 1, 1], [], []>} : vector<2x32xbf16>, vector<32x32xbf16>, vector<2x32xf32> -> vector<2x32xf32>
      %178 = vector.broadcast %175 : vector<1x32xf32> to vector<2x32xf32>
      %179 = arith.addf %177, %178 : vector<2x32xf32>
      %c0_65 = arith.constant 0 : index
      %c0_66 = arith.constant 0 : index
      %180 = vector.load %arg30[%c0_65, %c0_66] : memref<2x32xf32, #tpu.memory_space<vmem>>, vector<2x32xf32>
      tpu.vector_store %arg30[%c0_65, %c0_66], %179 {strides = array<i32>} : memref<2x32xf32, #tpu.memory_space<vmem>>, vector<2x32xf32>,
      %c0_67 = arith.constant 0 : index
      %c0_68 = arith.constant 0 : index
      %181 = vector.load %arg1[%c0_67, %c0_68] : memref<8x192xf32, #tpu.memory_space<vmem>>, vector<8x192xf32>
      %c0_69 = arith.constant 0 : index
      %c0_70 = arith.constant 0 : index
      %182 = vector.load %arg12[%c0_69, %c0_70] : memref<192x16xbf16, #tpu.memory_space<vmem>>, vector<192x16xbf16>
      %183 = vector.extract_strided_slice %0 {offsets = [2, 0], sizes = [1, 16], strides = [1, 1]} : vector<16x128xf32> to vector<1x16xf32>
      %184 = arith.truncf %181 : vector<8x192xf32> to vector<8x192xbf16>
      %cst_71 = arith.constant dense<0.000000e+00> : vector<8x16xf32>
      %185 = tpu.matmul %184, %182, %cst_71 {dimension_numbers = #tpu.dot_dimension_numbers<[1], [0], [0], [1], [0, 0, 1, 1], [], []>} : vector<8x192xbf16>, vector<192x16xbf16>, vector<8x16xf32> -> vector<8x16xf32>
      %186 = vector.broadcast %183 : vector<1x16xf32> to vector<8x16xf32>
      %187 = arith.addf %185, %186 : vector<8x16xf32>
      %188 = vector.extract_strided_slice %0 {offsets = [3, 0], sizes = [1, 16], strides = [1, 1]} : vector<16x128xf32> to vector<1x16xf32>
      %189 = vector.extract_strided_slice %0 {offsets = [4, 0], sizes = [1, 16], strides = [1, 1]} : vector<16x128xf32> to vector<1x16xf32>
      %cst_72 = arith.constant dense<0.000000e+00> : vector<8xf32>
      %190 = vector.multi_reduction <add>, %187, %cst_72 [1] : vector<8x16xf32> to vector<8xf32>
      %191 = vector.shape_cast %190 : vector<8xf32> to vector<8x1xf32>
      %cst_73 = arith.constant 1.600000e+01 : f32
      %192 = vector.broadcast %cst_73 : f32 to vector<8x1xf32>
      %193 = arith.divf %191, %192 : vector<8x1xf32>
      %194 = vector.broadcast %193 : vector<8x1xf32> to vector<8x16xf32>
      %195 = arith.subf %187, %194 : vector<8x16xf32>
      %196 = arith.mulf %195, %195 : vector<8x16xf32>
      %cst_74 = arith.constant dense<0.000000e+00> : vector<8xf32>
      %197 = vector.multi_reduction <add>, %196, %cst_74 [1] : vector<8x16xf32> to vector<8xf32>
      %198 = vector.shape_cast %197 : vector<8xf32> to vector<8x1xf32>
      %cst_75 = arith.constant 1.600000e+01 : f32
      %199 = vector.broadcast %cst_75 : f32 to vector<8x1xf32>
      %200 = arith.divf %198, %199 : vector<8x1xf32>
      %201 = vector.broadcast %193 : vector<8x1xf32> to vector<8x16xf32>
      %202 = arith.subf %187, %201 : vector<8x16xf32>
      %cst_76 = arith.constant 9.99999974E-6 : f32
      %203 = vector.broadcast %cst_76 : f32 to vector<8x1xf32>
      %204 = arith.addf %200, %203 : vector<8x1xf32>
      %205 = math.rsqrt %204 : vector<8x1xf32>
      %206 = vector.broadcast %205 : vector<8x1xf32> to vector<8x16xf32>
      %207 = arith.mulf %202, %206 : vector<8x16xf32>
      %208 = vector.broadcast %188 : vector<1x16xf32> to vector<8x16xf32>
      %209 = arith.mulf %207, %208 : vector<8x16xf32>
      %210 = vector.broadcast %189 : vector<1x16xf32> to vector<8x16xf32>
      %211 = arith.addf %209, %210 : vector<8x16xf32>
      %c0_77 = arith.constant 0 : index
      %c0_78 = arith.constant 0 : index
      %212 = vector.load %arg13[%c0_77, %c0_78] : memref<16x32xbf16, #tpu.memory_space<vmem>>, vector<16x32xbf16>
      %213 = vector.extract_strided_slice %0 {offsets = [5, 0], sizes = [1, 32], strides = [1, 1]} : vector<16x128xf32> to vector<1x32xf32>
      %214 = arith.truncf %211 : vector<8x16xf32> to vector<8x16xbf16>
      %cst_79 = arith.constant dense<0.000000e+00> : vector<8x32xf32>
      %215 = tpu.matmul %214, %212, %cst_79 {dimension_numbers = #tpu.dot_dimension_numbers<[1], [0], [0], [1], [0, 0, 1, 1], [], []>} : vector<8x16xbf16>, vector<16x32xbf16>, vector<8x32xf32> -> vector<8x32xf32>
      %216 = vector.broadcast %213 : vector<1x32xf32> to vector<8x32xf32>
      %217 = arith.addf %215, %216 : vector<8x32xf32>
      %218 = arith.mulf %217, %217 : vector<8x32xf32>
      %219 = arith.mulf %217, %218 : vector<8x32xf32>
      %cst_80 = arith.constant 4.471500e-02 : f32
      %220 = vector.broadcast %cst_80 : f32 to vector<8x32xf32>
      %221 = arith.mulf %220, %219 : vector<8x32xf32>
      %222 = arith.addf %217, %221 : vector<8x32xf32>
      %cst_81 = arith.constant 0.797884583 : f32
      %223 = vector.broadcast %cst_81 : f32 to vector<8x32xf32>
      %224 = arith.mulf %223, %222 : vector<8x32xf32>
      %225 = math.tanh %224 : vector<8x32xf32>
      %cst_82 = arith.constant 1.000000e+00 : f32
      %226 = vector.broadcast %cst_82 : f32 to vector<8x32xf32>
      %227 = arith.addf %226, %225 : vector<8x32xf32>
      %cst_83 = arith.constant 5.000000e-01 : f32
      %228 = vector.broadcast %cst_83 : f32 to vector<8x32xf32>
      %229 = arith.mulf %228, %227 : vector<8x32xf32>
      %230 = arith.mulf %217, %229 : vector<8x32xf32>
      %c0_84 = arith.constant 0 : index
      %c0_85 = arith.constant 0 : index
      %231 = vector.load %arg14[%c0_84, %c0_85] : memref<32x32xbf16, #tpu.memory_space<vmem>>, vector<32x32xbf16>
      %232 = vector.extract_strided_slice %0 {offsets = [6, 0], sizes = [1, 32], strides = [1, 1]} : vector<16x128xf32> to vector<1x32xf32>
      %233 = arith.truncf %230 : vector<8x32xf32> to vector<8x32xbf16>
      %cst_86 = arith.constant dense<0.000000e+00> : vector<8x32xf32>
      %234 = tpu.matmul %233, %231, %cst_86 {dimension_numbers = #tpu.dot_dimension_numbers<[1], [0], [0], [1], [0, 0, 1, 1], [], []>} : vector<8x32xbf16>, vector<32x32xbf16>, vector<8x32xf32> -> vector<8x32xf32>
      %235 = vector.broadcast %232 : vector<1x32xf32> to vector<8x32xf32>
      %236 = arith.addf %234, %235 : vector<8x32xf32>
      %c0_87 = arith.constant 0 : index
      %c0_88 = arith.constant 0 : index
      %237 = vector.load %arg3[%c0_87, %c0_88] : memref<24x1xi32, #tpu.memory_space<vmem>>, vector<24x1xi32>
      %238 = tpu.iota {dimensions = array<i32: 1>} : vector<24x64xi32>
      %239 = vector.broadcast %237 : vector<24x1xi32> to vector<24x64xi32>
      %240 = arith.cmpi eq, %238, %239 : vector<24x64xi32>
      %cst_89 = arith.constant 1.000000e+00 : f32
      %cst_90 = arith.constant 0.000000e+00 : f32
      %241 = vector.broadcast %cst_89 : f32 to vector<24x64xf32>
      %242 = vector.broadcast %cst_90 : f32 to vector<24x64xf32>
      %243 = arith.select %240, %241, %242 : vector<24x64xi1>, vector<24x64xf32>
      %244 = arith.truncf %243 : vector<24x64xf32> to vector<24x64xbf16>
      %c0_91 = arith.constant 0 : index
      %c0_92 = arith.constant 0 : index
      %245 = vector.load %arg9[%c0_91, %c0_92] : memref<64x32xbf16, #tpu.memory_space<vmem>>, vector<64x32xbf16>
      %cst_93 = arith.constant dense<0.000000e+00> : vector<24x32xf32>
      %246 = tpu.matmul %244, %245, %cst_93 {dimension_numbers = #tpu.dot_dimension_numbers<[1], [0], [0], [1], [0, 0, 1, 1], [], []>} : vector<24x64xbf16>, vector<64x32xbf16>, vector<24x32xf32> -> vector<24x32xf32>
      %247 = tpu.iota {dimensions = array<i32: 0>} : vector<24x1xi32>
      %248 = tpu.iota {dimensions = array<i32: 1>} : vector<1x2xi32>
      %c12_i32 = arith.constant 12 : i32
      %249 = vector.broadcast %c12_i32 : i32 to vector<1x2xi32>
      %250 = arith.muli %248, %249 : vector<1x2xi32>
      %c0_94 = arith.constant 0 : index
      %c0_95 = arith.constant 0 : index
      %251 = vector.load %arg7[%c0_94, %c0_95] : memref<1x2xi32, #tpu.memory_space<vmem>>, vector<1x2xi32>
      %252 = arith.addi %250, %251 : vector<1x2xi32>
      %253 = vector.broadcast %247 : vector<24x1xi32> to vector<24x2xi32>
      %254 = vector.broadcast %252 : vector<1x2xi32> to vector<24x2xi32>
      %255 = arith.cmpi eq, %253, %254 : vector<24x2xi32>
      %cst_96 = arith.constant 1.000000e+00 : f32
      %cst_97 = arith.constant 0.000000e+00 : f32
      %256 = vector.broadcast %cst_96 : f32 to vector<24x2xf32>
      %257 = vector.broadcast %cst_97 : f32 to vector<24x2xf32>
      %258 = arith.select %255, %256, %257 : vector<24x2xi1>, vector<24x2xf32>
      %cst_98 = arith.constant dense<0.000000e+00> : vector<24xf32>
      %259 = vector.multi_reduction <add>, %258, %cst_98 [1] : vector<24x2xf32> to vector<24xf32>
      %260 = vector.shape_cast %259 : vector<24xf32> to vector<24x1xf32>
      %cst_99 = arith.constant 5.000000e-01 : f32
      %261 = vector.broadcast %cst_99 : f32 to vector<24x1xf32>
      %262 = arith.cmpf ogt, %260, %261 : vector<24x1xf32>
      %263 = arith.truncf %258 : vector<24x2xf32> to vector<24x2xbf16>
      %264 = arith.truncf %179 : vector<2x32xf32> to vector<2x32xbf16>
      %cst_100 = arith.constant dense<0.000000e+00> : vector<24x32xf32>
      %265 = tpu.matmul %263, %264, %cst_100 {dimension_numbers = #tpu.dot_dimension_numbers<[1], [0], [0], [1], [0, 0, 1, 1], [], []>} : vector<24x2xbf16>, vector<2x32xbf16>, vector<24x32xf32> -> vector<24x32xf32>
      %266 = vector.shape_cast %262 : vector<24x1xi1> to vector<24x1xi1>
      %267 = vector.broadcast %266 : vector<24x1xi1> to vector<24x32xi1>
      %268 = arith.select %267, %265, %246 : vector<24x32xi1>, vector<24x32xf32>
      %c60_i32 = arith.constant 60 : i32
      %269 = vector.broadcast %c60_i32 : i32 to vector<24x1xi32>
      %270 = arith.cmpi eq, %237, %269 : vector<24x1xi32>
      %c0_101 = arith.constant 0 : index
      %c0_102 = arith.constant 0 : index
      %271 = vector.load %arg4[%c0_101, %c0_102] : memref<1x24xi32, #tpu.memory_space<vmem>>, vector<1x24xi32>
      %c60_i32_103 = arith.constant 60 : i32
      %272 = vector.broadcast %c60_i32_103 : i32 to vector<1x24xi32>
      %273 = arith.cmpi eq, %271, %272 : vector<1x24xi32>
      %274 = vector.broadcast %273 : vector<1x24xi1> to vector<24x24xi1>
      %275 = arith.andi %9, %274 : vector<24x24xi1>
      %cst_104 = arith.constant 1.000000e+00 : f32
      %cst_105 = arith.constant 0.000000e+00 : f32
      %276 = vector.broadcast %cst_104 : f32 to vector<24x24xf32>
      %277 = vector.broadcast %cst_105 : f32 to vector<24x24xf32>
      %278 = arith.select %275, %276, %277 : vector<24x24xi1>, vector<24x24xf32>
      %cst_106 = arith.constant dense<0.000000e+00> : vector<24xf32>
      %279 = vector.multi_reduction <add>, %278, %cst_106 [1] : vector<24x24xf32> to vector<24xf32>
      %280 = vector.shape_cast %279 : vector<24xf32> to vector<24x1xf32>
      %281 = arith.fptosi %280 : vector<24x1xf32> to vector<24x1xi32>
      %c1_i32_107 = arith.constant 1 : i32
      %282 = vector.broadcast %c1_i32_107 : i32 to vector<24x1xi32>
      %283 = arith.subi %281, %282 : vector<24x1xi32>
      %c0_i32_108 = arith.constant 0 : i32
      %c3_i32 = arith.constant 3 : i32
      %284 = vector.broadcast %c0_i32_108 : i32 to vector<24x1xi32>
      %285 = arith.maxsi %284, %283 : vector<24x1xi32>
      %286 = vector.broadcast %c3_i32 : i32 to vector<24x1xi32>
      %287 = arith.minsi %286, %285 : vector<24x1xi32>
      %c0_109 = arith.constant 0 : index
      %c0_110 = arith.constant 0 : index
      %288 = vector.load %arg5[%c0_109, %c0_110] : memref<24x1xi32, #tpu.memory_space<vmem>>, vector<24x1xi32>
      %c4_i32 = arith.constant 4 : i32
      %289 = vector.broadcast %c4_i32 : i32 to vector<24x1xi32>
      %290 = arith.muli %288, %289 : vector<24x1xi32>
      %291 = arith.addi %290, %287 : vector<24x1xi32>
      %292 = tpu.iota {dimensions = array<i32: 1>} : vector<24x8xi32>
      %293 = vector.broadcast %291 : vector<24x1xi32> to vector<24x8xi32>
      %294 = arith.cmpi eq, %292, %293 : vector<24x8xi32>
      %cst_111 = arith.constant 1.000000e+00 : f32
      %cst_112 = arith.constant 0.000000e+00 : f32
      %295 = vector.broadcast %cst_111 : f32 to vector<24x8xf32>
      %296 = vector.broadcast %cst_112 : f32 to vector<24x8xf32>
      %297 = arith.select %294, %295, %296 : vector<24x8xi1>, vector<24x8xf32>
      %298 = arith.truncf %297 : vector<24x8xf32> to vector<24x8xbf16>
      %299 = arith.truncf %236 : vector<8x32xf32> to vector<8x32xbf16>
      %cst_113 = arith.constant dense<0.000000e+00> : vector<24x32xf32>
      %300 = tpu.matmul %298, %299, %cst_113 {dimension_numbers = #tpu.dot_dimension_numbers<[1], [0], [0], [1], [0, 0, 1, 1], [], []>} : vector<24x8xbf16>, vector<8x32xbf16>, vector<24x32xf32> -> vector<24x32xf32>
      %301 = vector.shape_cast %270 : vector<24x1xi1> to vector<24x1xi1>
      %302 = vector.broadcast %301 : vector<24x1xi1> to vector<24x32xi1>
      %303 = arith.select %302, %300, %268 : vector<24x32xi1>, vector<24x32xf32>
      %304 = arith.truncf %303 : vector<24x32xf32> to vector<24x32xbf16>
      %305 = arith.extf %304 : vector<24x32xbf16> to vector<24x32xf32>
      %c0_114 = arith.constant 0 : index
      %c0_115 = arith.constant 0 : index
      %306 = vector.load %arg10[%c0_114, %c0_115] : memref<24x32xf32, #tpu.memory_space<vmem>>, vector<24x32xf32>
      %307 = arith.addf %305, %306 : vector<24x32xf32>
      %c0_116 = arith.constant 0 : index
      %c0_117 = arith.constant 0 : index
      %308 = vector.load %arg29[%c0_116, %c0_117] : memref<24x32xf32, #tpu.memory_space<vmem>>, vector<24x32xf32>
      tpu.vector_store %arg29[%c0_116, %c0_117], %307 {strides = array<i32>} : memref<24x32xf32, #tpu.memory_space<vmem>>, vector<24x32xf32>,
    } else {
    }
    %c0_6 = arith.constant 0 : index
    %c0_7 = arith.constant 0 : index
    %c0_8 = arith.constant 0 : index
    %13 = vector.load %arg23[%c0_6, %c0_7, %c0_8] : memref<1x8x128xf32, #tpu.memory_space<vmem>>, vector<1x8x128xf32>
    %14 = vector.shape_cast %13 : vector<1x8x128xf32> to vector<8x128xf32>
    %c0_9 = arith.constant 0 : index
    %c0_10 = arith.constant 0 : index
    %15 = vector.load %arg29[%c0_9, %c0_10] : memref<24x32xf32, #tpu.memory_space<vmem>>, vector<24x32xf32>
    %16 = vector.extract_strided_slice %14 {offsets = [0, 0], sizes = [1, 32], strides = [1, 1]} : vector<8x128xf32> to vector<1x32xf32>
    %17 = vector.extract_strided_slice %14 {offsets = [1, 0], sizes = [1, 32], strides = [1, 1]} : vector<8x128xf32> to vector<1x32xf32>
    %cst = arith.constant dense<0.000000e+00> : vector<24xf32>
    %18 = vector.multi_reduction <add>, %15, %cst [1] : vector<24x32xf32> to vector<24xf32>
    %19 = vector.shape_cast %18 : vector<24xf32> to vector<24x1xf32>
    %cst_11 = arith.constant 3.200000e+01 : f32
    %20 = vector.broadcast %cst_11 : f32 to vector<24x1xf32>
    %21 = arith.divf %19, %20 : vector<24x1xf32>
    %22 = vector.broadcast %21 : vector<24x1xf32> to vector<24x32xf32>
    %23 = arith.subf %15, %22 : vector<24x32xf32>
    %24 = arith.mulf %23, %23 : vector<24x32xf32>
    %cst_12 = arith.constant dense<0.000000e+00> : vector<24xf32>
    %25 = vector.multi_reduction <add>, %24, %cst_12 [1] : vector<24x32xf32> to vector<24xf32>
    %26 = vector.shape_cast %25 : vector<24xf32> to vector<24x1xf32>
    %cst_13 = arith.constant 3.200000e+01 : f32
    %27 = vector.broadcast %cst_13 : f32 to vector<24x1xf32>
    %28 = arith.divf %26, %27 : vector<24x1xf32>
    %29 = vector.broadcast %21 : vector<24x1xf32> to vector<24x32xf32>
    %30 = arith.subf %15, %29 : vector<24x32xf32>
    %cst_14 = arith.constant 9.99999974E-6 : f32
    %31 = vector.broadcast %cst_14 : f32 to vector<24x1xf32>
    %32 = arith.addf %28, %31 : vector<24x1xf32>
    %33 = math.rsqrt %32 : vector<24x1xf32>
    %34 = vector.broadcast %33 : vector<24x1xf32> to vector<24x32xf32>
    %35 = arith.mulf %30, %34 : vector<24x32xf32>
    %36 = vector.broadcast %16 : vector<1x32xf32> to vector<24x32xf32>
    %37 = arith.mulf %35, %36 : vector<24x32xf32>
    %38 = vector.broadcast %17 : vector<1x32xf32> to vector<24x32xf32>
    %39 = arith.addf %37, %38 : vector<24x32xf32>
    %c0_15 = arith.constant 0 : index
    %c0_16 = arith.constant 0 : index
    %c0_17 = arith.constant 0 : index
    %40 = vector.load %arg19[%c0_15, %c0_16, %c0_17] : memref<1x32x96xbf16, #tpu.memory_space<vmem>>, vector<1x32x96xbf16>
    %41 = vector.shape_cast %40 : vector<1x32x96xbf16> to vector<32x96xbf16>
    %42 = vector.extract_strided_slice %14 {offsets = [4, 0], sizes = [1, 96], strides = [1, 1]} : vector<8x128xf32> to vector<1x96xf32>
    %43 = arith.truncf %39 : vector<24x32xf32> to vector<24x32xbf16>
    %cst_18 = arith.constant dense<0.000000e+00> : vector<24x96xf32>
    %44 = tpu.matmul %43, %41, %cst_18 {dimension_numbers = #tpu.dot_dimension_numbers<[1], [0], [0], [1], [0, 0, 1, 1], [], []>} : vector<24x32xbf16>, vector<32x96xbf16>, vector<24x96xf32> -> vector<24x96xf32>
    %45 = vector.broadcast %42 : vector<1x96xf32> to vector<24x96xf32>
    %46 = arith.addf %44, %45 : vector<24x96xf32>
    %47 = vector.extract_strided_slice %46 {offsets = [0, 0], sizes = [24, 16], strides = [1, 1]} : vector<24x96xf32> to vector<24x16xf32>
    %48 = vector.extract_strided_slice %46 {offsets = [0, 32], sizes = [24, 16], strides = [1, 1]} : vector<24x96xf32> to vector<24x16xf32>
    %49 = vector.extract_strided_slice %46 {offsets = [0, 64], sizes = [24, 16], strides = [1, 1]} : vector<24x96xf32> to vector<24x16xf32>
    %50 = arith.truncf %47 : vector<24x16xf32> to vector<24x16xbf16>
    %51 = arith.truncf %48 : vector<24x16xf32> to vector<24x16xbf16>
    %cst_19 = arith.constant dense<0.000000e+00> : vector<24x24xf32>
    %52 = tpu.matmul %50, %51, %cst_19 {dimension_numbers = #tpu.dot_dimension_numbers<[1], [1], [0], [0], [0, 0, 1, 0], [], []>} : vector<24x16xbf16>, vector<24x16xbf16>, vector<24x24xf32> -> vector<24x24xf32>
    %cst_20 = arith.constant -1.000000e+30 : f32
    %53 = vector.broadcast %cst_20 : f32 to vector<24x24xf32>
    %54 = arith.select %9, %52, %53 : vector<24x24xi1>, vector<24x24xf32>
    %cst_21 = arith.constant dense<0xFF800000> : vector<24xf32>
    %55 = vector.multi_reduction <maximumf>, %54, %cst_21 [1] : vector<24x24xf32> to vector<24xf32>
    %56 = vector.shape_cast %55 : vector<24xf32> to vector<24x1xf32>
    %57 = vector.broadcast %56 : vector<24x1xf32> to vector<24x24xf32>
    %58 = arith.subf %54, %57 : vector<24x24xf32>
    %59 = math.exp %58 : vector<24x24xf32>
    %cst_22 = arith.constant dense<0.000000e+00> : vector<24xf32>
    %60 = vector.multi_reduction <add>, %59, %cst_22 [1] : vector<24x24xf32> to vector<24xf32>
    %61 = vector.shape_cast %60 : vector<24xf32> to vector<24x1xf32>
    %62 = tpu.reciprocal %61 {approx = true} : vector<24x1xf32> -> vector<24x1xf32>
    %63 = vector.broadcast %62 : vector<24x1xf32> to vector<24x24xf32>
    %64 = arith.mulf %59, %63 : vector<24x24xf32>
    %65 = arith.truncf %64 : vector<24x24xf32> to vector<24x24xbf16>
    %66 = arith.truncf %49 : vector<24x16xf32> to vector<24x16xbf16>
    %cst_23 = arith.constant dense<0.000000e+00> : vector<24x16xf32>
    %67 = tpu.matmul %65, %66, %cst_23 {dimension_numbers = #tpu.dot_dimension_numbers<[1], [0], [0], [1], [0, 0, 1, 1], [], []>} : vector<24x24xbf16>, vector<24x16xbf16>, vector<24x16xf32> -> vector<24x16xf32>
    %68 = vector.extract_strided_slice %46 {offsets = [0, 16], sizes = [24, 16], strides = [1, 1]} : vector<24x96xf32> to vector<24x16xf32>
    %69 = vector.extract_strided_slice %46 {offsets = [0, 48], sizes = [24, 16], strides = [1, 1]} : vector<24x96xf32> to vector<24x16xf32>
    %70 = vector.extract_strided_slice %46 {offsets = [0, 80], sizes = [24, 16], strides = [1, 1]} : vector<24x96xf32> to vector<24x16xf32>
    %71 = arith.truncf %68 : vector<24x16xf32> to vector<24x16xbf16>
    %72 = arith.truncf %69 : vector<24x16xf32> to vector<24x16xbf16>
    %cst_24 = arith.constant dense<0.000000e+00> : vector<24x24xf32>
    %73 = tpu.matmul %71, %72, %cst_24 {dimension_numbers = #tpu.dot_dimension_numbers<[1], [1], [0], [0], [0, 0, 1, 0], [], []>} : vector<24x16xbf16>, vector<24x16xbf16>, vector<24x24xf32> -> vector<24x24xf32>
    %cst_25 = arith.constant -1.000000e+30 : f32
    %74 = vector.broadcast %cst_25 : f32 to vector<24x24xf32>
    %75 = arith.select %9, %73, %74 : vector<24x24xi1>, vector<24x24xf32>
    %cst_26 = arith.constant dense<0xFF800000> : vector<24xf32>
    %76 = vector.multi_reduction <maximumf>, %75, %cst_26 [1] : vector<24x24xf32> to vector<24xf32>
    %77 = vector.shape_cast %76 : vector<24xf32> to vector<24x1xf32>
    %78 = vector.broadcast %77 : vector<24x1xf32> to vector<24x24xf32>
    %79 = arith.subf %75, %78 : vector<24x24xf32>
    %80 = math.exp %79 : vector<24x24xf32>
    %cst_27 = arith.constant dense<0.000000e+00> : vector<24xf32>
    %81 = vector.multi_reduction <add>, %80, %cst_27 [1] : vector<24x24xf32> to vector<24xf32>
    %82 = vector.shape_cast %81 : vector<24xf32> to vector<24x1xf32>
    %83 = tpu.reciprocal %82 {approx = true} : vector<24x1xf32> -> vector<24x1xf32>
    %84 = vector.broadcast %83 : vector<24x1xf32> to vector<24x24xf32>
    %85 = arith.mulf %80, %84 : vector<24x24xf32>
    %86 = arith.truncf %85 : vector<24x24xf32> to vector<24x24xbf16>
    %87 = arith.truncf %70 : vector<24x16xf32> to vector<24x16xbf16>
    %cst_28 = arith.constant dense<0.000000e+00> : vector<24x16xf32>
    %88 = tpu.matmul %86, %87, %cst_28 {dimension_numbers = #tpu.dot_dimension_numbers<[1], [0], [0], [1], [0, 0, 1, 1], [], []>} : vector<24x24xbf16>, vector<24x16xbf16>, vector<24x16xf32> -> vector<24x16xf32>
    %89 = tpu.concatenate %67, %88 in 1 : vector<24x16xf32>, vector<24x16xf32> -> vector<24x32xf32>
    %c0_29 = arith.constant 0 : index
    %c0_30 = arith.constant 0 : index
    %c0_31 = arith.constant 0 : index
    %90 = vector.load %arg20[%c0_29, %c0_30, %c0_31] : memref<1x32x32xbf16, #tpu.memory_space<vmem>>, vector<1x32x32xbf16>
    %91 = vector.shape_cast %90 : vector<1x32x32xbf16> to vector<32x32xbf16>
    %92 = vector.extract_strided_slice %14 {offsets = [5, 0], sizes = [1, 32], strides = [1, 1]} : vector<8x128xf32> to vector<1x32xf32>
    %93 = arith.truncf %89 : vector<24x32xf32> to vector<24x32xbf16>
    %cst_32 = arith.constant dense<0.000000e+00> : vector<24x32xf32>
    %94 = tpu.matmul %93, %91, %cst_32 {dimension_numbers = #tpu.dot_dimension_numbers<[1], [0], [0], [1], [0, 0, 1, 1], [], []>} : vector<24x32xbf16>, vector<32x32xbf16>, vector<24x32xf32> -> vector<24x32xf32>
    %95 = vector.broadcast %92 : vector<1x32xf32> to vector<24x32xf32>
    %96 = arith.addf %94, %95 : vector<24x32xf32>
    %97 = arith.addf %15, %96 : vector<24x32xf32>
    %98 = vector.extract_strided_slice %14 {offsets = [2, 0], sizes = [1, 32], strides = [1, 1]} : vector<8x128xf32> to vector<1x32xf32>
    %99 = vector.extract_strided_slice %14 {offsets = [3, 0], sizes = [1, 32], strides = [1, 1]} : vector<8x128xf32> to vector<1x32xf32>
    %cst_33 = arith.constant dense<0.000000e+00> : vector<24xf32>
    %100 = vector.multi_reduction <add>, %97, %cst_33 [1] : vector<24x32xf32> to vector<24xf32>
    %101 = vector.shape_cast %100 : vector<24xf32> to vector<24x1xf32>
    %cst_34 = arith.constant 3.200000e+01 : f32
    %102 = vector.broadcast %cst_34 : f32 to vector<24x1xf32>
    %103 = arith.divf %101, %102 : vector<24x1xf32>
    %104 = vector.broadcast %103 : vector<24x1xf32> to vector<24x32xf32>
    %105 = arith.subf %97, %104 : vector<24x32xf32>
    %106 = arith.mulf %105, %105 : vector<24x32xf32>
    %cst_35 = arith.constant dense<0.000000e+00> : vector<24xf32>
    %107 = vector.multi_reduction <add>, %106, %cst_35 [1] : vector<24x32xf32> to vector<24xf32>
    %108 = vector.shape_cast %107 : vector<24xf32> to vector<24x1xf32>
    %cst_36 = arith.constant 3.200000e+01 : f32
    %109 = vector.broadcast %cst_36 : f32 to vector<24x1xf32>
    %110 = arith.divf %108, %109 : vector<24x1xf32>
    %111 = vector.broadcast %103 : vector<24x1xf32> to vector<24x32xf32>
    %112 = arith.subf %97, %111 : vector<24x32xf32>
    %cst_37 = arith.constant 9.99999974E-6 : f32
    %113 = vector.broadcast %cst_37 : f32 to vector<24x1xf32>
    %114 = arith.addf %110, %113 : vector<24x1xf32>
    %115 = math.rsqrt %114 : vector<24x1xf32>
    %116 = vector.broadcast %115 : vector<24x1xf32> to vector<24x32xf32>
    %117 = arith.mulf %112, %116 : vector<24x32xf32>
    %118 = vector.broadcast %98 : vector<1x32xf32> to vector<24x32xf32>
    %119 = arith.mulf %117, %118 : vector<24x32xf32>
    %120 = vector.broadcast %99 : vector<1x32xf32> to vector<24x32xf32>
    %121 = arith.addf %119, %120 : vector<24x32xf32>
    %c0_38 = arith.constant 0 : index
    %c0_39 = arith.constant 0 : index
    %c0_40 = arith.constant 0 : index
    %122 = vector.load %arg21[%c0_38, %c0_39, %c0_40] : memref<1x32x128xbf16, #tpu.memory_space<vmem>>, vector<1x32x128xbf16>
    %123 = vector.shape_cast %122 : vector<1x32x128xbf16> to vector<32x128xbf16>
    %124 = vector.extract_strided_slice %14 {offsets = [6, 0], sizes = [1, 128], strides = [1, 1]} : vector<8x128xf32> to vector<1x128xf32>
    %125 = arith.truncf %121 : vector<24x32xf32> to vector<24x32xbf16>
    %cst_41 = arith.constant dense<0.000000e+00> : vector<24x128xf32>
    %126 = tpu.matmul %125, %123, %cst_41 {dimension_numbers = #tpu.dot_dimension_numbers<[1], [0], [0], [1], [0, 0, 1, 1], [], []>} : vector<24x32xbf16>, vector<32x128xbf16>, vector<24x128xf32> -> vector<24x128xf32>
    %127 = vector.broadcast %124 : vector<1x128xf32> to vector<24x128xf32>
    %128 = arith.addf %126, %127 : vector<24x128xf32>
    %129 = arith.mulf %128, %128 : vector<24x128xf32>
    %130 = arith.mulf %128, %129 : vector<24x128xf32>
    %cst_42 = arith.constant 4.471500e-02 : f32
    %131 = vector.broadcast %cst_42 : f32 to vector<24x128xf32>
    %132 = arith.mulf %131, %130 : vector<24x128xf32>
    %133 = arith.addf %128, %132 : vector<24x128xf32>
    %cst_43 = arith.constant 0.797884583 : f32
    %134 = vector.broadcast %cst_43 : f32 to vector<24x128xf32>
    %135 = arith.mulf %134, %133 : vector<24x128xf32>
    %136 = math.tanh %135 : vector<24x128xf32>
    %cst_44 = arith.constant 1.000000e+00 : f32
    %137 = vector.broadcast %cst_44 : f32 to vector<24x128xf32>
    %138 = arith.addf %137, %136 : vector<24x128xf32>
    %cst_45 = arith.constant 5.000000e-01 : f32
    %139 = vector.broadcast %cst_45 : f32 to vector<24x128xf32>
    %140 = arith.mulf %139, %138 : vector<24x128xf32>
    %141 = arith.mulf %128, %140 : vector<24x128xf32>
    %c0_46 = arith.constant 0 : index
    %c0_47 = arith.constant 0 : index
    %c0_48 = arith.constant 0 : index
    %142 = vector.load %arg22[%c0_46, %c0_47, %c0_48] : memref<1x128x32xbf16, #tpu.memory_space<vmem>>, vector<1x128x32xbf16>
    %143 = vector.shape_cast %142 : vector<1x128x32xbf16> to vector<128x32xbf16>
    %144 = vector.extract_strided_slice %14 {offsets = [7, 0], sizes = [1, 32], strides = [1, 1]} : vector<8x128xf32> to vector<1x32xf32>
    %145 = arith.truncf %141 : vector<24x128xf32> to vector<24x128xbf16>
    %cst_49 = arith.constant dense<0.000000e+00> : vector<24x32xf32>
    %146 = tpu.matmul %145, %143, %cst_49 {dimension_numbers = #tpu.dot_dimension_numbers<[1], [0], [0], [1], [0, 0, 1, 1], [], []>} : vector<24x128xbf16>, vector<128x32xbf16>, vector<24x32xf32> -> vector<24x32xf32>
    %147 = vector.broadcast %144 : vector<1x32xf32> to vector<24x32xf32>
    %148 = arith.addf %146, %147 : vector<24x32xf32>
    %149 = arith.addf %97, %148 : vector<24x32xf32>
    %c0_50 = arith.constant 0 : index
    %c0_51 = arith.constant 0 : index
    %150 = vector.load %arg29[%c0_50, %c0_51] : memref<24x32xf32, #tpu.memory_space<vmem>>, vector<24x32xf32>
    tpu.vector_store %arg29[%c0_50, %c0_51], %149 {strides = array<i32>} : memref<24x32xf32, #tpu.memory_space<vmem>>, vector<24x32xf32>,
    %c1_i32 = arith.constant 1 : i32
    %151 = arith.cmpi eq, %arg0, %c1_i32 : i32
    %152 = arith.extui %151 : i1 to i32
    %c0_i32_52 = arith.constant 0 : i32
    %153 = arith.cmpi ne, %152, %c0_i32_52 : i32
    scf.if %153 {
      %154 = vector.extract_strided_slice %0 {offsets = [0, 0], sizes = [1, 32], strides = [1, 1]} : vector<16x128xf32> to vector<1x32xf32>
      %155 = vector.extract_strided_slice %0 {offsets = [1, 0], sizes = [1, 32], strides = [1, 1]} : vector<16x128xf32> to vector<1x32xf32>
      %cst_53 = arith.constant dense<0.000000e+00> : vector<24xf32>
      %156 = vector.multi_reduction <add>, %149, %cst_53 [1] : vector<24x32xf32> to vector<24xf32>
      %157 = vector.shape_cast %156 : vector<24xf32> to vector<24x1xf32>
      %cst_54 = arith.constant 3.200000e+01 : f32
      %158 = vector.broadcast %cst_54 : f32 to vector<24x1xf32>
      %159 = arith.divf %157, %158 : vector<24x1xf32>
      %160 = vector.broadcast %159 : vector<24x1xf32> to vector<24x32xf32>
      %161 = arith.subf %149, %160 : vector<24x32xf32>
      %162 = arith.mulf %161, %161 : vector<24x32xf32>
      %cst_55 = arith.constant dense<0.000000e+00> : vector<24xf32>
      %163 = vector.multi_reduction <add>, %162, %cst_55 [1] : vector<24x32xf32> to vector<24xf32>
      %164 = vector.shape_cast %163 : vector<24xf32> to vector<24x1xf32>
      %cst_56 = arith.constant 3.200000e+01 : f32
      %165 = vector.broadcast %cst_56 : f32 to vector<24x1xf32>
      %166 = arith.divf %164, %165 : vector<24x1xf32>
      %167 = vector.broadcast %159 : vector<24x1xf32> to vector<24x32xf32>
      %168 = arith.subf %149, %167 : vector<24x32xf32>
      %cst_57 = arith.constant 9.99999974E-6 : f32
      %169 = vector.broadcast %cst_57 : f32 to vector<24x1xf32>
      %170 = arith.addf %166, %169 : vector<24x1xf32>
      %171 = math.rsqrt %170 : vector<24x1xf32>
      %172 = vector.broadcast %171 : vector<24x1xf32> to vector<24x32xf32>
      %173 = arith.mulf %168, %172 : vector<24x32xf32>
      %174 = vector.broadcast %154 : vector<1x32xf32> to vector<24x32xf32>
      %175 = arith.mulf %173, %174 : vector<24x32xf32>
      %176 = vector.broadcast %155 : vector<1x32xf32> to vector<24x32xf32>
      %177 = arith.addf %175, %176 : vector<24x32xf32>
      %178 = arith.truncf %177 : vector<24x32xf32> to vector<24x32xbf16>
      %c0_58 = arith.constant 0 : index
      %c0_59 = arith.constant 0 : index
      %179 = vector.load %arg9[%c0_58, %c0_59] : memref<64x32xbf16, #tpu.memory_space<vmem>>, vector<64x32xbf16>
      %cst_60 = arith.constant dense<0.000000e+00> : vector<24x64xf32>
      %180 = tpu.matmul %178, %179, %cst_60 {dimension_numbers = #tpu.dot_dimension_numbers<[1], [1], [0], [0], [0, 0, 1, 0], [], []>} : vector<24x32xbf16>, vector<64x32xbf16>, vector<24x64xf32> -> vector<24x64xf32>
      %c0_61 = arith.constant 0 : index
      %c0_62 = arith.constant 0 : index
      %181 = vector.load %arg24[%c0_61, %c0_62] : memref<24x64xf32, #tpu.memory_space<vmem>>, vector<24x64xf32>
      tpu.vector_store %arg24[%c0_61, %c0_62], %180 {strides = array<i32>} : memref<24x64xf32, #tpu.memory_space<vmem>>, vector<24x64xf32>,
      %182 = tpu.iota {dimensions = array<i32: 0>} : vector<2x1xi32>
      %c12_i32 = arith.constant 12 : i32
      %183 = vector.broadcast %c12_i32 : i32 to vector<2x1xi32>
      %184 = arith.muli %182, %183 : vector<2x1xi32>
      %c0_63 = arith.constant 0 : index
      %c0_64 = arith.constant 0 : index
      %185 = vector.load %arg8[%c0_63, %c0_64] : memref<2x1xi32, #tpu.memory_space<vmem>>, vector<2x1xi32>
      %186 = arith.addi %184, %185 : vector<2x1xi32>
      %187 = tpu.iota {dimensions = array<i32: 1>} : vector<2x24xi32>
      %188 = vector.broadcast %186 : vector<2x1xi32> to vector<2x24xi32>
      %189 = arith.cmpi eq, %187, %188 : vector<2x24xi32>
      %cst_65 = arith.constant 1.000000e+00 : f32
      %cst_66 = arith.constant 0.000000e+00 : f32
      %190 = vector.broadcast %cst_65 : f32 to vector<2x24xf32>
      %191 = vector.broadcast %cst_66 : f32 to vector<2x24xf32>
      %192 = arith.select %189, %190, %191 : vector<2x24xi1>, vector<2x24xf32>
      %193 = arith.truncf %192 : vector<2x24xf32> to vector<2x24xbf16>
      %194 = arith.truncf %177 : vector<24x32xf32> to vector<24x32xbf16>
      %cst_67 = arith.constant dense<0.000000e+00> : vector<2x32xf32>
      %195 = tpu.matmul %193, %194, %cst_67 {dimension_numbers = #tpu.dot_dimension_numbers<[1], [0], [0], [1], [0, 0, 1, 1], [], []>} : vector<2x24xbf16>, vector<24x32xbf16>, vector<2x32xf32> -> vector<2x32xf32>
      %c0_68 = arith.constant 0 : index
      %c0_69 = arith.constant 0 : index
      %196 = vector.load %arg26[%c0_68, %c0_69] : memref<2x32xf32, #tpu.memory_space<vmem>>, vector<2x32xf32>
      tpu.vector_store %arg26[%c0_68, %c0_69], %195 {strides = array<i32>} : memref<2x32xf32, #tpu.memory_space<vmem>>, vector<2x32xf32>,
      %c0_70 = arith.constant 0 : index
      %c0_71 = arith.constant 0 : index
      %197 = vector.load %arg17[%c0_70, %c0_71] : memref<32x32xbf16, #tpu.memory_space<vmem>>, vector<32x32xbf16>
      %198 = vector.extract_strided_slice %0 {offsets = [9, 0], sizes = [1, 32], strides = [1, 1]} : vector<16x128xf32> to vector<1x32xf32>
      %199 = arith.truncf %195 : vector<2x32xf32> to vector<2x32xbf16>
      %cst_72 = arith.constant dense<0.000000e+00> : vector<2x32xf32>
      %200 = tpu.matmul %199, %197, %cst_72 {dimension_numbers = #tpu.dot_dimension_numbers<[1], [0], [0], [1], [0, 0, 1, 1], [], []>} : vector<2x32xbf16>, vector<32x32xbf16>, vector<2x32xf32> -> vector<2x32xf32>
      %201 = vector.broadcast %198 : vector<1x32xf32> to vector<2x32xf32>
      %202 = arith.addf %200, %201 : vector<2x32xf32>
      %203 = arith.mulf %202, %202 : vector<2x32xf32>
      %204 = arith.mulf %202, %203 : vector<2x32xf32>
      %cst_73 = arith.constant 4.471500e-02 : f32
      %205 = vector.broadcast %cst_73 : f32 to vector<2x32xf32>
      %206 = arith.mulf %205, %204 : vector<2x32xf32>
      %207 = arith.addf %202, %206 : vector<2x32xf32>
      %cst_74 = arith.constant 0.797884583 : f32
      %208 = vector.broadcast %cst_74 : f32 to vector<2x32xf32>
      %209 = arith.mulf %208, %207 : vector<2x32xf32>
      %210 = math.tanh %209 : vector<2x32xf32>
      %cst_75 = arith.constant 1.000000e+00 : f32
      %211 = vector.broadcast %cst_75 : f32 to vector<2x32xf32>
      %212 = arith.addf %211, %210 : vector<2x32xf32>
      %cst_76 = arith.constant 5.000000e-01 : f32
      %213 = vector.broadcast %cst_76 : f32 to vector<2x32xf32>
      %214 = arith.mulf %213, %212 : vector<2x32xf32>
      %215 = arith.mulf %202, %214 : vector<2x32xf32>
      %c0_77 = arith.constant 0 : index
      %c0_78 = arith.constant 0 : index
      %216 = vector.load %arg18[%c0_77, %c0_78] : memref<32x4xbf16, #tpu.memory_space<vmem>>, vector<32x4xbf16>
      %217 = vector.extract_strided_slice %0 {offsets = [10, 0], sizes = [1, 4], strides = [1, 1]} : vector<16x128xf32> to vector<1x4xf32>
      %218 = arith.truncf %215 : vector<2x32xf32> to vector<2x32xbf16>
      %cst_79 = arith.constant dense<0.000000e+00> : vector<2x4xf32>
      %219 = tpu.matmul %218, %216, %cst_79 {dimension_numbers = #tpu.dot_dimension_numbers<[1], [0], [0], [1], [0, 0, 1, 1], [], []>} : vector<2x32xbf16>, vector<32x4xbf16>, vector<2x4xf32> -> vector<2x4xf32>
      %220 = vector.broadcast %217 : vector<1x4xf32> to vector<2x4xf32>
      %221 = arith.addf %219, %220 : vector<2x4xf32>
      %222 = arith.negf %221 : vector<2x4xf32>
      %223 = math.exp %222 : vector<2x4xf32>
      %cst_80 = arith.constant 1.000000e+00 : f32
      %224 = vector.broadcast %cst_80 : f32 to vector<2x4xf32>
      %225 = arith.addf %224, %223 : vector<2x4xf32>
      %226 = arith.divf %224, %225 : vector<2x4xf32>
      %c0_81 = arith.constant 0 : index
      %c0_82 = arith.constant 0 : index
      %227 = vector.load %arg25[%c0_81, %c0_82] : memref<2x4xf32, #tpu.memory_space<vmem>>, vector<2x4xf32>
      tpu.vector_store %arg25[%c0_81, %c0_82], %226 {strides = array<i32>} : memref<2x4xf32, #tpu.memory_space<vmem>>, vector<2x4xf32>,
      %c0_83 = arith.constant 0 : index
      %c0_84 = arith.constant 0 : index
      %228 = vector.load %arg15[%c0_83, %c0_84] : memref<4x32xbf16, #tpu.memory_space<vmem>>, vector<4x32xbf16>
      %229 = vector.extract_strided_slice %0 {offsets = [7, 0], sizes = [1, 32], strides = [1, 1]} : vector<16x128xf32> to vector<1x32xf32>
      %230 = arith.truncf %226 : vector<2x4xf32> to vector<2x4xbf16>
      %cst_85 = arith.constant dense<0.000000e+00> : vector<2x32xf32>
      %231 = tpu.matmul %230, %228, %cst_85 {dimension_numbers = #tpu.dot_dimension_numbers<[1], [0], [0], [1], [0, 0, 1, 1], [], []>} : vector<2x4xbf16>, vector<4x32xbf16>, vector<2x32xf32> -> vector<2x32xf32>
      %232 = vector.broadcast %229 : vector<1x32xf32> to vector<2x32xf32>
      %233 = arith.addf %231, %232 : vector<2x32xf32>
      %234 = arith.mulf %233, %233 : vector<2x32xf32>
      %235 = arith.mulf %233, %234 : vector<2x32xf32>
      %cst_86 = arith.constant 4.471500e-02 : f32
      %236 = vector.broadcast %cst_86 : f32 to vector<2x32xf32>
      %237 = arith.mulf %236, %235 : vector<2x32xf32>
      %238 = arith.addf %233, %237 : vector<2x32xf32>
      %cst_87 = arith.constant 0.797884583 : f32
      %239 = vector.broadcast %cst_87 : f32 to vector<2x32xf32>
      %240 = arith.mulf %239, %238 : vector<2x32xf32>
      %241 = math.tanh %240 : vector<2x32xf32>
      %cst_88 = arith.constant 1.000000e+00 : f32
      %242 = vector.broadcast %cst_88 : f32 to vector<2x32xf32>
      %243 = arith.addf %242, %241 : vector<2x32xf32>
      %cst_89 = arith.constant 5.000000e-01 : f32
      %244 = vector.broadcast %cst_89 : f32 to vector<2x32xf32>
      %245 = arith.mulf %244, %243 : vector<2x32xf32>
      %246 = arith.mulf %233, %245 : vector<2x32xf32>
      %c0_90 = arith.constant 0 : index
      %c0_91 = arith.constant 0 : index
      %247 = vector.load %arg16[%c0_90, %c0_91] : memref<32x32xbf16, #tpu.memory_space<vmem>>, vector<32x32xbf16>
      %248 = vector.extract_strided_slice %0 {offsets = [8, 0], sizes = [1, 32], strides = [1, 1]} : vector<16x128xf32> to vector<1x32xf32>
      %249 = arith.truncf %246 : vector<2x32xf32> to vector<2x32xbf16>
      %cst_92 = arith.constant dense<0.000000e+00> : vector<2x32xf32>
      %250 = tpu.matmul %249, %247, %cst_92 {dimension_numbers = #tpu.dot_dimension_numbers<[1], [0], [0], [1], [0, 0, 1, 1], [], []>} : vector<2x32xbf16>, vector<32x32xbf16>, vector<2x32xf32> -> vector<2x32xf32>
      %251 = vector.broadcast %248 : vector<1x32xf32> to vector<2x32xf32>
      %252 = arith.addf %250, %251 : vector<2x32xf32>
      %c0_93 = arith.constant 0 : index
      %c0_94 = arith.constant 0 : index
      %253 = vector.load %arg27[%c0_93, %c0_94] : memref<2x32xf32, #tpu.memory_space<vmem>>, vector<2x32xf32>
      tpu.vector_store %arg27[%c0_93, %c0_94], %252 {strides = array<i32>} : memref<2x32xf32, #tpu.memory_space<vmem>>, vector<2x32xf32>,
      %c0_95 = arith.constant 0 : index
      %c0_96 = arith.constant 0 : index
      %254 = vector.load %arg30[%c0_95, %c0_96] : memref<2x32xf32, #tpu.memory_space<vmem>>, vector<2x32xf32>
      %c0_97 = arith.constant 0 : index
      %c0_98 = arith.constant 0 : index
      %255 = vector.load %arg17[%c0_97, %c0_98] : memref<32x32xbf16, #tpu.memory_space<vmem>>, vector<32x32xbf16>
      %256 = vector.extract_strided_slice %0 {offsets = [9, 0], sizes = [1, 32], strides = [1, 1]} : vector<16x128xf32> to vector<1x32xf32>
      %257 = arith.truncf %254 : vector<2x32xf32> to vector<2x32xbf16>
      %cst_99 = arith.constant dense<0.000000e+00> : vector<2x32xf32>
      %258 = tpu.matmul %257, %255, %cst_99 {dimension_numbers = #tpu.dot_dimension_numbers<[1], [0], [0], [1], [0, 0, 1, 1], [], []>} : vector<2x32xbf16>, vector<32x32xbf16>, vector<2x32xf32> -> vector<2x32xf32>
      %259 = vector.broadcast %256 : vector<1x32xf32> to vector<2x32xf32>
      %260 = arith.addf %258, %259 : vector<2x32xf32>
      %261 = arith.mulf %260, %260 : vector<2x32xf32>
      %262 = arith.mulf %260, %261 : vector<2x32xf32>
      %cst_100 = arith.constant 4.471500e-02 : f32
      %263 = vector.broadcast %cst_100 : f32 to vector<2x32xf32>
      %264 = arith.mulf %263, %262 : vector<2x32xf32>
      %265 = arith.addf %260, %264 : vector<2x32xf32>
      %cst_101 = arith.constant 0.797884583 : f32
      %266 = vector.broadcast %cst_101 : f32 to vector<2x32xf32>
      %267 = arith.mulf %266, %265 : vector<2x32xf32>
      %268 = math.tanh %267 : vector<2x32xf32>
      %cst_102 = arith.constant 1.000000e+00 : f32
      %269 = vector.broadcast %cst_102 : f32 to vector<2x32xf32>
      %270 = arith.addf %269, %268 : vector<2x32xf32>
      %cst_103 = arith.constant 5.000000e-01 : f32
      %271 = vector.broadcast %cst_103 : f32 to vector<2x32xf32>
      %272 = arith.mulf %271, %270 : vector<2x32xf32>
      %273 = arith.mulf %260, %272 : vector<2x32xf32>
      %c0_104 = arith.constant 0 : index
      %c0_105 = arith.constant 0 : index
      %274 = vector.load %arg18[%c0_104, %c0_105] : memref<32x4xbf16, #tpu.memory_space<vmem>>, vector<32x4xbf16>
      %275 = vector.extract_strided_slice %0 {offsets = [10, 0], sizes = [1, 4], strides = [1, 1]} : vector<16x128xf32> to vector<1x4xf32>
      %276 = arith.truncf %273 : vector<2x32xf32> to vector<2x32xbf16>
      %cst_106 = arith.constant dense<0.000000e+00> : vector<2x4xf32>
      %277 = tpu.matmul %276, %274, %cst_106 {dimension_numbers = #tpu.dot_dimension_numbers<[1], [0], [0], [1], [0, 0, 1, 1], [], []>} : vector<2x32xbf16>, vector<32x4xbf16>, vector<2x4xf32> -> vector<2x4xf32>
      %278 = vector.broadcast %275 : vector<1x4xf32> to vector<2x4xf32>
      %279 = arith.addf %277, %278 : vector<2x4xf32>
      %280 = arith.negf %279 : vector<2x4xf32>
      %281 = math.exp %280 : vector<2x4xf32>
      %cst_107 = arith.constant 1.000000e+00 : f32
      %282 = vector.broadcast %cst_107 : f32 to vector<2x4xf32>
      %283 = arith.addf %282, %281 : vector<2x4xf32>
      %284 = arith.divf %282, %283 : vector<2x4xf32>
      %c0_108 = arith.constant 0 : index
      %c0_109 = arith.constant 0 : index
      %285 = vector.load %arg28[%c0_108, %c0_109] : memref<2x4xf32, #tpu.memory_space<vmem>>, vector<2x4xf32>
      tpu.vector_store %arg28[%c0_108, %c0_109], %284 {strides = array<i32>} : memref<2x4xf32, #tpu.memory_space<vmem>>, vector<2x4xf32>,
    } else {
    }
    return
  }
  func.func @transform_0(%arg0: i32) -> (i32, i32) {
    %c0_i32 = arith.constant 0 : i32
    %c0_i32_0 = arith.constant 0 : i32
    %c0_i32_1 = arith.constant 0 : i32
    return %c0_i32, %c0_i32_0 : i32, i32
  }
  func.func @transform_1(%arg0: i32) -> (i32, i32) {
    %c0_i32 = arith.constant 0 : i32
    %c0_i32_0 = arith.constant 0 : i32
    %c0_i32_1 = arith.constant 0 : i32
    return %c0_i32, %c0_i32_0 : i32, i32
  }
  func.func @transform_2(%arg0: i32) -> (i32, i32) {
    %c0_i32 = arith.constant 0 : i32
    %c0_i32_0 = arith.constant 0 : i32
    %c0_i32_1 = arith.constant 0 : i32
    return %c0_i32, %c0_i32_0 : i32, i32
  }
  func.func @transform_3(%arg0: i32) -> (i32, i32) {
    %c0_i32 = arith.constant 0 : i32
    %c0_i32_0 = arith.constant 0 : i32
    %c0_i32_1 = arith.constant 0 : i32
    return %c0_i32, %c0_i32_0 : i32, i32
  }
  func.func @transform_4(%arg0: i32) -> (i32, i32) {
    %c0_i32 = arith.constant 0 : i32
    %c0_i32_0 = arith.constant 0 : i32
    %c0_i32_1 = arith.constant 0 : i32
    return %c0_i32, %c0_i32_0 : i32, i32
  }
  func.func @transform_5(%arg0: i32) -> (i32, i32) {
    %c0_i32 = arith.constant 0 : i32
    %c0_i32_0 = arith.constant 0 : i32
    %c0_i32_1 = arith.constant 0 : i32
    return %c0_i32, %c0_i32_0 : i32, i32
  }
  func.func @transform_6(%arg0: i32) -> (i32, i32) {
    %c0_i32 = arith.constant 0 : i32
    %c0_i32_0 = arith.constant 0 : i32
    %c0_i32_1 = arith.constant 0 : i32
    return %c0_i32, %c0_i32_0 : i32, i32
  }
  func.func @transform_7(%arg0: i32) -> (i32, i32) {
    %c0_i32 = arith.constant 0 : i32
    %c0_i32_0 = arith.constant 0 : i32
    %c0_i32_1 = arith.constant 0 : i32
    return %c0_i32, %c0_i32_0 : i32, i32
  }
  func.func @transform_8(%arg0: i32) -> (i32, i32) {
    %c0_i32 = arith.constant 0 : i32
    %c0_i32_0 = arith.constant 0 : i32
    %c0_i32_1 = arith.constant 0 : i32
    return %c0_i32, %c0_i32_0 : i32, i32
  }
  func.func @transform_9(%arg0: i32) -> (i32, i32) {
    %c0_i32 = arith.constant 0 : i32
    %c0_i32_0 = arith.constant 0 : i32
    %c0_i32_1 = arith.constant 0 : i32
    return %c0_i32, %c0_i32_0 : i32, i32
  }
  func.func @transform_10(%arg0: i32) -> (i32, i32) {
    %c0_i32 = arith.constant 0 : i32
    %c0_i32_0 = arith.constant 0 : i32
    %c0_i32_1 = arith.constant 0 : i32
    return %c0_i32, %c0_i32_0 : i32, i32
  }
  func.func @transform_11(%arg0: i32) -> (i32, i32) {
    %c0_i32 = arith.constant 0 : i32
    %c0_i32_0 = arith.constant 0 : i32
    %c0_i32_1 = arith.constant 0 : i32
    return %c0_i32, %c0_i32_0 : i32, i32
  }
  func.func @transform_12(%arg0: i32) -> (i32, i32) {
    %c0_i32 = arith.constant 0 : i32
    %c0_i32_0 = arith.constant 0 : i32
    %c0_i32_1 = arith.constant 0 : i32
    return %c0_i32, %c0_i32_0 : i32, i32
  }
  func.func @transform_13(%arg0: i32) -> (i32, i32) {
    %c0_i32 = arith.constant 0 : i32
    %c0_i32_0 = arith.constant 0 : i32
    %c0_i32_1 = arith.constant 0 : i32
    return %c0_i32, %c0_i32_0 : i32, i32
  }
  func.func @transform_14(%arg0: i32) -> (i32, i32) {
    %c0_i32 = arith.constant 0 : i32
    %c0_i32_0 = arith.constant 0 : i32
    %c0_i32_1 = arith.constant 0 : i32
    return %c0_i32, %c0_i32_0 : i32, i32
  }
  func.func @transform_15(%arg0: i32) -> (i32, i32) {
    %c0_i32 = arith.constant 0 : i32
    %c0_i32_0 = arith.constant 0 : i32
    %c0_i32_1 = arith.constant 0 : i32
    return %c0_i32, %c0_i32_0 : i32, i32
  }
  func.func @transform_16(%arg0: i32) -> (i32, i32) {
    %c0_i32 = arith.constant 0 : i32
    %c0_i32_0 = arith.constant 0 : i32
    %c0_i32_1 = arith.constant 0 : i32
    return %c0_i32, %c0_i32_0 : i32, i32
  }
  func.func @transform_17(%arg0: i32) -> (i32, i32) {
    %c0_i32 = arith.constant 0 : i32
    %c0_i32_0 = arith.constant 0 : i32
    %c0_i32_1 = arith.constant 0 : i32
    return %c0_i32, %c0_i32_0 : i32, i32
  }
  func.func @transform_18(%arg0: i32) -> (i32, i32, i32) {
    %c0_i32 = arith.constant 0 : i32
    %c0_i32_0 = arith.constant 0 : i32
    %c0_i32_1 = arith.constant 0 : i32
    return %arg0, %c0_i32, %c0_i32_0 : i32, i32, i32
  }
  func.func @transform_19(%arg0: i32) -> (i32, i32, i32) {
    %c0_i32 = arith.constant 0 : i32
    %c0_i32_0 = arith.constant 0 : i32
    %c0_i32_1 = arith.constant 0 : i32
    return %arg0, %c0_i32, %c0_i32_0 : i32, i32, i32
  }
  func.func @transform_20(%arg0: i32) -> (i32, i32, i32) {
    %c0_i32 = arith.constant 0 : i32
    %c0_i32_0 = arith.constant 0 : i32
    %c0_i32_1 = arith.constant 0 : i32
    return %arg0, %c0_i32, %c0_i32_0 : i32, i32, i32
  }
  func.func @transform_21(%arg0: i32) -> (i32, i32, i32) {
    %c0_i32 = arith.constant 0 : i32
    %c0_i32_0 = arith.constant 0 : i32
    %c0_i32_1 = arith.constant 0 : i32
    return %arg0, %c0_i32, %c0_i32_0 : i32, i32, i32
  }
  func.func @transform_22(%arg0: i32) -> (i32, i32, i32) {
    %c0_i32 = arith.constant 0 : i32
    %c0_i32_0 = arith.constant 0 : i32
    %c0_i32_1 = arith.constant 0 : i32
    return %arg0, %c0_i32, %c0_i32_0 : i32, i32, i32
  }
  func.func @transform_23(%arg0: i32) -> (i32, i32) {
    %c0_i32 = arith.constant 0 : i32
    %c0_i32_0 = arith.constant 0 : i32
    %c0_i32_1 = arith.constant 0 : i32
    return %c0_i32, %c0_i32_0 : i32, i32
  }
  func.func @transform_24(%arg0: i32) -> (i32, i32) {
    %c0_i32 = arith.constant 0 : i32
    %c0_i32_0 = arith.constant 0 : i32
    %c0_i32_1 = arith.constant 0 : i32
    return %c0_i32, %c0_i32_0 : i32, i32
  }
  func.func @transform_25(%arg0: i32) -> (i32, i32) {
    %c0_i32 = arith.constant 0 : i32
    %c0_i32_0 = arith.constant 0 : i32
    %c0_i32_1 = arith.constant 0 : i32
    return %c0_i32, %c0_i32_0 : i32, i32
  }
  func.func @transform_26(%arg0: i32) -> (i32, i32) {
    %c0_i32 = arith.constant 0 : i32
    %c0_i32_0 = arith.constant 0 : i32
    %c0_i32_1 = arith.constant 0 : i32
    return %c0_i32, %c0_i32_0 : i32, i32
  }
  func.func @transform_27(%arg0: i32) -> (i32, i32) {
    %c0_i32 = arith.constant 0 : i32
    %c0_i32_0 = arith.constant 0 : i32
    %c0_i32_1 = arith.constant 0 : i32
    return %c0_i32, %c0_i32_0 : i32, i32
  }
}

</mosaic_0001>

<bundles_post_ra>
// kernel: nextchat_forward.1
= control target key start
LH: loop header
LB: loop body
LE: loop exit
PB: predicated region body
PF: predicated region fallthrough
CT: control target
= control target key end

     0   :  { %s4940_s0 = inlined_call_operand.vmem [shape: f32[8,192], index: 0, kind: input, shape index: {}]   ;;  %s4941_s1 = inlined_call_operand.vmem [shape: f32[2,4], index: 1, kind: input, shape index: {}]   ;;  %s4942_s2 = inlined_call_operand.vmem [shape: s32[24,1], index: 2, kind: input, shape index: {}]   ;;  %s4943_s3 = inlined_call_operand.vmem [shape: s32[1,24], index: 3, kind: input, shape index: {}]   ;;  %s4944_s4 = inlined_call_operand.vmem [shape: s32[24,1], index: 4, kind: input, shape index: {}]   ;;  %s4945_s5 = inlined_call_operand.vmem [shape: s32[1,24], index: 5, kind: input, shape index: {}]   ;;  %s4946_s6 = inlined_call_operand.vmem [shape: s32[1,2], index: 6, kind: input, shape index: {}]   ;;  %s4947_s7 = inlined_call_operand.vmem [shape: s32[2,1], index: 7, kind: input, shape index: {}]   ;;  %s4948_s8 = inlined_call_operand.vmem [shape: bf16[64,32], index: 8, kind: input, shape index: {}]   ;;  %s4949_s9 = inlined_call_operand.vmem [shape: f32[24,32], index: 9, kind: input, shape index: {}]   ;;  %s4950_s10 = inlined_call_operand.vmem [shape: f32[16,128], index: 10, kind: input, shape index: {}]   ;;  %s4951_s11 = inlined_call_operand.vmem [shape: bf16[192,16], index: 11, kind: input, shape index: {}]   ;;  %s4952_s12 = inlined_call_operand.vmem [shape: bf16[16,32], index: 12, kind: input, shape index: {}]   ;;  %s4953_s13 = inlined_call_operand.vmem [shape: bf16[32,32], index: 13, kind: input, shape index: {}]   ;;  %s4954_s14 = inlined_call_operand.vmem [shape: bf16[4,32], index: 14, kind: input, shape index: {}]   ;;  %s4955_s15 = inlined_call_operand.vmem [shape: bf16[32,32], index: 15, kind: input, shape index: {}]   ;;  %s4956_s16 = inlined_call_operand.vmem [shape: bf16[32,32], index: 16, kind: input, shape index: {}]   ;;  %s4957_s17 = inlined_call_operand.vmem [shape: bf16[32,4], index: 17, kind: input, shape index: {}]   ;;  %s4958_s18 = inlined_call_operand.vmem [shape: bf16[2,32,96], index: 18, kind: input, shape index: {}]   ;;  %s4959_s19 = inlined_call_operand.vmem [shape: bf16[2,32,32], index: 19, kind: input, shape index: {}]   ;;  %s4960_s20 = inlined_call_operand.vmem [shape: bf16[2,32,128], index: 20, kind: input, shape index: {}]   ;;  %s4961_s21 = inlined_call_operand.vmem [shape: bf16[2,128,32], index: 21, kind: input, shape index: {}]   ;;  %s4962_s22 = inlined_call_operand.vmem [shape: f32[2,8,128], index: 22, kind: input, shape index: {}]   ;;  %s4963_s23 = inlined_call_operand.vmem [shape: f32[24,64], index: 23, kind: output, shape index: {0}]   ;;  %s4964_s24 = inlined_call_operand.hbm [shape: f32[2,4], index: 24, kind: output, shape index: {1}]   ;;  %s4965_s25 = inlined_call_operand.hbm [shape: f32[2,32], index: 25, kind: output, shape index: {2}]   ;;  %s4966_s26 = inlined_call_operand.hbm [shape: f32[2,32], index: 26, kind: output, shape index: {3}]   ;;  %s4967_s27 = inlined_call_operand.hbm [shape: f32[2,4], index: 27, kind: output, shape index: {4}]  }
   0x1   :  { %4980 = sst [smem:[#allocation15_spill]] %s4940_s0 }
   0x2   :  { %4981 = sst [smem:[#allocation16_spill]] %s4941_s1 }
   0x3   :  { %4982 = sst [smem:[#allocation17_spill]] %s4942_s2 }
   0x4   :  { %4983 = sst [smem:[#allocation18_spill]] %s4943_s3 }
   0x5   :  { %4984 = sst [smem:[#allocation19_spill]] %s4944_s4 }
   0x6   :  { %4985 = sst [smem:[#allocation20_spill]] %s4945_s5 }
   0x7   :  { %4986 = sst [smem:[#allocation21_spill]] %s4946_s6 }
   0x8   :  { %4987 = sst [smem:[#allocation22_spill]] %s4947_s7 }
   0x9   :  { %4988 = sst [smem:[#allocation23_spill]] %s4948_s8 }
   0xa   :  { %4989 = sst [smem:[#allocation24_spill]] %s4949_s9 }
   0xb   :  { %4990 = sst [smem:[#allocation25_spill]] %s4950_s10 }
   0xc   :  { %4991 = sst [smem:[#allocation26_spill]] %s4951_s11 }
   0xd   :  { %4992 = sst [smem:[#allocation27_spill]] %s4958_s18 }
   0xe   :  { %4993 = sst [smem:[#allocation28_spill]] %s4959_s19 }
   0xf   :  { %4994 = sst [smem:[#allocation29_spill]] %s4966_s26 }
  0x10   :  { %4995 = sst [smem:[#allocation30_spill]] %s4967_s27 }
  0x11   :  { %33 = vsyncpa [#allocation5], 0 }
  0x12   :  { %34 = vsyncpa [#allocation7], 0 }
  0x13   :  { %35 = vsyncpa [#allocation10], 0  ;;  %s4219_s7 = smov 0  }
  0x14 LB: > { %4996 = sst [smem:[#allocation14_spill]] %s4060_s7  ;;  %s4225_s4 = sadd.s32 4294967295, %s4060_s7   ;;  %s4060_s7 = sphi %s4219_s7, %s41_s7  }
  0x15   : > { %p3349_p0 = scmp.ge.s32.totalorder %s4060_s7, 1  ;;  %p763_p1 = scmp.lt.s32.totalorder %s4060_s7, 3 }
  0x17   : > { %p764_p2 = pnand %p3349_p0, %p763_p1 }
  0x18   : > { %s4997_s9 = sld [smem:[#allocation19_spill]] (!%p764_p2)  ;;  %v4062_v2 = vmov (!%p764_p2), 0   ;;  %p849_p3 = scmp.lt.s32.totalorder (!%p764_p2), %s4225_s4, 1  ;;  %v876_v6 = vlaneseq (!%p764_p2) }
  0x19   : > { %767 = sbr.rel (%p764_p2) target bundleno = 6042 (0x179a), region = 112  ;;  %3811 = vset.pattern.permute.xlu0 (!%p764_p2), %v4062_v2  ;;  %3812 = vset.pattern.permute.xlu1 (!%p764_p2), %v4062_v2  ;;  %s4998_s18 = sld [smem:[#allocation27_spill]] (!%p764_p2) }
  0x1a   : > { %s4999_s19 = sld [smem:[#allocation28_spill]] (!%p764_p2)  ;;  %s5000_s27 = sld [smem:[#allocation25_spill]] (!%p764_p2)  ;;  %v4275_v7 = vshrl.u32 (!%p764_p2), %v876_v6, 7  ;;  %v4277_v8 = vand.u32 (!%p764_p2), 127, %v876_v6 }
  0x1b   : > { %p3360_p4 = scmp.ne.s32.totalorder (!%p764_p2), %s4225_s4, 0 }
  0x1c   : > { %v4280_v9 = vadd.s32 (!%p764_p2), 16, %v4275_v7  ;;  %vm902_vm0 = vcmp.ge.s32.totalorder (!%p764_p2), %v4275_v7, %v4277_v8  ;;  %v4288_v11 = vadd.s32 (!%p764_p2), 8, %v4275_v7 }
  0x1e   : > { %v882_v0 = vld [vmem:[%s4997_s9] sm:$0xff] (!%p764_p2)  ;;  %v884_v1 = vld [vmem:[%s4997_s9 + $0x10] sm:$0xff] (!%p764_p2)  ;;  %v883_v3 = vld [vmem:[%s4997_s9 + $0x8] sm:$0xff] (!%p764_p2)  ;;  %s5001_s9 = sld [smem:[#allocation20_spill]] (!%p764_p2)  ;;  %vm904_vm1 = vcmp.ge.s32.totalorder (!%p764_p2), %v4280_v9, %v4277_v8  ;;  %vm903_vm6 = vcmp.ge.s32.totalorder (!%p764_p2), %v4288_v11, %v4277_v8 }
  0x1f   : > { %887 = vperm.xlu0 (!%p764_p2), %3811, %v882_v0   ;;  %893 = vperm.xlu1 (!%p764_p2), %3812, %v884_v1  }
  0x20   : > { %s850_s29 = scalar_select %p849_p3, %s4225_s4, 1  ;;  %v4253_v4 = vld [vmem:[%s5000_s27] sm:$0xff]  ;;  %v4258_v5 = vld [vmem:[%s5000_s27 + $0x8] sm:$0xff] }
  0x21   : > { %v913_v18 = vld [vmem:[%s4954_s14] sm:$0x3] (!%p3360_p4)  ;;  %vm923_vm9 = vcmask (!%p3360_p4), 1041408   ;;  %v4063_v19 = vmov (!%p3360_p4), 0.0   ;;  %vm4064_vm10 = vmmov (!%p3360_p4), 0   ;;  %s5008_s0 = sld [smem:[#allocation16_spill]] (!%p3360_p4) }
  0x22   : > { %s3460_s1 = sshll.u32 %s850_s29, 4  ;;  %s3463_s6 = sshll.u32 %s850_s29, 6  ;;  %3550 = vmatprep.subr.bf16.mxu0 (!%p3360_p4), %v4063_v19  ;;  %v925_v20 = vsel (!%p3360_p4), %vm923_vm9, %v913_v18, 0  ;;  %3552 = vmatprep.mubr.msk.bf16.mxu0 (!%p3360_p4), %vm4064_vm10, %v4063_v19  ;;  %vm919_vm11 = vcmask (!%p3360_p4), 31744   ;;  %v4065_v24 = vmov (!%p3360_p4), 0   ;;  %vm1147_vm12 = vcmask (!%p3360_p4), 523264  }
  0x23   : > { %890 = vperm.xlu0 %3811, %v883_v3   ;;  %s4243_s3 = scalar_lea.vmem %s4998_s18, %s3460_s1  ;;  %s4248_s5 = scalar_lea.vmem %s4999_s19, %s3460_s1  ;;  %3551 = vmatpush3.bf16.msra.mxu0 (!%p3360_p4), %v925_v20  ;;  %v3827_v40 = vld [vmem:[%s4955_s15] sm:$0xff] (!%p3360_p4)   ;;  %v3828_v41 = vld [vmem:[%s4955_s15 + $0x8] sm:$0xff] (!%p3360_p4)   ;;  %v917_v42 = vsub.s32 (!%p3360_p4), 7, %v4275_v7  ;;  %vm997_vm13 = vcmask (!%p3360_p4), 261120   ;;  %v1073_v59 = vsub.s32 (!%p3360_p4), 2, %v4275_v7  ;;  %vm1191_vm14 = vcmask (!%p3360_p4), 130048  }
  0x24   : > { %s4263_s11 = scalar_lea.vmem %s4960_s20, %s3460_s1  ;;  %s4268_s8 = scalar_lea.vmem %s4961_s21, %s3463_s6  ;;  %v3359_v10 = vld [vmem:[%s5001_s9] ss:$0 sm:$0xff]  ;;  %3556 = vmatprep.subr.bf16.mxu1 (!%p3360_p4), %v4063_v19  ;;  %1151 = vmatprep.subr.bf16.mxu0 (!%p3360_p4), %v4065_v24  ;;  %v4398_v18 = vsub.s32 (!%p3360_p4), 0, %v4275_v7 }
  0x25   : > { %s3358_s30 = sshll.u32 %s850_s29, 3  ;;  %3560 = vmatprep.mubr.msk.bf16.mxu1 (!%p3360_p4), %vm4064_vm10, %v4063_v19  ;;  %3813 = vset.pattern.permute.xlu1 (!%p3360_p4), %v4065_v24  ;;  %s5010_s29 = sld [smem:[#allocation15_spill]] (!%p3360_p4)  ;;  %v918_v43 = vrot.slane (!%p3360_p4), %v4253_v4, %v917_v42  ;;  %v1074_v60 = vrot.slane (!%p3360_p4), %v4253_v4, %v1073_v59  ;;  %v1208_v42 = vsub.s32 (!%p3360_p4), 3, %v4275_v7 }
  0x26   : > { %s4273_s28 = scalar_lea.vmem %s4962_s22, %s3358_s30  ;;  %s5009_s30 = sld [smem:[#allocation26_spill]] (!%p3360_p4)  ;;  %3557 = vmatpush3.bf16.msra.mxu1 (!%p3360_p4), %v3827_v40 }
  0x27   : > { %v912_v21 = vld [vmem:[%s5008_s0] sm:$0x3] (!%p3360_p4)  ;;  %3814 = vset.pattern.permute.xlu0 (!%p3360_p4), %v4065_v24  ;;  %3558 = vmatprep.subr.bf16.mxu1 (!%p3360_p4), %v4063_v19  ;;  %s5011_s18 = sld [smem:[#allocation18_spill]] (!%p3360_p4)  ;;  %s5012_s0 = sld [smem:[#allocation17_spill]] (!%p3360_p4) }
  0x28   : > { %v914_v22 = vpack.c.bf16 (!%p3360_p4), %v912_v21, %v912_v21  ;;  %v984_v21 = vrot.slane (!%p3360_p4), %v4258_v5, %v4398_v18  ;;  %s5013_s2 = sld [smem:[#allocation19_spill]] (!%p3360_p4)  ;;  %s5014_s1 = sld [smem:[#allocation23_spill]] (!%p3360_p4) }
  0x29   : > { %s5015_s26 = sld [smem:[#allocation21_spill]] (!%p3360_p4) }
  0x2a   : > { %3553 = vmatmul.mubr.msk.bf16.vlgmr.msra.gmra.mrb[0].mxu0 (!%p3360_p4), %vm919_vm11, %v914_v22  ;;  %3559 = vmatpush3.bf16.msra.mxu1 (!%p3360_p4), %v3828_v41 }
  0x2b   : > { %v1044_v27 = vld [vmem:[%s5010_s29 + $0x8] sm:$0xff] (!%p3360_p4)  ;;  %v1043_v38 = vld [vmem:[%s5010_s29] sm:$0xff] (!%p3360_p4)  ;;  %3564 = vmatprep.subr.bf16.mxu1 (!%p3360_p4), %v4063_v19 }
  0x2c   : > { %v3815_v23 = vld [vmem:[%s5009_s30] sm:$0xff] (!%p3360_p4)   ;;  %v3816_v25 = vld [vmem:[%s5009_s30 + $0x8] sm:$0xff] (!%p3360_p4)   ;;  %v3817_v26 = vld [vmem:[%s5009_s30 + $0x10] sm:$0xff] (!%p3360_p4)   ;;  %v1070_v29 = vpack.c.bf16 (!%p3360_p4), %v1044_v27, %v1044_v27  ;;  %v1069_v39 = vpack.c.bf16 (!%p3360_p4), %v1043_v38, %v1043_v38 }
  0x2d   : > { %1152 = vmatpush1.bf16.msra.mxu0 (!%p3360_p4), %v3815_v23  ;;  %v3818_v28 = vld [vmem:[%s5009_s30 + $0x18] sm:$0xff] (!%p3360_p4)   ;;  %v3819_v30 = vld [vmem:[%s5009_s30 + $0x20] sm:$0xff] (!%p3360_p4)   ;;  %v3820_v31 = vld [vmem:[%s5009_s30 + $0x28] sm:$0xff] (!%p3360_p4)  }
  0x2e   : > { %1153 = vmatprep.subr.bf16.mxu0 (!%p3360_p4), %v4065_v24  ;;  %3377 = vmatprep.mubr.msk.bf16.mxu0 (!%p3360_p4), %vm1147_vm12, %v1070_v29  ;;  %v3821_v32 = vld [vmem:[%s5009_s30 + $0x30] sm:$0xff] (!%p3360_p4)   ;;  %v3822_v33 = vld [vmem:[%s5009_s30 + $0x38] sm:$0xff] (!%p3360_p4)   ;;  %v3823_v34 = vld [vmem:[%s5009_s30 + $0x40] sm:$0xff] (!%p3360_p4)  }
  0x2f   : > { %v3824_v35 = vld [vmem:[%s5009_s30 + $0x48] sm:$0xff] (!%p3360_p4)   ;;  %v3825_v36 = vld [vmem:[%s5009_s30 + $0x50] sm:$0xff] (!%p3360_p4)   ;;  %v3826_v37 = vld [vmem:[%s5009_s30 + $0x58] sm:$0xff] (!%p3360_p4)  }
  0x30   : > { %v1550_v20 = vld [vmem:[%s5011_s18] sm:$0x1] (!%p3360_p4)  ;;  %v4433_v38 = vld [vmem:[%s5012_s0 + $0x10] sm:$0xff] (!%p3360_p4) }
  0x31   : > { %1154 = vmatpush1.bf16.msra.mxu0 (!%p3360_p4), %v3816_v25  ;;  %vm1551_vm15 = vcmp.eq.s32.totalorder (!%p3360_p4), %v1550_v20, 60 }
  0x32   : > { %1155 = vmatprep.subr.bf16.mxu0 (!%p3360_p4), %v4065_v24  ;;  %v1552_v22 = vsel (!%p3360_p4), %vm1551_vm15, 1, %v4065_v24 }
  0x33   : > { %v1556_v23 = vrot.slane (!%p3360_p4), %v1552_v22, %v4398_v18 }
  0x35   : > { %1156 = vmatpush1.bf16.msra.mxu0 (!%p3360_p4), %v3817_v26 }
  0x36   : > { %1157 = vmatprep.subr.bf16.mxu0 (!%p3360_p4), %v4065_v24 }
  0x39   : > { %1158 = vmatpush1.bf16.msra.mxu0 (!%p3360_p4), %v3818_v28 }
  0x3a   : > { %1159 = vmatprep.subr.bf16.mxu0 (!%p3360_p4), %v4065_v24 }
  0x3d   : > { %1160 = vmatpush1.bf16.msra.mxu0 (!%p3360_p4), %v3819_v30 }
  0x3e   : > { %1161 = vmatprep.subr.bf16.mxu0 (!%p3360_p4), %v4065_v24 }
  0x41   : > { %1162 = vmatpush1.bf16.msra.mxu0 (!%p3360_p4), %v3820_v31 }
  0x42   : > { %1163 = vmatprep.subr.bf16.mxu0 (!%p3360_p4), %v4065_v24 }
  0x45   : > { %1164 = vmatpush1.bf16.msra.mxu0 (!%p3360_p4), %v3821_v32 }
  0x46   : > { %1165 = vmatprep.subr.bf16.mxu0 (!%p3360_p4), %v4065_v24 }
  0x49   : > { %1166 = vmatpush1.bf16.msra.mxu0 (!%p3360_p4), %v3822_v33 }
  0x4a   : > { %1167 = vmatprep.subr.bf16.mxu0 (!%p3360_p4), %v4065_v24 }
  0x4d   : > { %1168 = vmatpush1.bf16.msra.mxu0 (!%p3360_p4), %v3823_v34 }
  0x4e   : > { %1169 = vmatprep.subr.bf16.mxu0 (!%p3360_p4), %v4065_v24 }
  0x51   : > { %1170 = vmatpush1.bf16.msra.mxu0 (!%p3360_p4), %v3824_v35 }
  0x52   : > { %1171 = vmatprep.subr.bf16.mxu0 (!%p3360_p4), %v4065_v24 }
  0x55   : > { %1172 = vmatpush1.bf16.msra.mxu0 (!%p3360_p4), %v3825_v36  ;;  %v4422_v36 = vld [vmem:[%s5012_s0] sm:$0xff] (!%p3360_p4) }
  0x56   : > { %1173 = vmatprep.subr.bf16.mxu0 (!%p3360_p4), %v4065_v24 }
  0x59   : > { %1174 = vmatpush1.bf16.msra.mxu0 (!%p3360_p4), %v3826_v37  ;;  %v4428_v37 = vld [vmem:[%s5012_s0 + $0x8] sm:$0xff] (!%p3360_p4) }
  0x5c   : > { %1184 = vmatmul.mubr.bf16.vlgmr.msra.gmra.mrb[4].mxu0 (!%p3360_p4), %v1069_v39 }
  0x9e   : > { %v888_v12 = vpop.permute.xlu0 %887  ;;  %v894_v13 = vpop.permute.xlu1 %893  ;;  %911 = sbr.rel (%p3360_p4) target bundleno = 1307 (0x51b), region = 116 }
  0x9f   : > { %vm899_vm2 = vcmp.eq.s32.totalorder %v888_v12, %v3359_v10  ;;  %vm901_vm3 = vcmp.eq.s32.totalorder %v894_v13, %v3359_v10 }
  0xa0   : > { %vm4292_vm4 = vmand %vm899_vm2, %vm902_vm0  ;;  %vm1041_vm0 = vcmask (!%p3360_p4), 254976   ;;  %vm1564_vm2 = vcmask (!%p3360_p4), 195584  }
  0xa1   : > { %vm4296_vm5 = vmand %vm901_vm3, %vm904_vm1  ;;  %vm1557_vm1 = vcmp.eq.s32.totalorder (!%p3360_p4), %v1556_v23, 1 }
  0xa2   : > { %v891_v16 = vpop.permute.xlu0 %890  ;;  %vm1558_vm3 = vmand (!%p3360_p4), %vm4292_vm4, %vm1557_vm1 }
  0xa3   : > { %vm900_vm7 = vcmp.eq.s32.totalorder %v891_v16, %v3359_v10  ;;  %v3829_v16 = vld [vmem:[%s4952_s12] sm:$0xff] (!%p3360_p4)   ;;  %v1561_v29 = vsel (!%p3360_p4), %vm1558_vm3, 1.0, %v4063_v19  ;;  %vm1464_vm3 = vcmask (!%p3360_p4), 15360  }
  0xa4   : > { %vm4302_vm8 = vmand %vm900_vm7, %vm903_vm6  ;;  %v1565_v31 = vsel (!%p3360_p4), %vm1564_vm2, %v1561_v29, 0.0 }
  0xa5   : > { %vm1559_vm6 = vmand %vm4302_vm8, %vm1557_vm1  ;;  %1566 = vadd.xlane.f32.xlu1 %v1565_v31  ;;  %v1452_v31 = vld [vmem:[%s5015_s26] sm:$0x1]  ;;  %s5016_s26 = sld [smem:[#allocation24_spill]] }
  0xa6   : > { %v1562_v32 = vsel %vm1559_vm6, 1.0, %v4063_v19  ;;  %vm1560_vm7 = vmand %vm4296_vm5, %vm1557_vm1 }
  0xa7   : > { %v1563_v33 = vsel %vm1560_vm7, 1.0, %v4063_v19  ;;  %v1568_v34 = vsel %vm1564_vm2, %v1562_v32, 0.0  ;;  %vm1548_vm7 = vcmp.eq.s32.totalorder %v4428_v37, 60 }
  0xa8   : > { %v1571_v35 = vsel %vm1564_vm2, %v1563_v33, 0.0 }
  0xa9   : > { %1569 = vadd.xlane.f32.xlu1 %v1568_v34 }
  0xba   : > { %1349 = vperm.xlu1 %3813, %v4422_v36  }
  0xbe   : > { %1355 = vperm.xlu1 %3813, %v4433_v38  }
  0xfd   : > { %v961_v44 = vpop.f32.mrb[0].mxu0 }
  0xfe   : > { %v962_v45 = vadd.f32 %v961_v44, %v918_v43  ;;  %v3554_v46 = vpop.f32.mrb[1].mxu0  ;;  %v1213_v43 = vsub.s32 4, %v4275_v7  ;;  %v1209_v44 = vrot.slane %v4253_v4, %v1208_v42  ;;  %v1679_v42 = vsel %vm1548_vm7, 1, %v4065_v24 }
  0xff   : > { %v964_v47 = vpop.f32.mrb[2].mxu0  ;;  %vm1626_vm7 = vcmask 1043456  }
 0x100   : > { %v967_v48 = vmul.f32 %v962_v45, %v962_v45  ;;  %v3555_v49 = vpop.f32.mrb[3].mxu0  ;;  %v1214_v47 = vrot.slane %v4253_v4, %v1213_v43 }
 0x102   : > { %v968_v50 = vmul.f32 %v967_v48, %v962_v45 }
 0x104   : > { %v969_v51 = vmul.f32 0.044715, %v968_v50 }
 0x106   : > { %v970_v52 = vadd.f32 %v969_v51, %v962_v45 }
 0x108   : > { %v971_v53 = vmul.f32 0.7978846, %v970_v52 }
 0x10a   : > { %3836 = vtanh.f32 %v971_v53 }
 0x114   : > { %v3837_v54 = vpop.eup %3836 }
 0x115   : > { %v973_v55 = vadd.f32 1.0, %v3837_v54 }
 0x117   : > { %v974_v56 = vmul.f32 0.5, %v973_v55 }
 0x119   : > { %v975_v57 = vmul.f32 %v974_v56, %v962_v45  ;;  %v3830_v56 = vld [vmem:[%s4953_s13] sm:$0xff]  }
 0x11b   : > { %v980_v58 = vpack.c.bf16 %v975_v57, %v975_v57 }
 0x11d   : > { %3561 = vmatmul.mubr.msk.bf16.vlgmr.msra.gmra.mrb[0].mxu1 %vm997_vm13, %v980_v58 }
 0x11e   : > { %3566 = vmatprep.mubr.msk.bf16.mxu1 %vm4064_vm10, %v4063_v19  ;;  %3565 = vmatpush3.bf16.msra.mxu1 %v3829_v16  ;;  %v1593_v16 = vld [vmem:[%s5013_s2 + $0x8] sm:$0xff] }
 0x11f   : > { %3570 = vmatprep.subr.bf16.mxu1 %v4063_v19 }
 0x12f   : > { %v1185_v61 = vpop.f32.mrb[4].mxu0 }
 0x130   : > { %v1186_v62 = vadd.f32 %v1185_v61, %v1074_v60  ;;  %v1187_v63 = vpop.f32.mrb[5].mxu0 }
 0x131   : > { %v1188_v0 = vpop.f32.mrb[6].mxu0 }
 0x132   : > { %v1189_v1 = vpop.f32.mrb[7].mxu0  ;;  %v1192_v2 = vsel %vm1191_vm14, %v1186_v62, 0.0  ;;  %v1567_v51 = vpop.xlane.xlu1 %1566  ;;  %v1592_v0 = vld [vmem:[%s5013_s2] sm:$0xff] }
 0x133   : > { %1193 = vadd.xlane.f32.xlu0 %v1192_v2  ;;  %v3756_v52 = vtrunc.f32 %v1567_v51  ;;  %v1595_v2 = vmul.u32 4, %v1592_v0 }
 0x135   : > { %v3757_v53 = vcvt.f32.s32 %v3756_v52 }
 0x136   : > { %v1570_v54 = vpop.xlane.xlu1 %1569 }
 0x137   : > { %v3391_v55 = vadd.s32 4294967295, %v3757_v53  ;;  %v3758_v57 = vtrunc.f32 %v1570_v54 }
 0x139   : > { %vm1580_vm9 = vcmp.gt.s32.totalorder %v3391_v55, 0  ;;  %v3759_v58 = vcvt.f32.s32 %v3758_v57 }
 0x13a   : > { %v1581_v59 = vsel %vm1580_vm9, %v3391_v55, 0  ;;  %vm1547_vm9 = vcmp.eq.s32.totalorder %v4422_v36, 60  ;;  %v1350_v54 = vpop.permute.xlu1 %1349 }
 0x13b   : > { %vm1586_vm11 = vcmp.lt.s32.totalorder %v1581_v59, 3  ;;  %v3392_v61 = vadd.s32 4294967295, %v3759_v58 }
 0x13c   : > { %v1587_v1 = vsel %vm1586_vm11, %v1581_v59, 3  ;;  %vm1549_vm11 = vcmp.eq.s32.totalorder %v4433_v38, 60 }
 0x13d   : > { %v1680_v43 = vsel %vm1549_vm11, 1, %v4065_v24 }
 0x13e   : > { %v1356_v0 = vpop.permute.xlu1 %1355 }
 0x1c0   : > { %v1194_v3 = vpop.xlane.xlu0 %1193 }
 0x1c1   : > { %v1196_v6 = vmul.f32 0.0625, %v1194_v3 }
 0x1c3   : > { %v1197_v10 = vsub.f32 %v1186_v62, %v1196_v6  ;;  %v3831_v62 = vld [vmem:[%s4953_s13 + $0x8] sm:$0xff]  }
 0x1c5   : > { %v1198_v12 = vmul.f32 %v1197_v10, %v1197_v10 }
 0x1c7   : > { %v1199_v13 = vsel %vm1191_vm14, %v1198_v12, 0.0  ;;  %v1598_v12 = vadd.s32 %v1595_v2, %v1587_v1  ;;  %v3835_v1 = vld [vmem:[%s5014_s1 + $0x18] sm:$0xff]  }
 0x1c8   : > { %1200 = vadd.xlane.f32.xlu0 %v1199_v13 }
 0x1c9   : > { %1602 = vperm.xlu1 %3813, %v1598_v12  }
 0x1cc   : > { %1572 = vadd.xlane.f32.xlu0 %v1571_v35 }
 0x1e2   : > { %1352 = vperm.xlu0 %3814, %v4428_v37   ;;  %v1221_v37 = vsub.s32 5, %v4275_v7 }
 0x1f0   : > { %v1035_v25 = vpop.f32.mrb[0].mxu1 }
 0x1f1   : > { %v4407_v26 = vadd.f32 %v1035_v25, %v984_v21  ;;  %v3562_v27 = vpop.f32.mrb[1].mxu1  ;;  %v1596_v21 = vmul.u32 4, %v1593_v16  ;;  %v1594_v25 = vld [vmem:[%s5013_s2 + $0x10] sm:$0xff] }
 0x1f2   : > { %v1038_v28 = vpop.f32.mrb[2].mxu1 }
 0x1f3   : > { %1042 = vst.msk [vmem:[#allocation3] sm:$0x3] %vm1041_vm0, %v4407_v26  ;;  %v3563_v30 = vpop.f32.mrb[3].mxu1  ;;  %v1597_v28 = vmul.u32 4, %v1594_v25 }
 0x1f4   : > { %v1451_v30 = vmul.u32 12, %v4277_v8 }
 0x1f6   : > { %v1453_v32 = vadd.s32 %v1452_v31, %v1451_v30 }
 0x1f8   : > { %v1457_v33 = vrot.slane %v1453_v32, %v4398_v18 }
 0x1fa   : > { %vm1458_vm1 = vcmp.eq.s32.totalorder %v4275_v7, %v1457_v33  ;;  %vm1459_vm2 = vcmp.eq.s32.totalorder %v4288_v11, %v1457_v33  ;;  %vm1460_vm6 = vcmp.eq.s32.totalorder %v4280_v9, %v1457_v33  ;;  %v1678_v9 = vsel %vm1547_vm9, 1, %v4065_v24 }
 0x1fb   : > { %v4474_v34 = vsel %vm1459_vm2, 1.0, %v4063_v19  ;;  %v4477_v35 = vsel %vm1458_vm1, 1.0, %v4063_v19  ;;  %v4487_v11 = vsel %vm1460_vm6, 1.0, %v4063_v19  ;;  %vm1619_vm6 = vcmask 64512  }
 0x1fc   : > { %v1465_v18 = vsel %vm1464_vm3, %v4477_v35, 0.0 }
 0x248   : > { %v1603_v2 = vpop.permute.xlu1 %1602 }
 0x249   : > { %vm1610_vm1 = vcmp.eq.s32.totalorder %v4277_v8, %v1603_v2 }
 0x255   : > { %v1201_v39 = vpop.xlane.xlu0 %1200 }
 0x256   : > { %v1202_v40 = vmul.f32 0.0625, %v1201_v39  ;;  %v1468_v39 = vsel %vm1464_vm3, %v4474_v34, 0.0 }
 0x257   : > { %1469 = vadd.xlane.f32.xlu0 %v1468_v39 }
 0x258   : > { %v1203_v41 = vadd.f32 1e-05, %v1202_v40  ;;  %v1477_v40 = vpack.c.bf16 %v4474_v34, %v4477_v35 }
 0x259   : > { %v1573_v60 = vpop.xlane.xlu0 %1572 }
 0x25a   : > { %3838 = vrsqrt.f32 %v1203_v41  ;;  %v3760_v63 = vtrunc.f32 %v1573_v60  ;;  %v1471_v41 = vsel %vm1464_vm3, %v4487_v11, 0.0 }
 0x25c   : > { %v3761_v3 = vcvt.f32.s32 %v3760_v63  ;;  %v3834_v63 = vld [vmem:[%s5014_s1 + $0x10] sm:$0xff]  }
 0x25e   : > { %v3393_v13 = vadd.s32 4294967295, %v3761_v3 }
 0x260   : > { %vm1584_vm15 = vcmp.gt.s32.totalorder %v3393_v13, 0 }
 0x261   : > { %v1585_v22 = vsel %vm1584_vm15, %v3393_v13, 0  ;;  %v1353_v38 = vpop.permute.xlu0 %1352  ;;  %vm1359_vm15 = vcmp.eq.s32.totalorder %v4277_v8, %v1356_v0 }
 0x262   : > { %vm1590_vm0 = vcmp.lt.s32.totalorder %v1585_v22, 3  ;;  %v1362_v3 = vsel %vm1359_vm15, 1.0, %v4063_v19 }
 0x263   : > { %v1591_v27 = vsel %vm1590_vm0, %v1585_v22, 3  ;;  %vm1486_vm0 = vcmask 1040384   ;;  %v1288_v22 = vsub.s32 6, %v4275_v7 }
 0x264   : > { %v3839_v45 = vpop.eup %3838  ;;  %v1600_v29 = vadd.s32 %v1597_v28, %v1591_v27 }
 0x265   : > { %v1205_v46 = vmul.f32 %v3839_v45, %v1197_v10  ;;  %v4457_v10 = vld [vmem:[%s5014_s1] sm:$0xff]  }
 0x267   : > { %v1210_v48 = vmul.f32 %v1209_v44, %v1205_v46  ;;  %v1222_v44 = vrot.slane %v4253_v4, %v1221_v37 }
 0x269   : > { %v1215_v49 = vadd.f32 %v1214_v47, %v1210_v48 }
 0x26b   : > { %v1218_v50 = vpack.c.bf16 %v1215_v49, %v1215_v49 }
 0x26d   : > { %3567 = vmatmul.mubr.msk.bf16.vlgmr.msra.gmra.mrb[4].mxu1 %vm1191_vm14, %v1218_v50  ;;  %1685 = vperm.xlu0 %3814, %v1679_v42  }
 0x26e   : > { %3574 = vmatprep.mubr.msk.bf16.mxu1 %vm4064_vm10, %v4063_v19  ;;  %3571 = vmatpush3.bf16.msra.mxu1 %v3830_v56  ;;  %vm1582_vm10 = vcmp.gt.s32.totalorder %v3392_v61, 0 }
 0x26f   : > { %3572 = vmatprep.subr.bf16.mxu1 %v4063_v19  ;;  %v1583_v6 = vsel %vm1582_vm10, %v3392_v61, 0  ;;  %vm1357_vm10 = vcmp.eq.s32.totalorder %v4277_v8, %v1350_v54 }
 0x270   : > { %vm1588_vm14 = vcmp.lt.s32.totalorder %v1583_v6, 3  ;;  %v1360_v57 = vsel %vm1357_vm10, 1.0, %v4063_v19 }
 0x271   : > { %v1589_v20 = vsel %vm1588_vm14, %v1583_v6, 3  ;;  %vm1358_vm14 = vcmp.eq.s32.totalorder %v4277_v8, %v1353_v38  ;;  %v1479_v6 = vpack.c.bf16 %v4407_v26, %v4407_v26  ;;  %v1613_v26 = vsel %vm1610_vm1, 1.0, %v4063_v19 }
 0x272   : > { %3573 = vmatpush3.bf16.msra.mxu1 %v3831_v62  ;;  %v1599_v23 = vadd.s32 %v1596_v21, %v1589_v20  ;;  %v1361_v58 = vsel %vm1358_vm14, 1.0, %v4063_v19  ;;  %v3833_v62 = vld [vmem:[%s5014_s1 + $0x8] sm:$0xff]   ;;  %v1478_v20 = vpack.c.bf16 %v4487_v11, %v4487_v11 }
 0x273   : > { %3578 = vmatprep.subr.bf16.mxu1 %v4457_v10  ;;  %v1363_v60 = vpack.c.bf16 %v1361_v58, %v1360_v57  ;;  %v1488_v13 = vsel %vm1486_vm0, %v1479_v6, 0 }
 0x274   : > { %1605 = vperm.xlu1 %3813, %v1599_v23   ;;  %v1289_v23 = vrot.slane %v4253_v4, %v1288_v22 }
 0x278   : > { %1608 = vperm.xlu1 %3813, %v1600_v29  }
 0x29c   : > { %1466 = vadd.xlane.f32.xlu1 %v1465_v18 }
 0x2a0   : > { %1472 = vadd.xlane.f32.xlu1 %v1471_v41 }
 0x2b1   : > { %1682 = vperm.xlu1 %3813, %v1678_v9  }
 0x2b5   : > { %1688 = vperm.xlu1 %3813, %v1680_v43  }
 0x2e4   : > { %v1470_v9 = vpop.xlane.xlu0 %1469 }
 0x2e5   : > { %vm1475_vm11 = vcmp.gt.f32.partialorder %v1470_v9, 0.5 }
 0x2f3   : > { %v1606_v12 = vpop.permute.xlu1 %1605 }
 0x2f4   : > { %vm1611_vm2 = vcmp.eq.s32.totalorder %v4277_v8, %v1606_v12 }
 0x2f5   : > { %v1614_v16 = vsel %vm1611_vm2, 1.0, %v4063_v19 }
 0x2f6   : > { %v1616_v21 = vpack.c.bf16 %v1614_v16, %v1613_v26 }
 0x2f7   : > { %v1609_v25 = vpop.permute.xlu1 %1608 }
 0x329   : > { %v1467_v39 = vpop.xlane.xlu1 %1466 }
 0x32a   : > { %vm1474_vm9 = vcmp.gt.f32.partialorder %v1467_v39, 0.5 }
 0x32d   : > { %v1473_v42 = vpop.xlane.xlu1 %1472 }
 0x340   : > { %v1266_v45 = vpop.f32.mrb[4].mxu1 }
 0x341   : > { %v1267_v46 = vadd.f32 %v1266_v45, %v1222_v44  ;;  %v3568_v47 = vpop.f32.mrb[5].mxu1 }
 0x342   : > { %v1269_v48 = vpop.f32.mrb[6].mxu1 }
 0x343   : > { %v1272_v49 = vmul.f32 %v1267_v46, %v1267_v46  ;;  %v3569_v50 = vpop.f32.mrb[7].mxu1  ;;  %v1683_v48 = vpop.permute.xlu1 %1682 }
 0x344   : > { %v1686_v50 = vpop.permute.xlu0 %1685  ;;  %vm1690_vm14 = vcmp.eq.s32.totalorder %v1683_v48, 1 }
 0x345   : > { %v1273_v51 = vmul.f32 %v1272_v49, %v1267_v46  ;;  %vm1691_vm15 = vcmp.eq.s32.totalorder %v1686_v50, 1 }
 0x347   : > { %v1274_v36 = vmul.f32 0.044715, %v1273_v51  ;;  %v1689_v49 = vpop.permute.xlu1 %1688 }
 0x348   : > { %vm1692_vm10 = vcmp.eq.s32.totalorder %v1689_v49, 1 }
 0x349   : > { %v1275_v52 = vadd.f32 %v1274_v36, %v1267_v46 }
 0x34b   : > { %v1276_v53 = vmul.f32 0.7978846, %v1275_v52 }
 0x34d   : > { %3840 = vtanh.f32 %v1276_v53 }
 0x357   : > { %v3841_v55 = vpop.eup %3840 }
 0x358   : > { %v1278_v24 = vadd.f32 1.0, %v3841_v55  ;;  %v1703_v55 = vld [vmem:[%s5016_s26 + $0x10] sm:$0xff] }
 0x35a   : > { %v1279_v56 = vmul.f32 0.5, %v1278_v24 }
 0x35c   : > { %v1280_v59 = vmul.f32 %v1279_v56, %v1267_v46 }
 0x35e   : > { %v1285_v61 = vpack.c.bf16 %v1280_v59, %v1280_v59 }
 0x360   : > { %3575 = vmatmul.mubr.msk.bf16.vlgmr.msra.gmra.mrb[8].mxu1 %vm997_vm13, %v1285_v61  ;;  %v1702_v61 = vld [vmem:[%s5016_s26 + $0x8] sm:$0xff] }
 0x361   : > { %3579 = vmatpush3.bf16.msra.mxu1 %v4457_v10  ;;  %3586 = vmatprep.mubr.msk.bf16.mxu1 %vm1147_vm12, %v1363_v60  ;;  %v1364_v10 = vpack.c.bf16 %v1362_v3, %v1362_v3  ;;  %v1701_v60 = vld [vmem:[%s5016_s26] sm:$0xff] }
 0x362   : > { %3580 = vmatprep.subr.bf16.mxu1 %v3833_v62 }
 0x365   : > { %3581 = vmatpush3.bf16.msra.mxu1 %v3833_v62 }
 0x366   : > { %3582 = vmatprep.subr.bf16.mxu1 %v3834_v63 }
 0x369   : > { %3583 = vmatpush3.bf16.msra.mxu1 %v3834_v63 }
 0x36a   : > { %3584 = vmatprep.subr.bf16.mxu1 %v3835_v1 }
 0x36d   : > { %3585 = vmatpush3.bf16.msra.mxu1 %v3835_v1 }
 0x36e   : > { %3744 = vmatprep.subr.msk.bf16.mxu1 %vm1486_vm0, %v1479_v6 }
 0x370   : > { %3587 = vmatmul.mubr.msk.bf16.vlgmr.msra.gmra.mrb[12].mxu1 %vm1147_vm12, %v1364_v10  ;;  %vm1612_vm12 = vcmp.eq.s32.totalorder %v4277_v8, %v1609_v25 }
 0x371   : > { %3591 = vmatpush3.bf16.msra.mxu1 %v1488_v13  ;;  %3592 = vmatprep.mubr.msk.bf16.mxu1 %vm1464_vm3, %v1477_v40  ;;  %v1615_v33 = vsel %vm1612_vm12, 1.0, %v4063_v19 }
 0x372   : > { %v1617_v35 = vpack.c.bf16 %v1615_v33, %v1615_v33 }
 0x378   : > { %3593 = vmatmul.mubr.msk.bf16.vlgmr.msra.gmra.mrb[16].mxu1 %vm1464_vm3, %v1478_v20  ;;  %vm1476_vm3 = vcmp.gt.f32.partialorder %v1473_v42, 0.5 }
 0x379   : > { %3598 = vmatprep.mubr.msk.bf16.mxu1 %vm1619_vm6, %v1616_v21 }
 0x433   : > { %v1339_v27 = vpop.f32.mrb[8].mxu1 }
 0x434   : > { %v1340_v28 = vadd.f32 %v1339_v27, %v1289_v23  ;;  %v3576_v29 = vpop.f32.mrb[9].mxu1 }
 0x435   : > { %v1342_v30 = vpop.f32.mrb[10].mxu1 }
 0x436   : > { %v1618_v31 = vpack.c.bf16 %v1340_v28, %v1340_v28  ;;  %v3577_v32 = vpop.f32.mrb[11].mxu1 }
 0x438   : > { %v1628_v34 = vsel %vm1626_vm7, %v1618_v31, 0  ;;  %3745 = vmatprep.subr.msk.bf16.mxu1 %vm1626_vm7, %v1618_v31 }
 0x439   : > { %3597 = vmatpush3.bf16.msra.mxu1 %v1628_v34 }
 0x43c   : > { %3599 = vmatmul.mubr.msk.bf16.vlgmr.msra.gmra.mrb[20].mxu1 %vm1619_vm6, %v1617_v35 }
 0x443   : > { %v3588_v40 = vpop.f32.mrb[12].mxu1 }
 0x444   : > { %v1437_v18 = vpop.f32.mrb[13].mxu1 }
 0x445   : > { %v3589_v11 = vpop.f32.mrb[14].mxu1 }
 0x446   : > { %v1440_v41 = vpop.f32.mrb[15].mxu1 }
 0x44b   : > { %v3594_v43 = vpop.f32.mrb[16].mxu1 }
 0x44c   : > { %v1546_v37 = vsel %vm1476_vm3, %v3594_v43, %v3588_v40  ;;  %v1524_v44 = vpop.f32.mrb[17].mxu1 }
 0x44d   : > { %v1544_v19 = vsel %vm1474_vm9, %v1524_v44, %v1437_v18  ;;  %v3595_v45 = vpop.f32.mrb[18].mxu1 }
 0x44e   : > { %v1527_v46 = vpop.f32.mrb[19].mxu1 }
 0x44f   : > { %v1545_v47 = vsel %vm1475_vm11, %v1527_v46, %v1440_v41 }
 0x50f   : > { %v3600_v51 = vpop.f32.mrb[20].mxu1 }
 0x510   : > { %v1695_v36 = vsel %vm1692_vm10, %v3600_v51, %v1546_v37  ;;  %v1664_v52 = vpop.f32.mrb[21].mxu1 }
 0x511   : > { %v1697_v53 = vpack.c.bf16 %v1695_v36, %v1695_v36  ;;  %v1693_v38 = vsel %vm1690_vm14, %v1664_v52, %v1544_v19  ;;  %v3601_v54 = vpop.f32.mrb[22].mxu1 }
 0x512   : > { %v1667_v24 = vpop.f32.mrb[23].mxu1 }
 0x513   : > { %v1700_v56 = vunpack.c.l.bf16 %v1697_v53  ;;  %v1694_v57 = vsel %vm1691_vm15, %v1667_v24, %v1545_v47 }
 0x514   : > { %v1696_v58 = vpack.c.bf16 %v1694_v57, %v1693_v38 }
 0x515   : > { %v1706_v59 = vadd.f32 %v1703_v55, %v1700_v56 }
 0x516   : > { %v1698_v62 = vunpack.c.l.bf16 %v1696_v58  ;;  %v1699_v63 = vunpack.c.h.bf16 %v1696_v58 }
 0x517   : > { %1709 = vst.msk [vmem:[#allocation2 + $0x10] sm:$0xff] %vm997_vm13, %v1706_v59 }
 0x518   : > { %v1704_v0 = vadd.f32 %v1701_v60, %v1698_v62  ;;  %v1705_v1 = vadd.f32 %v1702_v61, %v1699_v63 }
 0x51a   : > { %1707 = vst.msk [vmem:[#allocation2] sm:$0xff] %vm997_vm13, %v1704_v0  ;;  %1708 = vst.msk [vmem:[#allocation2 + $0x8] sm:$0xff] %vm997_vm13, %v1705_v1 }
 0x51b PF: > { %vm1714_vm0 = vcmask 261120   ;;  %v3847_v35 = vld [vmem:[%s4243_s3] sm:$0xff]   ;;  %v3848_v39 = vld [vmem:[%s4243_s3 + $0x8] sm:$0xff]   ;;  %v4570_v19 = vsub.s32 0, %v4275_v7  ;;  %v4578_v49 = vsub.s32 1, %v4275_v7  ;;  %v1777_v60 = vsub.s32 4, %v4275_v7 }
 0x51c   : > { %3602 = vmatprep.subr.bf16.mxu0 %v3847_v35  ;;  %v4573_v45 = vld [vmem:[%s4273_s28] sm:$0xff]  ;;  %s4066_s3 = smov 96   ;;  %vm1853_vm13 = vcmask 130048   ;;  %vm1917_vm1 = vcmask 195584   ;;  %s4067_s28 = smov 64   ;;  %vm1964_vm2 = vcmask 1043456  }
 0x51d   : > { %3603 = vmatpush3.bf16.msra.mxu0 %v3847_v35  ;;  %v1758_v48 = vrot.slane %v4573_v45, %v4570_v19  ;;  %v1765_v38 = vrot.slane %v4573_v45, %v4578_v49  ;;  %v1778_v61 = vrot.slane %v4573_v45, %v1777_v60  ;;  %s4068_s6 = smov 112   ;;  %s4069_s10 = smov 80  }
 0x51e   : > { %v4551_v3 = vld [vmem:[#allocation2 + $0x10] sm:$0xff]  ;;  %3604 = vmatprep.subr.bf16.mxu0 %v3848_v39  ;;  %s4070_s1 = smov 48   ;;  %s4071_s7 = smov 16  }
 0x51f   : > { %v1721_v12 = vsel %vm1714_vm0, %v4551_v3, 0.0  ;;  %p3424_p5 = scmp.ne.s32.totalorder %s4225_s4, 1 }
 0x520   : > { %1722 = vadd.xlane.f32.xlu1 %v1721_v12  ;;  %vm2769_vm6 = vcmask (!%p3424_p5), 254976   ;;  %vm2926_vm12 = vcmask (!%p3424_p5), 1041408   ;;  %vm2914_vm7 = vcmask (!%p3424_p5), 25600   ;;  %vm2922_vm3 = vcmask (!%p3424_p5), 31744  }
 0x521   : > { %v4549_v2 = vld [vmem:[#allocation2] sm:$0xff]  ;;  %v4553_v6 = vld [vmem:[#allocation2 + $0x8] sm:$0xff]  ;;  %3605 = vmatpush3.bf16.msra.mxu0 %v3848_v39 }
 0x522   : > { %v1715_v10 = vsel %vm1714_vm0, %v4549_v2, 0.0  ;;  %v1718_v13 = vsel %vm1714_vm0, %v4553_v6, 0.0 }
 0x523   : > { %1716 = vadd.xlane.f32.xlu0 %v1715_v10 }
 0x527   : > { %1719 = vadd.xlane.f32.xlu0 %v1718_v13 }
 0x5ad   : > { %v1723_v16 = vpop.xlane.xlu1 %1722 }
 0x5ae   : > { %v1727_v21 = vmul.f32 0.03125, %v1723_v16 }
 0x5b0   : > { %v1717_v26 = vpop.xlane.xlu0 %1716  ;;  %v1730_v23 = vsub.f32 %v4551_v3, %v1727_v21 }
 0x5b1   : > { %v1725_v20 = vmul.f32 0.03125, %v1717_v26 }
 0x5b2   : > { %v1733_v29 = vmul.f32 %v1730_v23, %v1730_v23 }
 0x5b3   : > { %v1728_v22 = vsub.f32 %v4549_v2, %v1725_v20 }
 0x5b4   : > { %v1720_v25 = vpop.xlane.xlu0 %1719  ;;  %v1740_v32 = vsel %vm1714_vm0, %v1733_v29, 0.0 }
 0x5b5   : > { %v1726_v27 = vmul.f32 0.03125, %v1720_v25  ;;  %v1731_v28 = vmul.f32 %v1728_v22, %v1728_v22 }
 0x5b7   : > { %v1729_v30 = vsub.f32 %v4553_v6, %v1726_v27  ;;  %v1734_v31 = vsel %vm1714_vm0, %v1731_v28, 0.0 }
 0x5b8   : > { %1735 = vadd.xlane.f32.xlu1 %v1734_v31 }
 0x5b9   : > { %v1732_v33 = vmul.f32 %v1729_v30, %v1729_v30 }
 0x5bb   : > { %v1737_v34 = vsel %vm1714_vm0, %v1732_v33, 0.0 }
 0x5bc   : > { %1741 = vadd.xlane.f32.xlu1 %v1740_v32  ;;  %1738 = vadd.xlane.f32.xlu0 %v1737_v34 }
 0x645   : > { %v1736_v40 = vpop.xlane.xlu1 %1735 }
 0x646   : > { %v1743_v18 = vmul.f32 0.03125, %v1736_v40 }
 0x648   : > { %v1746_v11 = vadd.f32 1e-05, %v1743_v18 }
 0x649   : > { %v1742_v41 = vpop.xlane.xlu1 %1741  ;;  %v1739_v42 = vpop.xlane.xlu0 %1738 }
 0x64a   : > { %3861 = vrsqrt.f32 %v1746_v11  ;;  %v1745_v9 = vmul.f32 0.03125, %v1742_v41  ;;  %v1744_v43 = vmul.f32 0.03125, %v1739_v42 }
 0x64c   : > { %v1748_v37 = vadd.f32 1e-05, %v1745_v9  ;;  %v1747_v44 = vadd.f32 1e-05, %v1744_v43 }
 0x64e   : > { %3863 = vrsqrt.f32 %v1748_v37 }
 0x64f   : > { %3865 = vrsqrt.f32 %v1747_v44 }
 0x654   : > { %v3862_v46 = vpop.eup %3861 }
 0x655   : > { %v1752_v47 = vmul.f32 %v3862_v46, %v1728_v22 }
 0x657   : > { %v1759_v53 = vmul.f32 %v1758_v48, %v1752_v47 }
 0x658   : > { %v3864_v50 = vpop.eup %3863 }
 0x659   : > { %v3866_v51 = vpop.eup %3865  ;;  %v1754_v36 = vmul.f32 %v3864_v50, %v1730_v23  ;;  %v1766_v56 = vadd.f32 %v1765_v38, %v1759_v53 }
 0x65a   : > { %v1753_v52 = vmul.f32 %v3866_v51, %v1729_v30 }
 0x65b   : > { %v1761_v54 = vmul.f32 %v1758_v48, %v1754_v36 }
 0x65c   : > { %v1760_v55 = vmul.f32 %v1758_v48, %v1753_v52 }
 0x65d   : > { %v1768_v24 = vadd.f32 %v1765_v38, %v1761_v54 }
 0x65e   : > { %v1767_v57 = vadd.f32 %v1765_v38, %v1760_v55 }
 0x65f   : > { %v1774_v58 = vpack.c.bf16 %v1768_v24, %v1768_v24 }
 0x660   : > { %v1773_v59 = vpack.c.bf16 %v1767_v57, %v1766_v56 }
 0x662   : > { %3606 = vmatprep.mubr.msk.bf16.mxu0 %vm1714_vm0, %v1773_v59 }
 0x663   : > { %3607 = vmatmul.mubr.msk.bf16.vlgmr.msra.gmra.mrb[0].mxu0 %vm1714_vm0, %v1774_v58 }
 0x736   : > { %v3608_v62 = vpop.f32.mrb[0].mxu0 }
 0x737   : > { %v1840_v63 = vadd.f32 %v3608_v62, %v1778_v61  ;;  %v1831_v0 = vpop.f32.mrb[1].mxu0 }
 0x738   : > { %v3609_v1 = vpop.f32.mrb[2].mxu0  ;;  %v1832_v13 = vadd.f32 %v1831_v0, %v1778_v61 }
 0x739   : > { %v4586_v10 = vpack.c.bf16 %v1840_v63, %v1840_v63  ;;  %v1834_v12 = vpop.f32.mrb[3].mxu0 }
 0x73a   : > { %v1835_v26 = vadd.f32 %v1834_v12, %v1778_v61 }
 0x73b   : > { %1851 = vrot.lane.b32.xlu1 %v4586_v10, %s4066_s3 }
 0x73c   : > { %v4589_v16 = vpack.c.bf16 %v1835_v26, %v1832_v13 }
 0x73e   : > { %1849 = vrot.lane.b32.xlu0 %v4589_v16, %s4066_s3  ;;  %3614 = vmatprep.mubr.msk.bf16.mxu0 %vm1853_vm13, %v4589_v16  ;;  %s5018_s3 = sld [smem:[#allocation22_spill]] (!%p3424_p5) }
 0x7ad   : > { %v1852_v22 = vpop.permute.xlu1 %1851 }
 0x7ae   : > { %v1864_v23 = vsel %vm1853_vm13, %v1852_v22, 0 }
 0x7b0   : > { %v1850_v20 = vpop.permute.xlu0 %1849 }
 0x7b1   : > { %v1861_v21 = vsel %vm1853_vm13, %v1850_v20, 0  ;;  %3746 = vmatprep.subr.msk.bf16.mxu0 %vm1853_vm13, %v1850_v20 }
 0x7b2   : > { %3611 = vmatpush3.bf16.xpose.msra.mxu0 %v1861_v21 }
 0x7b3   : > { %3747 = vmatprep.subr.msk.bf16.mxu0 %vm1853_vm13, %v1852_v22 }
 0x7ba   : > { %3613 = vmatpush3.bf16.xpose.msra.mxu0 %v1864_v23 }
 0x7c1   : > { %3615 = vmatmul.mubr.msk.bf16.vlgmr.msra.gmra.mrb[4].mxu0 %vm1853_vm13, %v4586_v10 }
 0x894   : > { %v3616_v25 = vpop.f32.mrb[4].mxu0 }
 0x895   : > { %v1900_v27 = vpop.f32.mrb[5].mxu0  ;;  %v1916_v34 = vsel %vm4296_vm5, %v3616_v25, -1e+30 }
 0x896   : > { %v1914_v28 = vsel %vm4292_vm4, %v1900_v27, -1e+30  ;;  %v3617_v29 = vpop.f32.mrb[6].mxu0  ;;  %v1924_v35 = vsel %vm1917_vm1, %v1916_v34, -inf }
 0x897   : > { %v1903_v30 = vpop.f32.mrb[7].mxu0  ;;  %v1918_v31 = vsel %vm1917_vm1, %v1914_v28, -inf }
 0x898   : > { %v1915_v32 = vsel %vm4302_vm8, %v1903_v30, -1e+30  ;;  %1919 = vmax.xlane.f32.xlu1 %v1918_v31 }
 0x899   : > { %v1921_v33 = vsel %vm1917_vm1, %v1915_v32, -inf }
 0x89a   : > { %1922 = vmax.xlane.f32.xlu0 %v1921_v33 }
 0x89e   : > { %1925 = vmax.xlane.f32.xlu0 %v1924_v35 }
 0x925   : > { %v1920_v39 = vpop.xlane.xlu1 %1919 }
 0x926   : > { %v1927_v11 = vsub.f32 %v1914_v28, %v1920_v39 }
 0x927   : > { %v1923_v40 = vpop.xlane.xlu0 %1922 }
 0x928   : > { %v1928_v18 = vsub.f32 %v1915_v32, %v1923_v40  ;;  %v1930_v43 = vmul.f32 1.442695, %v1927_v11 }
 0x92a   : > { %v1932_v41 = vmul.f32 1.442695, %v1928_v18 }
 0x92b   : > { %v1926_v42 = vpop.xlane.xlu0 %1925 }
 0x92c   : > { %3867 = vpow2.f32 %v1932_v41  ;;  %v1929_v9 = vsub.f32 %v1916_v34, %v1926_v42 }
 0x92e   : > { %v1934_v37 = vmul.f32 1.442695, %v1929_v9 }
 0x930   : > { %3869 = vpow2.f32 %v1934_v37 }
 0x931   : > { %3871 = vpow2.f32 %v1930_v43 }
 0x936   : > { %v3868_v44 = vpop.eup %3867 }
 0x937   : > { %v1939_v46 = vsel %vm1917_vm1, %v3868_v44, 0.0 }
 0x938   : > { %1940 = vadd.xlane.f32.xlu0 %v1939_v46 }
 0x93a   : > { %v3870_v47 = vpop.eup %3869 }
 0x93b   : > { %v1942_v48 = vsel %vm1917_vm1, %v3870_v47, 0.0  ;;  %v3872_v50 = vpop.eup %3871 }
 0x93c   : > { %1943 = vadd.xlane.f32.xlu1 %v1942_v48  ;;  %v1936_v51 = vsel %vm1917_vm1, %v3872_v50, 0.0 }
 0x940   : > { %1937 = vadd.xlane.f32.xlu1 %v1936_v51 }
 0x94e   : > { %1953 = vrot.lane.b32.xlu0 %v4589_v16, %s4067_s28 }
 0x951   : > { %1955 = vrot.lane.b32.xlu1 %v4586_v10, %s4067_s28 }
 0x952   : > { %2016 = vrot.lane.b32.xlu0 %v4589_v16, %s4068_s6 }
 0x955   : > { %2020 = vrot.lane.b32.xlu1 %v4589_v16, %s4069_s10 }
 0x959   : > { %2022 = vrot.lane.b32.xlu1 %v4586_v10, %s4069_s10 }
 0x95d   : > { %2018 = vrot.lane.b32.xlu1 %v4586_v10, %s4068_s6 }
 0x9c5   : > { %v1941_v36 = vpop.xlane.xlu0 %1940 }
 0x9c9   : > { %v1944_v52 = vpop.xlane.xlu1 %1943  ;;  %v1954_v53 = vpop.permute.xlu0 %1953 }
 0x9ca   : > { %3618 = vmatprep.subr.bf16.mxu0 %v1954_v53  ;;  %3873 = vrcp.f32 %v1944_v52 }
 0x9cb   : > { %3619 = vmatpush3.bf16.msra.mxu0 %v1954_v53  ;;  %3875 = vrcp.f32 %v1941_v36 }
 0x9cd   : > { %v1938_v38 = vpop.xlane.xlu1 %1937  ;;  %v2017_v0 = vpop.permute.xlu0 %2016 }
 0x9ce   : > { %3877 = vrcp.f32 %v1938_v38 }
 0x9d1   : > { %v1956_v54 = vpop.permute.xlu1 %1955 }
 0x9d2   : > { %v1966_v55 = vsel %vm1964_vm2, %v1956_v54, 0  ;;  %3748 = vmatprep.subr.msk.bf16.mxu0 %vm1964_vm2, %v1956_v54 }
 0x9d3   : > { %3621 = vmatpush3.bf16.msra.mxu0 %v1966_v55 }
 0x9d4   : > { %v3874_v24 = vpop.eup %3873 }
 0x9d5   : > { %v2021_v56 = vpop.permute.xlu1 %2020  ;;  %v3876_v57 = vpop.eup %3875  ;;  %v1950_v59 = vmul.f32 %v3874_v24, %v3870_v47 }
 0x9d6   : > { %3749 = vmatprep.subr.msk.bf16.mxu0 %vm1853_vm13, %v2021_v56  ;;  %v1949_v61 = vmul.f32 %v3876_v57, %v3868_v44  ;;  %v2031_v1 = vsel %vm1853_vm13, %v2021_v56, 0 }
 0x9d7   : > { %v1952_v63 = vpack.c.bf16 %v1950_v59, %v1950_v59  ;;  %v3850_v59 = vld [vmem:[%s4248_s5 + $0x8] sm:$0xff]  }
 0x9d8   : > { %v3878_v58 = vpop.eup %3877 }
 0x9d9   : > { %v1948_v60 = vmul.f32 %v3878_v58, %v3872_v50  ;;  %v2023_v12 = vpop.permute.xlu1 %2022  ;;  %v3849_v58 = vld [vmem:[%s4248_s5] sm:$0xff]  }
 0x9da   : > { %v2034_v13 = vsel %vm1853_vm13, %v2023_v12, 0 }
 0x9db   : > { %v1951_v62 = vpack.c.bf16 %v1949_v61, %v1948_v60 }
 0x9dd   : > { %3622 = vmatprep.mubr.msk.bf16.mxu0 %vm1917_vm1, %v1951_v62  ;;  %v2019_v26 = vpop.permute.xlu1 %2018 }
 0x9de   : > { %3623 = vmatmul.mubr.msk.bf16.vlgmr.msra.gmra.mrb[8].mxu0 %vm1917_vm1, %v1952_v63 }
 0x9df   : > { %3627 = vmatpush3.bf16.xpose.msra.mxu0 %v2031_v1  ;;  %3630 = vmatprep.mubr.msk.bf16.mxu0 %vm1853_vm13, %v2017_v0 }
 0x9e0   : > { %3750 = vmatprep.subr.msk.bf16.mxu0 %vm1853_vm13, %v2023_v12 }
 0x9e7   : > { %3629 = vmatpush3.bf16.xpose.msra.mxu0 %v2034_v13 }
 0x9ee   : > { %3631 = vmatmul.mubr.msk.bf16.vlgmr.msra.gmra.mrb[12].mxu0 %vm1853_vm13, %v2019_v26 }
 0xab1   : > { %v4628_v20 = vpop.f32.mrb[8].mxu0 }
 0xab2   : > { %v4630_v21 = vpop.f32.mrb[9].mxu0 }
 0xab3   : > { %v3625_v22 = vpop.f32.mrb[10].mxu0 }
 0xab4   : > { %v4632_v23 = vpop.f32.mrb[11].mxu0 }
 0xac1   : > { %v3632_v25 = vpop.f32.mrb[12].mxu0 }
 0xac2   : > { %v2070_v27 = vpop.f32.mrb[13].mxu0  ;;  %v2086_v32 = vsel %vm4296_vm5, %v3632_v25, -1e+30 }
 0xac3   : > { %v2084_v28 = vsel %vm4292_vm4, %v2070_v27, -1e+30  ;;  %v3633_v29 = vpop.f32.mrb[14].mxu0  ;;  %v2093_v35 = vsel %vm1917_vm1, %v2086_v32, -inf  ;;  %vm4074_vm4 = vmmov (!%p3424_p5), 0  }
 0xac4   : > { %v2073_v30 = vpop.f32.mrb[15].mxu0  ;;  %v2087_v31 = vsel %vm1917_vm1, %v2084_v28, -inf }
 0xac5   : > { %v2085_v33 = vsel %vm4302_vm8, %v2073_v30, -1e+30  ;;  %2088 = vmax.xlane.f32.xlu0 %v2087_v31  ;;  %v2207_v30 = vsub.s32 5, %v4275_v7  ;;  %vm2711_vm8 = vcmask (!%p3424_p5), 523264  }
 0xac6   : > { %v2090_v34 = vsel %vm1917_vm1, %v2085_v33, -inf }
 0xac7   : > { %2091 = vmax.xlane.f32.xlu1 %v2090_v34  ;;  %v2208_v31 = vrot.slane %v4573_v45, %v2207_v30 }
 0xac9   : > { %2094 = vmax.xlane.f32.xlu0 %v2093_v35 }
 0xb52   : > { %v2089_v39 = vpop.xlane.xlu0 %2088 }
 0xb53   : > { %v2096_v14 = vsub.f32 %v2084_v28, %v2089_v39 }
 0xb54   : > { %v2092_v40 = vpop.xlane.xlu1 %2091 }
 0xb55   : > { %v2099_v18 = vmul.f32 1.442695, %v2096_v14  ;;  %v2097_v11 = vsub.f32 %v2085_v33, %v2092_v40 }
 0xb56   : > { %v2095_v41 = vpop.xlane.xlu0 %2094 }
 0xb57   : > { %3879 = vpow2.f32 %v2099_v18  ;;  %v2101_v42 = vmul.f32 1.442695, %v2097_v11  ;;  %v2098_v15 = vsub.f32 %v2086_v32, %v2095_v41 }
 0xb59   : > { %3881 = vpow2.f32 %v2101_v42  ;;  %v2103_v9 = vmul.f32 1.442695, %v2098_v15 }
 0xb5b   : > { %3883 = vpow2.f32 %v2103_v9 }
 0xb61   : > { %v3880_v17 = vpop.eup %3879 }
 0xb62   : > { %v2105_v43 = vsel %vm1917_vm1, %v3880_v17, 0.0 }
 0xb63   : > { %v3882_v37 = vpop.eup %3881  ;;  %2106 = vadd.xlane.f32.xlu0 %v2105_v43 }
 0xb64   : > { %v2108_v47 = vsel %vm1917_vm1, %v3882_v37, 0.0 }
 0xb65   : > { %v3884_v44 = vpop.eup %3883 }
 0xb66   : > { %v2111_v46 = vsel %vm1917_vm1, %v3884_v44, 0.0 }
 0xb67   : > { %2112 = vadd.xlane.f32.xlu1 %v2111_v46  ;;  %2109 = vadd.xlane.f32.xlu0 %v2108_v47 }
 0xb78   : > { %2124 = vrot.lane.b32.xlu1 %v4586_v10, %s4070_s1 }
 0xb7d   : > { %2122 = vrot.lane.b32.xlu0 %v4589_v16, %s4070_s1 }
 0xbf0   : > { %v2107_v48 = vpop.xlane.xlu0 %2106 }
 0xbf1   : > { %3885 = vrcp.f32 %v2107_v48 }
 0xbf4   : > { %v2110_v50 = vpop.xlane.xlu0 %2109  ;;  %v2113_v51 = vpop.xlane.xlu1 %2112 }
 0xbf5   : > { %3887 = vrcp.f32 %v2110_v50 }
 0xbf6   : > { %3889 = vrcp.f32 %v2113_v51 }
 0xbf8   : > { %v2123_v36 = vpop.permute.xlu0 %2122  ;;  %v2125_v52 = vpop.permute.xlu1 %2124 }
 0xbf9   : > { %3634 = vmatprep.subr.bf16.mxu1 %v2123_v36  ;;  %v2134_v38 = vsel %vm1964_vm2, %v2125_v52, 0 }
 0xbfa   : > { %3635 = vmatpush3.bf16.msra.mxu1 %v2123_v36  ;;  %v3851_v36 = vld [vmem:[%s4263_s11] sm:$0xff]  }
 0xbfb   : > { %3751 = vmatprep.subr.msk.bf16.mxu1 %vm1964_vm2, %v2125_v52  ;;  %v3886_v53 = vpop.eup %3885  ;;  %3650 = vmatprep.subr.bf16.mxu0 %v3851_v36  ;;  %v3852_v52 = vld [vmem:[%s4263_s11 + $0x8] sm:$0xff]  }
 0xbfc   : > { %v2117_v54 = vmul.f32 %v3886_v53, %v3880_v17  ;;  %3651 = vmatpush3.bf16.msra.mxu0 %v3851_v36 }
 0xbfd   : > { %3652 = vmatprep.subr.bf16.mxu0 %v3852_v52 }
 0xbfe   : > { %3637 = vmatpush3.bf16.msra.mxu1 %v2134_v38 }
 0xbff   : > { %v3888_v10 = vpop.eup %3887  ;;  %3642 = vmatprep.subr.bf16.mxu1 %v3849_v58 }
 0xc00   : > { %v3890_v16 = vpop.eup %3889  ;;  %v2118_v55 = vmul.f32 %v3888_v10, %v3882_v37  ;;  %3653 = vmatpush3.bf16.msra.mxu0 %v3852_v52 }
 0xc01   : > { %v2119_v24 = vmul.f32 %v3890_v16, %v3884_v44 }
 0xc02   : > { %v2120_v56 = vpack.c.bf16 %v2118_v55, %v2117_v54 }
 0xc03   : > { %v2121_v57 = vpack.c.bf16 %v2119_v24, %v2119_v24 }
 0xc04   : > { %3638 = vmatprep.mubr.msk.bf16.mxu1 %vm1917_vm1, %v2120_v56 }
 0xc05   : > { %3639 = vmatmul.mubr.msk.bf16.vlgmr.msra.gmra.mrb[0].mxu1 %vm1917_vm1, %v2121_v57 }
 0xc06   : > { %3643 = vmatpush3.bf16.msra.mxu1 %v3849_v58  ;;  %v2319_v58 = vsub.s32 2, %v4275_v7 }
 0xc07   : > { %3644 = vmatprep.subr.bf16.mxu1 %v3850_v59 }
 0xc0a   : > { %3645 = vmatpush3.bf16.msra.mxu1 %v3850_v59 }
 0xcd8   : > { %v3640_v60 = vpop.f32.mrb[0].mxu1 }
 0xcd9   : > { %v2170_v61 = vpop.f32.mrb[1].mxu1 }
 0xcda   : > { %v3641_v62 = vpop.f32.mrb[2].mxu1 }
 0xcdb   : > { %v2173_v63 = vpop.f32.mrb[3].mxu1  ;;  %v2326_v62 = vsub.s32 3, %v4275_v7 }
 0xcdc   : > { %v3842_v0 = vpack.i.bf16 %v2173_v63, %v2170_v61  ;;  %v2320_v61 = vrot.slane %v4573_v45, %v2319_v58 }
 0xcde   : > { %3843 = vrot.lane.b32.xlu1 %v3842_v0, %s4071_s7 }
 0xce2   : > { %2191 = vrot.lane.b32.xlu1 %v3640_v60, %s4071_s7 }
 0xd50   : > { %v3844_v1 = vpop.permute.xlu1 %3843 }
 0xd51   : > { %v3846_v12 = vunpack.i.h.bf16 %v3844_v1  ;;  %v3845_v13 = vunpack.i.l.bf16 %v3844_v1 }
 0xd53   : > { %v2197_v26 = vsel %vm1853_vm13, %v4632_v23, %v3846_v12  ;;  %v2196_v22 = vsel %vm1853_vm13, %v4630_v21, %v3845_v13 }
 0xd54   : > { %v2203_v25 = vpack.c.bf16 %v2197_v26, %v2196_v22  ;;  %v2192_v27 = vpop.permute.xlu1 %2191  ;;  %v2327_v26 = vrot.slane %v4573_v45, %v2326_v62 }
 0xd55   : > { %v2198_v28 = vsel %vm1853_vm13, %v4628_v20, %v2192_v27 }
 0xd56   : > { %v2204_v29 = vpack.c.bf16 %v2198_v28, %v2198_v28  ;;  %3646 = vmatprep.mubr.msk.bf16.mxu1 %vm1714_vm0, %v2203_v25 }
 0xd58   : > { %3647 = vmatmul.mubr.msk.bf16.vlgmr.msra.gmra.mrb[4].mxu1 %vm1714_vm0, %v2204_v29 }
 0xe2b   : > { %v3648_v32 = vpop.f32.mrb[4].mxu1 }
 0xe2c   : > { %v2261_v33 = vpop.f32.mrb[5].mxu1  ;;  %v2270_v23 = vadd.f32 %v3648_v32, %v2208_v31  ;;  %v3853_v32 = vld [vmem:[%s4268_s8] sm:$0xff]  }
 0xe2d   : > { %v2262_v34 = vadd.f32 %v2261_v33, %v2208_v31  ;;  %v3649_v35 = vpop.f32.mrb[6].mxu1  ;;  %3658 = vmatprep.subr.bf16.mxu1 %v3853_v32  ;;  %v3854_v33 = vld [vmem:[%s4268_s8 + $0x8] sm:$0xff]  }
 0xe2e   : > { %v2264_v21 = vpop.f32.mrb[7].mxu1  ;;  %v4668_v20 = vadd.f32 %v2270_v23, %v4551_v3  ;;  %3659 = vmatpush3.bf16.msra.mxu1 %v3853_v32  ;;  %v3855_v23 = vld [vmem:[%s4268_s8 + $0x10] sm:$0xff]   ;;  %v3857_v35 = vld [vmem:[%s4268_s8 + $0x20] sm:$0xff]  }
 0xe2f   : > { %v4665_v39 = vadd.f32 %v2262_v34, %v4549_v2  ;;  %v2265_v14 = vadd.f32 %v2264_v21, %v2208_v31  ;;  %3660 = vmatprep.subr.bf16.mxu1 %v3854_v33  ;;  %v3856_v34 = vld [vmem:[%s4268_s8 + $0x18] sm:$0xff]   ;;  %v3858_v21 = vld [vmem:[%s4268_s8 + $0x28] sm:$0xff]  }
 0xe30   : > { %v2284_v41 = vsel %vm1714_vm0, %v4668_v20, 0.0 }
 0xe31   : > { %v4671_v40 = vadd.f32 %v2265_v14, %v4553_v6  ;;  %v2278_v18 = vsel %vm1714_vm0, %v4665_v39, 0.0  ;;  %v3859_v14 = vld [vmem:[%s4268_s8 + $0x30] sm:$0xff]  }
 0xe32   : > { %2279 = vadd.xlane.f32.xlu0 %v2278_v18  ;;  %3661 = vmatpush3.bf16.msra.mxu1 %v3854_v33  ;;  %v3860_v18 = vld [vmem:[%s4268_s8 + $0x38] sm:$0xff]   ;;  %s5017_s8 = sld [smem:[#allocation23_spill]] (!%p3424_p5) }
 0xe33   : > { %v2281_v11 = vsel %vm1714_vm0, %v4671_v40, 0.0  ;;  %3662 = vmatprep.subr.bf16.mxu1 %v3855_v23 }
 0xe34   : > { %2282 = vadd.xlane.f32.xlu1 %v2281_v11  ;;  %v2339_v11 = vsub.s32 6, %v4275_v7 }
 0xe36   : > { %2285 = vadd.xlane.f32.xlu0 %v2284_v41  ;;  %3663 = vmatpush3.bf16.msra.mxu1 %v3855_v23  ;;  %v2340_v41 = vrot.slane %v4573_v45, %v2339_v11 }
 0xe37   : > { %3664 = vmatprep.subr.bf16.mxu1 %v3856_v34 }
 0xe3a   : > { %3665 = vmatpush3.bf16.msra.mxu1 %v3856_v34 }
 0xe3b   : > { %3666 = vmatprep.subr.bf16.mxu1 %v3857_v35 }
 0xe3e   : > { %3667 = vmatpush3.bf16.msra.mxu1 %v3857_v35 }
 0xe3f   : > { %3668 = vmatprep.subr.bf16.mxu1 %v3858_v21 }
 0xe42   : > { %3669 = vmatpush3.bf16.msra.mxu1 %v3858_v21 }
 0xe43   : > { %3670 = vmatprep.subr.bf16.mxu1 %v3859_v14 }
 0xe46   : > { %3671 = vmatpush3.bf16.msra.mxu1 %v3859_v14 }
 0xe47   : > { %3672 = vmatprep.subr.bf16.mxu1 %v3860_v18 }
 0xe4a   : > { %3673 = vmatpush3.bf16.msra.mxu1 %v3860_v18 }
 0xebf   : > { %v2280_v2 = vpop.xlane.xlu0 %2279 }
 0xec0   : > { %v2287_v42 = vmul.f32 0.03125, %v2280_v2 }
 0xec1   : > { %v2283_v15 = vpop.xlane.xlu1 %2282 }
 0xec2   : > { %v2290_v3 = vsub.f32 %v4665_v39, %v2287_v42  ;;  %v2288_v6 = vmul.f32 0.03125, %v2283_v15 }
 0xec3   : > { %v2286_v9 = vpop.xlane.xlu0 %2285 }
 0xec4   : > { %v2291_v17 = vsub.f32 %v4671_v40, %v2288_v6  ;;  %v2289_v43 = vmul.f32 0.03125, %v2286_v9  ;;  %v2293_v37 = vmul.f32 %v2290_v3, %v2290_v3 }
 0xec6   : > { %v2292_v44 = vsub.f32 %v4668_v20, %v2289_v43  ;;  %v2296_v46 = vsel %vm1714_vm0, %v2293_v37, 0.0  ;;  %v2294_v47 = vmul.f32 %v2291_v17, %v2291_v17 }
 0xec7   : > { %2297 = vadd.xlane.f32.xlu0 %v2296_v46 }
 0xec8   : > { %v2295_v48 = vmul.f32 %v2292_v44, %v2292_v44  ;;  %v2299_v50 = vsel %vm1714_vm0, %v2294_v47, 0.0 }
 0xeca   : > { %v2302_v51 = vsel %vm1714_vm0, %v2295_v48, 0.0 }
 0xecb   : > { %2300 = vadd.xlane.f32.xlu0 %v2299_v50  ;;  %2303 = vadd.xlane.f32.xlu1 %v2302_v51 }
 0xf54   : > { %v2298_v53 = vpop.xlane.xlu0 %2297 }
 0xf55   : > { %v2305_v38 = vmul.f32 0.03125, %v2298_v53 }
 0xf57   : > { %v2308_v10 = vadd.f32 1e-05, %v2305_v38 }
 0xf58   : > { %v2304_v16 = vpop.xlane.xlu1 %2303  ;;  %v2301_v54 = vpop.xlane.xlu0 %2300 }
 0xf59   : > { %3891 = vrsqrt.f32 %v2308_v10  ;;  %v2307_v55 = vmul.f32 0.03125, %v2304_v16  ;;  %v2306_v24 = vmul.f32 0.03125, %v2301_v54 }
 0xf5b   : > { %v2310_v56 = vadd.f32 1e-05, %v2307_v55  ;;  %v2309_v57 = vadd.f32 1e-05, %v2306_v24 }
 0xf5d   : > { %3893 = vrsqrt.f32 %v2310_v56 }
 0xf5e   : > { %3895 = vrsqrt.f32 %v2309_v57 }
 0xf63   : > { %v3892_v59 = vpop.eup %3891 }
 0xf64   : > { %v2314_v60 = vmul.f32 %v3892_v59, %v2290_v3 }
 0xf66   : > { %v2321_v13 = vmul.f32 %v2320_v61, %v2314_v60 }
 0xf67   : > { %v3894_v63 = vpop.eup %3893 }
 0xf68   : > { %v3896_v0 = vpop.eup %3895  ;;  %v2316_v1 = vmul.f32 %v3894_v63, %v2292_v44  ;;  %v2328_v28 = vadd.f32 %v2327_v26, %v2321_v13 }
 0xf69   : > { %v2315_v12 = vmul.f32 %v3896_v0, %v2291_v17 }
 0xf6a   : > { %v2323_v22 = vmul.f32 %v2320_v61, %v2316_v1 }
 0xf6b   : > { %v2322_v25 = vmul.f32 %v2320_v61, %v2315_v12 }
 0xf6c   : > { %v2330_v27 = vadd.f32 %v2327_v26, %v2323_v22  ;;  %v2454_v22 = vsub.s32 7, %v4275_v7 }
 0xf6d   : > { %v2329_v29 = vadd.f32 %v2327_v26, %v2322_v25 }
 0xf6e   : > { %v2336_v30 = vpack.c.bf16 %v2330_v27, %v2330_v27  ;;  %v2455_v25 = vrot.slane %v4573_v45, %v2454_v22 }
 0xf6f   : > { %v2335_v31 = vpack.c.bf16 %v2329_v29, %v2328_v28 }
 0xf71   : > { %3654 = vmatprep.mubr.msk.bf16.mxu0 %vm1714_vm0, %v2335_v31 }
 0xf72   : > { %3655 = vmatmul.mubr.msk.bf16.vlgmr.msra.gmra.mrb[16].mxu0 %vm1714_vm0, %v2336_v30 }
0x1045   : > { %v3656_v2 = vpop.f32.mrb[16].mxu0 }
0x1046   : > { %v2402_v42 = vadd.f32 %v3656_v2, %v2340_v41  ;;  %v2393_v15 = vpop.f32.mrb[17].mxu0 }
0x1047   : > { %v2394_v3 = vadd.f32 %v2393_v15, %v2340_v41  ;;  %v3657_v6 = vpop.f32.mrb[18].mxu0 }
0x1048   : > { %v2409_v9 = vmul.f32 %v2402_v42, %v2402_v42  ;;  %v2396_v17 = vpop.f32.mrb[19].mxu0 }
0x1049   : > { %v2407_v43 = vmul.f32 %v2394_v3, %v2394_v3  ;;  %v2397_v37 = vadd.f32 %v2396_v17, %v2340_v41 }
0x104a   : > { %v2412_v44 = vmul.f32 %v2409_v9, %v2402_v42 }
0x104b   : > { %v2410_v46 = vmul.f32 %v2407_v43, %v2394_v3  ;;  %v2408_v47 = vmul.f32 %v2397_v37, %v2397_v37 }
0x104c   : > { %v2415_v48 = vmul.f32 0.044715, %v2412_v44 }
0x104d   : > { %v2413_v50 = vmul.f32 0.044715, %v2410_v46  ;;  %v2411_v51 = vmul.f32 %v2408_v47, %v2397_v37 }
0x104e   : > { %v2418_v36 = vadd.f32 %v2415_v48, %v2402_v42  ;;  %v3905_v48 = vld [vmem:[%s5017_s8 + $0x8] sm:$0xff] (!%p3424_p5)  }
0x104f   : > { %v2416_v52 = vadd.f32 %v2413_v50, %v2394_v3  ;;  %v2414_v53 = vmul.f32 0.044715, %v2411_v51  ;;  %v2715_v50 = vmul.u32 (!%p3424_p5), 12, %v4275_v7  ;;  %v2716_v51 = vld [vmem:[%s5018_s3] sm:$0x3] (!%p3424_p5) }
0x1050   : > { %v2421_v38 = vmul.f32 0.7978846, %v2418_v36  ;;  %v2655_v36 = vsel (!%p3424_p5), %vm1714_vm0, %v3905_v48, 0 }
0x1051   : > { %v2419_v10 = vmul.f32 0.7978846, %v2416_v52  ;;  %v2417_v16 = vadd.f32 %v2414_v53, %v2397_v37  ;;  %v2717_v52 = vadd.s32 (!%p3424_p5), %v2716_v51, %v2715_v50  ;;  %v3906_v53 = vld [vmem:[%s5017_s8 + $0x10] sm:$0xff] (!%p3424_p5)  }
0x1052   : > { %3897 = vtanh.f32 %v2421_v38  ;;  %v4073_v38 = vmov (!%p3424_p5), 0.0  }
0x1053   : > { %3899 = vtanh.f32 %v2419_v10  ;;  %v2420_v54 = vmul.f32 0.7978846, %v2417_v16  ;;  %3690 = vmatprep.subr.bf16.mxu1 (!%p3424_p5), %v4073_v38  ;;  %v2658_v10 = vsel (!%p3424_p5), %vm1714_vm0, %v3906_v53, 0  ;;  %v3907_v16 = vld [vmem:[%s5017_s8 + $0x18] sm:$0xff] (!%p3424_p5)  }
0x1055   : > { %3901 = vtanh.f32 %v2420_v54  ;;  %v2661_v54 = vsel (!%p3424_p5), %vm1714_vm0, %v3907_v16, 0 }
0x105c   : > { %v3898_v55 = vpop.eup %3897 }
0x105d   : > { %v3900_v24 = vpop.eup %3899  ;;  %v2427_v56 = vadd.f32 1.0, %v3898_v55 }
0x105e   : > { %v2425_v57 = vadd.f32 1.0, %v3900_v24 }
0x105f   : > { %v3902_v59 = vpop.eup %3901  ;;  %v2430_v60 = vmul.f32 0.5, %v2427_v56 }
0x1060   : > { %v2426_v61 = vadd.f32 1.0, %v3902_v59  ;;  %v2428_v62 = vmul.f32 0.5, %v2425_v57 }
0x1061   : > { %v2433_v0 = vmul.f32 %v2430_v60, %v2402_v42 }
0x1062   : > { %v2429_v63 = vmul.f32 0.5, %v2426_v61  ;;  %v2431_v1 = vmul.f32 %v2428_v62, %v2394_v3 }
0x1063   : > { %v2451_v26 = vpack.c.bf16 %v2433_v0, %v2433_v0 }
0x1064   : > { %v2432_v12 = vmul.f32 %v2429_v63, %v2397_v37 }
0x1066   : > { %v2450_v13 = vpack.c.bf16 %v2432_v12, %v2431_v1  ;;  %v2604_v12 = vrot.slane (!%p3424_p5), %v4253_v4, %v4570_v19 }
0x1068   : > { %3674 = vmatprep.mubr.bf16.mxu1 %v2450_v13 }
0x1069   : > { %3675 = vmatmul.mubr.bf16.vlgmr.msra.gmra.mrb[8].mxu1 %v2451_v26 }
0x106a   : > { %3694 = vmatprep.mubr.msk.bf16.mxu1 (!%p3424_p5), %vm4074_vm4, %v4073_v38 }
0x113c   : > { %v3676_v27 = vpop.f32.mrb[8].mxu1 }
0x113d   : > { %v2547_v28 = vadd.f32 %v3676_v27, %v2455_v25  ;;  %v2538_v29 = vpop.f32.mrb[9].mxu1 }
0x113e   : > { %v2539_v30 = vadd.f32 %v2538_v29, %v2455_v25  ;;  %v3677_v31 = vpop.f32.mrb[10].mxu1  ;;  %2561 = sbr.rel (%p3424_p5) target bundleno = 5936 (0x1730), region = 120  ;;  %v2611_v29 = vrot.slane (!%p3424_p5), %v4253_v4, %v4578_v49 }
0x113f   : > { %v2554_v32 = vadd.f32 %v2547_v28, %v4668_v20  ;;  %v2541_v33 = vpop.f32.mrb[11].mxu1 }
0x1140   : > { %v2552_v23 = vadd.f32 %v2539_v30, %v4665_v39  ;;  %v2542_v34 = vadd.f32 %v2541_v33, %v2455_v25  ;;  %v4072_v39 = vmov (!%p3424_p5), 0  }
0x1141   : > { %2557 = vst.msk [vmem:[#allocation2 + $0x10] sm:$0xff] %vm1714_vm0, %v2554_v32  ;;  %v2568_v21 = vsel (!%p3424_p5), %vm1714_vm0, %v2554_v32, 0.0  ;;  %3903 = vset.pattern.permute.xlu0 (!%p3424_p5), %v4072_v39 }
0x1142   : > { %2555 = vst.msk [vmem:[#allocation2] sm:$0xff] %vm1714_vm0, %v2552_v23  ;;  %v2553_v35 = vadd.f32 %v2542_v34, %v4671_v40  ;;  %v2562_v45 = vsel (!%p3424_p5), %vm1714_vm0, %v2552_v23, 0.0  ;;  %2569 = vadd.xlane.f32.xlu1 (!%p3424_p5), %v2568_v21  ;;  %v3904_v40 = vld [vmem:[%s5017_s8] sm:$0xff] (!%p3424_p5)  }
0x1143   : > { %2563 = vadd.xlane.f32.xlu0 (!%p3424_p5), %v2562_v45  ;;  %3752 = vmatprep.subr.msk.bf16.mxu0 (!%p3424_p5), %vm1714_vm0, %v3904_v40  ;;  %v2652_v14 = vsel (!%p3424_p5), %vm1714_vm0, %v3904_v40, 0  ;;  %v3909_v40 = vld [vmem:[%s4956_s16 + $0x8] sm:$0xff] (!%p3424_p5)  }
0x1144   : > { %2556 = vst.msk [vmem:[#allocation2 + $0x8] sm:$0xff] %vm1714_vm0, %v2553_v35  ;;  %v2565_v20 = vsel (!%p3424_p5), %vm1714_vm0, %v2553_v35, 0.0  ;;  %3679 = vmatpush3.bf16.xpose.msra.mxu0 (!%p3424_p5), %v2652_v14 }
0x1145   : > { %3753 = vmatprep.subr.msk.bf16.mxu0 %vm1714_vm0, %v3905_v48 }
0x1147   : > { %2566 = vadd.xlane.f32.xlu0 %v2565_v20 }
0x114c   : > { %3681 = vmatpush3.bf16.xpose.msra.mxu0 %v2655_v36 }
0x114d   : > { %3754 = vmatprep.subr.msk.bf16.mxu0 %vm1714_vm0, %v3906_v53 }
0x1154   : > { %3683 = vmatpush3.bf16.xpose.msra.mxu0 %v2658_v10 }
0x1155   : > { %3755 = vmatprep.subr.msk.bf16.mxu0 %vm1714_vm0, %v3907_v16 }
0x115c   : > { %3685 = vmatpush3.bf16.xpose.msra.mxu0 %v2661_v54 }
0x115d   : > { %3720 = vmatprep.subr.bf16.mxu0 %v4073_v38 }
0x11cf   : > { %v2570_v11 = vpop.xlane.xlu1 %2569 }
0x11d0   : > { %v2564_v18 = vpop.xlane.xlu0 %2563  ;;  %v2573_v2 = vmul.f32 0.03125, %v2570_v11 }
0x11d1   : > { %v2571_v41 = vmul.f32 0.03125, %v2564_v18 }
0x11d2   : > { %v2576_v15 = vsub.f32 %v2554_v32, %v2573_v2 }
0x11d3   : > { %v2574_v42 = vsub.f32 %v2552_v23, %v2571_v41 }
0x11d4   : > { %v2567_v3 = vpop.xlane.xlu0 %2566  ;;  %v2579_v17 = vmul.f32 %v2576_v15, %v2576_v15 }
0x11d5   : > { %v2572_v6 = vmul.f32 0.03125, %v2567_v3  ;;  %v2577_v9 = vmul.f32 %v2574_v42, %v2574_v42 }
0x11d6   : > { %v2586_v44 = vsel %vm1714_vm0, %v2579_v17, 0.0  ;;  %v3911_v17 = vld [vmem:[%s4957_s17 + $0x8] sm:$0xff]  }
0x11d7   : > { %v2575_v43 = vsub.f32 %v2553_v35, %v2572_v6  ;;  %v2580_v37 = vsel %vm1714_vm0, %v2577_v9, 0.0  ;;  %v3910_v9 = vld [vmem:[%s4957_s17] sm:$0xff]  }
0x11d8   : > { %2581 = vadd.xlane.f32.xlu1 %v2580_v37 }
0x11d9   : > { %v2578_v46 = vmul.f32 %v2575_v43, %v2575_v43 }
0x11db   : > { %v2583_v47 = vsel %vm1714_vm0, %v2578_v46, 0.0 }
0x11dc   : > { %2587 = vadd.xlane.f32.xlu1 %v2586_v44  ;;  %2584 = vadd.xlane.f32.xlu0 %v2583_v47 }
0x11f2   : > { %2719 = vperm.xlu0 %3903, %v2717_v52  }
0x1265   : > { %v2582_v55 = vpop.xlane.xlu1 %2581 }
0x1266   : > { %v2589_v24 = vmul.f32 0.03125, %v2582_v55 }
0x1268   : > { %v2592_v56 = vadd.f32 1e-05, %v2589_v24 }
0x1269   : > { %v2588_v57 = vpop.xlane.xlu1 %2587  ;;  %v2585_v59 = vpop.xlane.xlu0 %2584 }
0x126a   : > { %3918 = vrsqrt.f32 %v2592_v56  ;;  %v2591_v60 = vmul.f32 0.03125, %v2588_v57  ;;  %v2590_v61 = vmul.f32 0.03125, %v2585_v59  ;;  %v4810_v57 = vrot.slane %v4258_v5, %v2319_v58 }
0x126c   : > { %v2594_v62 = vadd.f32 1e-05, %v2591_v60  ;;  %v2593_v63 = vadd.f32 1e-05, %v2590_v61 }
0x126e   : > { %3920 = vrsqrt.f32 %v2594_v62 }
0x126f   : > { %3922 = vrsqrt.f32 %v2593_v63 }
0x1271   : > { %v2720_v32 = vpop.permute.xlu0 %2719 }
0x1272   : > { %vm2721_vm5 = vcmp.eq.s32.totalorder %v4277_v8, %v2720_v32  ;;  %v3908_v8 = vld [vmem:[%s4956_s16] sm:$0xff]  }
0x1273   : > { %v2722_v21 = vsel %vm2721_vm5, 1.0, %v4073_v38 }
0x1274   : > { %v3919_v0 = vpop.eup %3918  ;;  %v2723_v20 = vpack.c.bf16 %v2722_v21, %v2722_v21 }
0x1275   : > { %v2598_v1 = vmul.f32 %v3919_v0, %v2574_v42 }
0x1277   : > { %v2605_v28 = vmul.f32 %v2604_v12, %v2598_v1 }
0x1278   : > { %v3921_v13 = vpop.eup %3920 }
0x1279   : > { %v3923_v26 = vpop.eup %3922  ;;  %v2600_v25 = vmul.f32 %v3921_v13, %v2576_v15  ;;  %v2612_v23 = vadd.f32 %v2611_v29, %v2605_v28 }
0x127a   : > { %v2599_v27 = vmul.f32 %v3923_v26, %v2575_v43  ;;  %v4797_v43 = vrot.slane %v4258_v5, %v4578_v49  ;;  %v2916_v49 = vld [vmem:[%s4954_s14] sm:$0x3] }
0x127b   : > { %v2607_v30 = vmul.f32 %v2604_v12, %v2600_v25  ;;  %v2928_v56 = vsel %vm2926_vm12, %v2916_v49, 0  ;;  %v3912_v26 = vld [vmem:[%s4956_s16] sm:$0xff]   ;;  %v3913_v25 = vld [vmem:[%s4956_s16 + $0x8] sm:$0xff]  }
0x127c   : > { %v2606_v31 = vmul.f32 %v2604_v12, %v2599_v27  ;;  %v3044_v27 = vld [vmem:[#allocation3] sm:$0x3] }
0x127d   : > { %v2614_v33 = vadd.f32 %v2611_v29, %v2607_v30  ;;  %v3049_v28 = vpack.c.bf16 %v3044_v27, %v3044_v27  ;;  %v3915_v30 = vld [vmem:[%s4955_s15 + $0x8] sm:$0xff]  }
0x127e   : > { %v2613_v34 = vadd.f32 %v2611_v29, %v2606_v31  ;;  %v3914_v29 = vld [vmem:[%s4955_s15] sm:$0xff]   ;;  %v2921_v31 = vrot.slane %v4253_v4, %v2454_v22 }
0x127f   : > { %v2616_v35 = vpack.c.bf16 %v2614_v33, %v2614_v33 }
0x1280   : > { %v2615_v45 = vpack.c.bf16 %v2613_v34, %v2612_v23 }
0x1281   : > { %v2727_v39 = vsel %vm1964_vm2, %v2616_v35, 0 }
0x1282   : > { %3686 = vmatprep.mubr.msk.bf16.mxu0 %vm1714_vm0, %v2615_v45  ;;  %3691 = vmatpush3.bf16.msra.mxu1 %v2615_v45 }
0x1283   : > { %3687 = vmatmul.mubr.msk.bf16.vlgmr.msra.gmra.mrb[0].mxu0 %vm1714_vm0, %v2616_v35  ;;  %3692 = vmatprep.subr.bf16.mxu1 %v4073_v38 }
0x1284   : > { %3724 = vmatprep.mubr.msk.bf16.mxu0 %vm4074_vm4, %v4073_v38  ;;  %3721 = vmatpush3.bf16.msra.mxu0 %v3914_v29 }
0x1285   : > { %3722 = vmatprep.subr.bf16.mxu0 %v4073_v38 }
0x1286   : > { %3693 = vmatpush3.bf16.msra.mxu1 %v2727_v39 }
0x1287   : > { %3698 = vmatprep.subr.bf16.mxu1 %v4073_v38 }
0x1288   : > { %3723 = vmatpush3.bf16.msra.mxu0 %v3915_v30 }
0x1289   : > { %3695 = vmatmul.mubr.msk.bf16.vlgmr.msra.gmra.mrb[0].mxu1 %vm1917_vm1, %v2723_v20  ;;  %3736 = vmatprep.subr.bf16.mxu0 %v4073_v38 }
0x128a   : > { %3702 = vmatprep.mubr.msk.bf16.mxu1 %vm4074_vm4, %v4073_v38  ;;  %3699 = vmatpush3.bf16.msra.mxu1 %v3908_v8 }
0x128b   : > { %3700 = vmatprep.subr.bf16.mxu1 %v4073_v38 }
0x128e   : > { %3701 = vmatpush3.bf16.msra.mxu1 %v3909_v40 }
0x128f   : > { %3706 = vmatprep.subr.bf16.mxu1 %v4073_v38 }
0x1356   : > { %v3688_v14 = vpop.f32.mrb[0].mxu0 }
0x1357   : > { %2714 = vst.msk [vmem:[%s4963_s23 + $0x10] sm:$0xff] %vm2711_vm8, %v3688_v14  ;;  %v2697_v18 = vpop.f32.mrb[1].mxu0 }
0x1358   : > { %2712 = vst.msk [vmem:[%s4963_s23] sm:$0xff] %vm2711_vm8, %v2697_v18  ;;  %v3689_v11 = vpop.f32.mrb[2].mxu0 }
0x1359   : > { %v2700_v41 = vpop.f32.mrb[3].mxu0 }
0x135a   : > { %2713 = vst.msk [vmem:[%s4963_s23 + $0x8] sm:$0xff] %vm2711_vm8, %v2700_v41 }
0x135c   : > { %v2763_v2 = vpop.f32.mrb[0].mxu1 }
0x135d   : > { %2770 = vst.msk [vmem:[#allocation6] sm:$0x3] %vm2769_vm6, %v2763_v2  ;;  %v2775_v42 = vpack.c.bf16 %v2763_v2, %v2763_v2  ;;  %v3696_v15 = vpop.f32.mrb[1].mxu1 }
0x135e   : > { %v2766_v3 = vpop.f32.mrb[2].mxu1 }
0x135f   : > { %v3697_v6 = vpop.f32.mrb[3].mxu1  ;;  %3703 = vmatmul.mubr.msk.bf16.vlgmr.msra.gmra.mrb[4].mxu1 %vm1714_vm0, %v2775_v42 }
0x1360   : > { %3710 = vmatprep.mubr.msk.bf16.mxu1 %vm4074_vm4, %v4073_v38  ;;  %3707 = vmatpush3.bf16.msra.mxu1 %v3910_v9 }
0x1361   : > { %3708 = vmatprep.subr.bf16.mxu1 %v4073_v38 }
0x1364   : > { %3709 = vmatpush3.bf16.msra.mxu1 %v3911_v17  ;;  %v3916_v17 = vld [vmem:[%s4957_s17] sm:$0xff]  }
0x1365   : > { %3714 = vmatprep.subr.bf16.mxu1 %v4073_v38 }
0x1432   : > { %v2829_v37 = vpop.f32.mrb[4].mxu1 }
0x1433   : > { %v2830_v44 = vadd.f32 %v2829_v37, %v4797_v43  ;;  %v3704_v46 = vpop.f32.mrb[5].mxu1 }
0x1434   : > { %v2832_v47 = vpop.f32.mrb[6].mxu1  ;;  %v3917_v46 = vld [vmem:[%s4957_s17 + $0x8] sm:$0xff]  }
0x1435   : > { %v2835_v48 = vmul.f32 %v2830_v44, %v2830_v44  ;;  %v3705_v50 = vpop.f32.mrb[7].mxu1 }
0x1437   : > { %v2836_v51 = vmul.f32 %v2835_v48, %v2830_v44 }
0x1439   : > { %v2837_v36 = vmul.f32 0.044715, %v2836_v51  ;;  %v2987_v51 = vrot.slane %v4258_v5, %v4570_v19 }
0x143b   : > { %v2838_v52 = vadd.f32 %v2837_v36, %v2830_v44 }
0x143d   : > { %v2839_v53 = vmul.f32 0.7978846, %v2838_v52 }
0x143f   : > { %3924 = vtanh.f32 %v2839_v53 }
0x1449   : > { %v3925_v10 = vpop.eup %3924 }
0x144a   : > { %v2841_v16 = vadd.f32 1.0, %v3925_v10 }
0x144c   : > { %v2842_v54 = vmul.f32 0.5, %v2841_v16 }
0x144e   : > { %v2843_v55 = vmul.f32 %v2842_v54, %v2830_v44 }
0x1450   : > { %v2848_v24 = vpack.c.bf16 %v2843_v55, %v2843_v55 }
0x1452   : > { %3711 = vmatmul.mubr.msk.bf16.vlgmr.msra.gmra.mrb[8].mxu1 %vm1714_vm0, %v2848_v24 }
0x1453   : > { %3716 = vmatprep.mubr.msk.bf16.mxu1 %vm4074_vm4, %v4073_v38  ;;  %3715 = vmatpush3.bf16.msra.mxu1 %v2928_v56 }
0x1454   : > { %3728 = vmatprep.subr.bf16.mxu1 %v4073_v38 }
0x1525   : > { %v2902_v59 = vpop.f32.mrb[8].mxu1 }
0x1526   : > { %v2903_v60 = vadd.f32 %v2902_v59, %v4810_v57  ;;  %v3712_v61 = vpop.f32.mrb[9].mxu1 }
0x1527   : > { %v2905_v62 = vpop.f32.mrb[10].mxu1 }
0x1528   : > { %v3438_v63 = vmul.f32 -1.442695, %v2903_v60  ;;  %v3713_v0 = vpop.f32.mrb[11].mxu1 }
0x152a   : > { %3926 = vpow2.f32 %v3438_v63 }
0x1534   : > { %v3927_v1 = vpop.eup %3926 }
0x1535   : > { %v2911_v12 = vadd.f32 1.0, %v3927_v1 }
0x1537   : > { %3928 = vrcp.f32 %v2911_v12 }
0x1541   : > { %v3929_v13 = vpop.eup %3928 }
0x1542   : > { %2915 = vst.msk [vmem:[#allocation4] sm:$0x3] %vm2914_vm7, %v3929_v13  ;;  %v2917_v58 = vpack.c.bf16 %v3929_v13, %v3929_v13 }
0x1544   : > { %3717 = vmatmul.mubr.msk.bf16.vlgmr.msra.gmra.mrb[12].mxu1 %vm2922_vm3, %v2917_v58 }
0x1545   : > { %3729 = vmatpush3.bf16.msra.mxu1 %v3912_v26  ;;  %3732 = vmatprep.mubr.msk.bf16.mxu1 %vm4074_vm4, %v4073_v38 }
0x1546   : > { %3730 = vmatprep.subr.bf16.mxu1 %v4073_v38 }
0x1549   : > { %3731 = vmatpush3.bf16.msra.mxu1 %v3913_v25 }
0x154c   : > { %3733 = vmatmul.mubr.msk.bf16.vlgmr.msra.gmra.mrb[16].mxu1 %vm1714_vm0, %v3049_v28 }
0x1617   : > { %v2964_v32 = vpop.f32.mrb[12].mxu1 }
0x1618   : > { %v2965_v33 = vadd.f32 %v2964_v32, %v2921_v31  ;;  %v3718_v23 = vpop.f32.mrb[13].mxu1 }
0x1619   : > { %v2967_v34 = vpop.f32.mrb[14].mxu1 }
0x161a   : > { %v2970_v35 = vmul.f32 %v2965_v33, %v2965_v33  ;;  %v3719_v45 = vpop.f32.mrb[15].mxu1 }
0x161c   : > { %v2971_v21 = vmul.f32 %v2970_v35, %v2965_v33 }
0x161e   : > { %v2972_v20 = vmul.f32 0.044715, %v2971_v21 }
0x161f   : > { %v3099_v39 = vpop.f32.mrb[16].mxu1 }
0x1620   : > { %v2973_v8 = vadd.f32 %v2972_v20, %v2965_v33  ;;  %v3100_v40 = vadd.f32 %v3099_v39, %v4797_v43  ;;  %v3734_v14 = vpop.f32.mrb[17].mxu1 }
0x1621   : > { %v3102_v18 = vpop.f32.mrb[18].mxu1 }
0x1622   : > { %v2974_v11 = vmul.f32 0.7978846, %v2973_v8  ;;  %v3105_v41 = vmul.f32 %v3100_v40, %v3100_v40  ;;  %v3735_v2 = vpop.f32.mrb[19].mxu1 }
0x1624   : > { %3930 = vtanh.f32 %v2974_v11  ;;  %v3106_v7 = vmul.f32 %v3105_v41, %v3100_v40 }
0x1626   : > { %v3107_v4 = vmul.f32 0.044715, %v3106_v7 }
0x1628   : > { %v3108_v22 = vadd.f32 %v3107_v4, %v3100_v40 }
0x162a   : > { %v3109_v42 = vmul.f32 0.7978846, %v3108_v22 }
0x162c   : > { %3932 = vtanh.f32 %v3109_v42 }
0x162e   : > { %v3931_v15 = vpop.eup %3930 }
0x162f   : > { %v2976_v3 = vadd.f32 1.0, %v3931_v15 }
0x1631   : > { %v2977_v6 = vmul.f32 0.5, %v2976_v3 }
0x1633   : > { %v2978_v9 = vmul.f32 %v2977_v6, %v2965_v33 }
0x1635   : > { %v2983_v43 = vpack.c.bf16 %v2978_v9, %v2978_v9 }
0x1636   : > { %v3933_v37 = vpop.eup %3932 }
0x1637   : > { %3725 = vmatmul.mubr.msk.bf16.vlgmr.msra.gmra.mrb[4].mxu0 %vm1714_vm0, %v2983_v43  ;;  %v3111_v44 = vadd.f32 1.0, %v3933_v37 }
0x1638   : > { %3737 = vmatpush3.bf16.msra.mxu0 %v3916_v17  ;;  %3740 = vmatprep.mubr.msk.bf16.mxu0 %vm4074_vm4, %v4073_v38 }
0x1639   : > { %3738 = vmatprep.subr.bf16.mxu0 %v4073_v38  ;;  %v3112_v47 = vmul.f32 0.5, %v3111_v44 }
0x163b   : > { %v3113_v48 = vmul.f32 %v3112_v47, %v3100_v40 }
0x163c   : > { %3739 = vmatpush3.bf16.msra.mxu0 %v3917_v46 }
0x163d   : > { %v3118_v50 = vpack.c.bf16 %v3113_v48, %v3113_v48 }
0x163f   : > { %3741 = vmatmul.mubr.msk.bf16.vlgmr.msra.gmra.mrb[8].mxu0 %vm1714_vm0, %v3118_v50 }
0x170a   : > { %v3037_v36 = vpop.f32.mrb[4].mxu0 }
0x170b   : > { %v3038_v52 = vadd.f32 %v3037_v36, %v2987_v51  ;;  %v3726_v53 = vpop.f32.mrb[5].mxu0 }
0x170c   : > { %v3040_v10 = vpop.f32.mrb[6].mxu0 }
0x170d   : > { %3043 = vst.msk [vmem:[#allocation8] sm:$0x3] %vm2769_vm6, %v3038_v52  ;;  %v3727_v16 = vpop.f32.mrb[7].mxu0 }
0x1712   : > { %v3168_v54 = vpop.f32.mrb[8].mxu0 }
0x1713   : > { %v3169_v55 = vadd.f32 %v3168_v54, %v4810_v57  ;;  %v3742_v38 = vpop.f32.mrb[9].mxu0 }
0x1714   : > { %v3171_v24 = vpop.f32.mrb[10].mxu0 }
0x1715   : > { %v3449_v49 = vmul.f32 -1.442695, %v3169_v55  ;;  %v3743_v56 = vpop.f32.mrb[11].mxu0 }
0x1717   : > { %3934 = vpow2.f32 %v3449_v49 }
0x1721   : > { %v3935_v59 = vpop.eup %3934 }
0x1722   : > { %v3177_v60 = vadd.f32 1.0, %v3935_v59 }
0x1724   : > { %3936 = vrcp.f32 %v3177_v60 }
0x172e   : > { %v3937_v61 = vpop.eup %3936 }
0x172f   : > { %3180 = vst.msk [vmem:[#allocation9] sm:$0x3] %vm2914_vm7, %v3937_v61 }
0x1730 PF: > { %p3778_p6 = scmp.eq.s32.totalorder %s4225_s4, 1  ;;  %s4075_s11 = smov [#allocation6]  }
0x1731   : > { %s3202_s8 = sshll.u32 %s4075_s11, 4  ;;  %s4076_s2 = smov [#allocation4]   ;;  %s3203_s8 = int_to_ptr.vmem [resolvable:$true] %s3202_s8 }
0x1732   : > { %s3191_s9 = sshll.u32 %s4076_s2, 4  ;;  %s3938_s18 = scalar_lea.vmem %s3203_s8, 32  ;;  %s3192_s9 = int_to_ptr.vmem [resolvable:$true] %s3191_s9 }
0x1733   : > { %p3939_p7 = scmp.ne.s32.totalorder %s3203_s8, %s3938_s18  ;;  %p3945_p10 = scmp.lt.s32.totalorder %s3203_s8, %s3203_s8 }
0x1734   : > { %p3946_p11 = scmp.lt.s32.totalorder %s3938_s18, %s3938_s18 }
0x1735   : > { %p3940_p8 = pnand %p3939_p7, %p3778_p6 }
0x1736   : > { %p3947_p12 = por %p3946_p11, %p3945_p10 }
0x1737   : > { %p3941_p9 = pneg %p3940_p8 }
0x1739   : > { %p3948_p13 = pnand %p3947_p12, %p3941_p9 }
0x173b   : > { %3951 = shalt.err (!%p3948_p13)
}
0x173c   : > { %s3952_s28 = scalar_lea.hbm %s4965_s25, 32 }
0x173d   : > { %p3953_p0 = scmp.ne.s32.totalorder %s4965_s25, %s3952_s28  ;;  %p3958_p3 = scmp.lt.u32.totalorder %s3952_s28, %s4965_s25 }
0x173f   : > { %p3954_p1 = pnand %p3953_p0, %p3778_p6 }
0x1741   : > { %p3955_p2 = pneg %p3954_p1 }
0x1743   : > { %p3960_p4 = pnand %p3958_p3, %p3955_p2 }
0x1745   : > { %3963 = shalt.err (!%p3960_p4)
}
0x1746   : > { %3765 = dma.vmem_to_hbm [thread:$0]  (%p3778_p6), %s3203_s8, 32, %s4965_s25, [#allocation7]  }
0x1747   : > { %s3964_s2 = scalar_lea.vmem %s3192_s9, 32  ;;  %p3971_p9 = scmp.lt.s32.totalorder %s3192_s9, %s3192_s9 }
0x1748   : > { %p3965_p5 = scmp.ne.s32.totalorder %s3192_s9, %s3964_s2  ;;  %p3972_p10 = scmp.lt.s32.totalorder %s3964_s2, %s3964_s2 }
0x174a   : > { %p3966_p7 = pnand %p3965_p5, %p3778_p6  ;;  %p3973_p11 = por %p3972_p10, %p3971_p9 }
0x174c   : > { %p3967_p8 = pneg %p3966_p7 }
0x174e   : > { %p3974_p12 = pnand %p3973_p11, %p3967_p8 }
0x1750   : > { %3977 = shalt.err (!%p3974_p12)
}
0x1751   : > { %s3978_s3 = scalar_lea.hbm %s4964_s24, 32 }
0x1752   : > { %p3979_p13 = scmp.ne.s32.totalorder %s4964_s24, %s3978_s3  ;;  %p3984_p2 = scmp.lt.u32.totalorder %s3978_s3, %s4964_s24 }
0x1754   : > { %p3980_p0 = pnand %p3979_p13, %p3778_p6 }
0x1756   : > { %p3981_p1 = pneg %p3980_p0 }
0x1758   : > { %p3986_p3 = pnand %p3984_p2, %p3981_p1 }
0x175a   : > { %3989 = shalt.err (!%p3986_p3)
}
0x175b   : > { %3763 = dma.vmem_to_hbm [thread:$0]  (%p3778_p6), %s3192_s9, 32, %s4964_s24, [#allocation5]  }
0x175c   : > { %s4077_s5 = smov [#allocation8]   ;;  %s4078_s2 = smov [#allocation9]  }
0x175d   : > { %s3213_s11 = sshll.u32 %s4077_s5, 4  ;;  %s3224_s18 = sshll.u32 %s4078_s2, 4  ;;  %s3214_s11 = int_to_ptr.vmem [resolvable:$true] %s3213_s11  ;;  %s3225_s18 = int_to_ptr.vmem [resolvable:$true] %s3224_s18 }
0x175e   : > { %s3990_s19 = scalar_lea.vmem %s3214_s11, 32  ;;  %p3997_p8 = scmp.lt.s32.totalorder %s3214_s11, %s3214_s11 }
0x175f   : > { %p3991_p4 = scmp.ne.s32.totalorder %s3214_s11, %s3990_s19  ;;  %p3998_p9 = scmp.lt.s32.totalorder %s3990_s19, %s3990_s19 }
0x1761   : > { %p3992_p5 = pnand %p3991_p4, %p3778_p6  ;;  %p3999_p10 = por %p3998_p9, %p3997_p8 }
0x1763   : > { %p3993_p7 = pneg %p3992_p5 }
0x1765   : > { %p4000_p11 = pnand %p3999_p10, %p3993_p7 }
0x1767   : > { %4003 = shalt.err (!%p4000_p11)
}
0x1768   : > { %s5019_s6 = sld [smem:[#allocation29_spill]] }
0x176e   : > { %s4004_s9 = scalar_lea.hbm %s5019_s6, 32 }
0x176f   : > { %p4005_p12 = scmp.ne.s32.totalorder %s5019_s6, %s4004_s9  ;;  %p4010_p1 = scmp.lt.u32.totalorder %s4004_s9, %s5019_s6 }
0x1771   : > { %p4006_p13 = pnand %p4005_p12, %p3778_p6 }
0x1773   : > { %p4007_p0 = pneg %p4006_p13 }
0x1775   : > { %p4012_p2 = pnand %p4010_p1, %p4007_p0 }
0x1777   : > { %4015 = shalt.err (!%p4012_p2)
}
0x1778   : > { %3767 = dma.vmem_to_hbm [thread:$0]  (%p3778_p6), %s3214_s11, 32, %s5019_s6, [#allocation7]  }
0x1779   : > { %s4016_s19 = scalar_lea.vmem %s3225_s18, 32  ;;  %p4023_p7 = scmp.lt.s32.totalorder %s3225_s18, %s3225_s18 }
0x177a   : > { %p4017_p3 = scmp.ne.s32.totalorder %s3225_s18, %s4016_s19  ;;  %p4024_p8 = scmp.lt.s32.totalorder %s4016_s19, %s4016_s19 }
0x177c   : > { %p4018_p4 = pnand %p4017_p3, %p3778_p6  ;;  %p4025_p9 = por %p4024_p8, %p4023_p7 }
0x177e   : > { %p4019_p5 = pneg %p4018_p4 }
0x1780   : > { %p4026_p10 = pnand %p4025_p9, %p4019_p5 }
0x1782   : > { %4029 = shalt.err (!%p4026_p10)
}
0x1783   : > { %s5020_s9 = sld [smem:[#allocation30_spill]] }
0x1789   : > { %s4030_s8 = scalar_lea.hbm %s5020_s9, 32 }
0x178a   : > { %p4031_p11 = scmp.ne.s32.totalorder %s5020_s9, %s4030_s8  ;;  %p4036_p0 = scmp.lt.u32.totalorder %s4030_s8, %s5020_s9 }
0x178c   : > { %p4032_p12 = pnand %p4031_p11, %p3778_p6 }
0x178e   : > { %p4033_p13 = pneg %p4032_p12 }
0x1790   : > { %p4038_p1 = pnand %p4036_p0, %p4033_p13 }
0x1792   : > { %4041 = shalt.err (!%p4038_p1)
}
0x1793   : > { %3769 = dma.vmem_to_hbm [thread:$0]  (%p3778_p6), %s3225_s18, 32, %s5020_s9, [#allocation10]  }
0x1794   : > { %4047 = dma.done.wait (%p3778_p6), [#allocation5], 32  }
0x1795   : > { %4049 = vsyncadd (%p3778_p6), [#allocation5], 4294967264 }
0x1796   : > { %4051 = dma.done.wait (%p3778_p6), [#allocation7], 64  }
0x1797   : > { %4053 = vsyncadd (%p3778_p6), [#allocation7], 4294967232 }
0x1798   : > { %4055 = dma.done.wait (%p3778_p6), [#allocation10], 32  }
0x1799   : > { %4057 = vsyncadd (%p3778_p6), [#allocation10], 4294967264 }
0x179a PF: > { %s5021_s19 = sld [smem:[#allocation14_spill]] }
0x17a0   : > { %s41_s7 = sadd.s32 1, %s5021_s19  }
0x17a1   : > { %p38_p2 = scmp.ge.s32.totalorder %s41_s7, 4  }
0x17a3   :  { %40 = sbr.rel (!%p38_p2) target bundleno = 20 (0x14), region = 191 }
0x17aa   :  { %3252 = vsyncpa [#allocation5], 1 }
0x17ab   :  { %3254 = vsyncpa [#allocation5 + $0x1], 1 }
0x17ac   :  { %3255 = vsyncpa [#allocation7], 1 }
0x17ad   :  { %3256 = vsyncpa [#allocation10], 1 }

</bundles_post_ra>
